<compile_context>
chip_gen: v7x
topology: tpu7x:2x2x1
jax: 0.10.0
libtpu: 0.0.40
codegen_flags: <defaults>
</compile_context>

<pallas_src>
import functools

import jax
import jax.numpy as jnp
from jax import lax
from jax.experimental import pallas as pl
from jax.experimental.pallas import tpu as pltpu


def _round_up(x, m):
    return (x + m - 1) // m * m


def _query_vmem_capacity():
    # Per-generation VMEM capacity (v5e/v6e: 128 MiB, v7x: 64 MiB per TC).
    try:
        return int(pltpu.get_tpu_info().vmem_capacity_bytes)
    except Exception:
        return 64 * 1024 * 1024  # conservative default (v7x)


_VMEM_CAP = _query_vmem_capacity()


def _vmem_limit(est_bytes):
    # Honest estimate, floored at the scoped default, clamped to 85% of the
    # physical per-core VMEM so the kernel is portable across generations.
    return int(min(int(0.85 * _VMEM_CAP), max(32 * 2**20, int(est_bytes))))


# ---------------------------------------------------------------------------
# Pass 1: conv3d (reflect-padded input already in HBM) + masked per-channel
#         sum / sum-of-squares -> (mean, inv_std).  Depth-tile streamed.
# ---------------------------------------------------------------------------
def _conv3d_stats_kernel(
    x_hbm,        # (N, Dp, C_in_pad, HW_in)  bf16, HBM/ANY (manual DMA)
    w_ref,        # (3, C_out_pad, 9*C_in_pad) bf16, resident (const index)
    b_ref,        # (C_out_pad, 1)             f32, resident
    mask_ref,     # (1, HW_out)                f32 plane validity mask
    y_ref,        # out (1, TD, C_out_pad, HW_out) bf16 pre-norm conv tile
    mean_ref,     # out (1, C_out_pad, 1)      f32 (written on last depth step)
    invstd_ref,   # out (1, C_out_pad, 1)      f32 (written on last depth step)
    xbuf,         # scratch (2, TD+2, C_in_pad, HW_in) bf16 DMA double-buffer
    patches_ref,  # scratch (2, 9*C_in_pad, TD*HW_out) bf16 per-kd im2col
    yacc_ref,     # scratch (C_out_pad, TD*HW_out) f32 conv accumulator
    ssum_ref,     # scratch (C_out_pad, 1)     f32
    ssq_ref,      # scratch (C_out_pad, 1)     f32
    sem,          # scratch DMA semaphores (2,)
    *,
    c_in_pad,     # padded input channel count
    wp,           # padded width (W + 2)
    hw_out,       # lane-padded output plane size (multiple of 128)
    td,           # depth planes per grid step
    count,        # float(D*H*W): valid positions per channel
    eps,
):
    n = pl.program_id(0)
    s = pl.program_id(1)
    n_steps = pl.num_programs(1)
    slot = s % 2

    # -------- streamed input: double-buffered DMA of td+2 halo planes --------
    def _fetch(step_idx, slot_idx):
        pltpu.make_async_copy(
            x_hbm.at[n, pl.ds(step_idx * td, td + 2)],
            xbuf.at[slot_idx],
            sem.at[slot_idx],
        ).start()

    @pl.when(s == 0)
    def _():
        _fetch(0, 0)                              # exposed once per batch elem
        ssum_ref[...] = jnp.zeros_like(ssum_ref)
        ssq_ref[...] = jnp.zeros_like(ssq_ref)

    # wait for the current depth tile
    pltpu.make_async_copy(
        x_hbm.at[n, pl.ds(0, td + 2)], xbuf.at[slot], sem.at[slot]
    ).wait()

    # prefetch the next depth tile into the other slot
    @pl.when(s + 1 < n_steps)
    def _():
        _fetch(s + 1, 1 - slot)

    # -------- per-kd im2col + 3 accumulating MXU matmuls (K = 9*C_in_pad) ----
    # Output flat index j_col = h*Wp + w; tap (kd, kh, kw) reads the padded
    # plane at depth (d + kd), lane (j_col + kh*Wp + kw): a static lane shift.
    for kd in range(3):
        pb = kd % 2                               # alternate patch buffers
        for j in range(td):
            slab = xbuf[slot, j + kd]             # (C_in_pad, HW_in)
            for kh in range(3):
                for kw in range(3):
                    t = kh * 3 + kw
                    shift = kh * wp + kw
                    patches_ref[pb,
                                t * c_in_pad:(t + 1) * c_in_pad,
                                j * hw_out:(j + 1) * hw_out] = (
                        slab[:, shift:shift + hw_out])
        contrib = jnp.dot(w_ref[kd], patches_ref[pb],
                          preferred_element_type=jnp.float32)
        if kd == 0:
            yacc_ref[...] = contrib + b_ref[...]
        else:
            yacc_ref[...] += contrib

    # -------- chunked stats fused with the per-plane stores -------------------
    mrow = mask_ref[...]                          # (1, HW_out)
    psum = jnp.zeros((yacc_ref.shape[0], 1), jnp.float32)
    psq = jnp.zeros((yacc_ref.shape[0], 1), jnp.float32)
    for j in range(td):
        yj = yacc_ref[:, j * hw_out:(j + 1) * hw_out]     # (C_out_pad, HW_out)
        y_ref[0, j] = yj.astype(y_ref.dtype)              # bf16 pre-norm stash
        yjm = yj * mrow                                   # junk lanes -> 0
        psum = psum + jnp.sum(yjm, axis=-1, keepdims=True)
        psq = psq + jnp.sum(yjm * yjm, axis=-1, keepdims=True)
    ssum_ref[...] += psum
    ssq_ref[...] += psq

    # -------- finalize mean / inv_std on the last depth tile ------------------
    @pl.when(s == n_steps - 1)
    def _():
        inv_n = 1.0 / count
        mu = ssum_ref[...] * inv_n                # (C_out_pad, 1)
        var = ssq_ref[...] * inv_n - mu * mu      # biased var (PyTorch)
        mean_ref[0] = mu
        invstd_ref[0] = lax.rsqrt(var + eps)


# ---------------------------------------------------------------------------
# Pass 2: InstanceNorm (apply) + LeakyReLU, lane-dense tiles.
# ---------------------------------------------------------------------------
def _norm_lrelu_kernel(mean_ref, invstd_ref, y_ref, o_ref, *, td, neg_slope):
    mu = mean_ref[0]                              # (C_out_pad, 1)
    inv = invstd_ref[0]                           # (C_out_pad, 1)
    for j in range(td):                           # statically unrolled
        yj = y_ref[0, j].astype(jnp.float32)      # (C_out_pad, HW_out)
        yn = (yj - mu) * inv
        o_ref[0, j] = jnp.where(yn >= 0, yn, neg_slope * yn).astype(o_ref.dtype)


@functools.partial(jax.jit, static_argnames=("compute_dtype",))
def conv3d_block(x, weight, bias, *, compute_dtype=jnp.bfloat16):
    """Conv3d(3x3x3, stride=1, pad=1, reflect) + InstanceNorm3d + LeakyReLU(0.2).

    x:      (N, C_in, D, H, W)
    weight: (C_out, C_in, 3, 3, 3)
    bias:   (C_out,)
    returns (N, C_out, D, H, W) in x.dtype
    """
    N, C_in, D, H, W = x.shape
    C_out = weight.shape[0]
    assert weight.shape == (C_out, C_in, 3, 3, 3)
    assert min(D, H, W) >= 2, "reflect padding (pad=1) needs spatial dims >= 2"

    Dp, Hp, Wp = D + 2, H + 2, W + 2
    c_in_pad = _round_up(C_in, 16)                # bf16 sublane packing
    c_out_pad = _round_up(C_out, 16)              # aligned result rows / stores
    hw_out = _round_up(Hp * Wp, 128)              # lane-dense output plane
    hw_in = _round_up(hw_out + 2 * Wp + 2, 128)   # slack for max lane shift

    # Depth planes per grid step: matmul lane width target scales with VMEM.
    lane_target = 8192 if _VMEM_CAP >= 96 * 2**20 else 2048
    td = 1
    for cand in range(min(D, max(1, lane_target // hw_out)), 0, -1):
        if D % cand == 0:
            td = cand
            break
    lanes = td * hw_out
    out_dtype = x.dtype
    isz_c = jnp.dtype(compute_dtype).itemsize
    isz_o = jnp.dtype(out_dtype).itemsize

    # ------------------------------ plain-JAX glue ---------------------------
    # Reflect pad: ~(Dp*Hp*Wp)/(D*H*W) inflation only -- never a 27x im2col.
    xp = jnp.pad(x, ((0, 0), (0, 0), (1, 1), (1, 1), (1, 1)), mode="reflect")
    xp = xp.astype(compute_dtype)
    if c_in_pad > C_in:
        xp = jnp.pad(xp, ((0, 0), (0, c_in_pad - C_in), (0, 0), (0, 0), (0, 0)))
    # (N, Dp, C_in_pad, HW_in) with a zero-padded, 128-aligned lane axis.
    xk = xp.transpose(0, 2, 1, 3, 4).reshape(N, Dp, c_in_pad, Hp * Wp)
    xk = jnp.pad(xk, ((0, 0), (0, 0), (0, 0), (0, hw_in - Hp * Wp)))

    # Weights -> (kd, C_out_pad, 9*C_in_pad); column order (kh, kw, c_in)
    # matches the per-kd patch-row layout built inside the kernel.
    w = weight.astype(compute_dtype)
    if c_in_pad > C_in:
        w = jnp.pad(w, ((0, 0), (0, c_in_pad - C_in), (0, 0), (0, 0), (0, 0)))
    w3 = w.transpose(2, 0, 3, 4, 1).reshape(3, C_out, 9 * c_in_pad)
    if c_out_pad > C_out:
        w3 = jnp.pad(w3, ((0, 0), (0, c_out_pad - C_out), (0, 0)))
    b2 = jnp.pad(bias.astype(jnp.float32), (0, c_out_pad - C_out)).reshape(
        c_out_pad, 1)

    # Lane validity mask for the statistics (junk columns h >= H or w >= W).
    col = jnp.arange(hw_out, dtype=jnp.int32)
    valid = (col < Hp * Wp) & (col % Wp < W) & (col // Wp < H)
    mask = valid.astype(jnp.float32).reshape(1, hw_out)

    # --------------------------- pass 1: conv + stats ------------------------
    vmem_est1 = (
        2 * (td + 2) * c_in_pad * hw_in * isz_c      # streamed input double-buffer
        + 2 * 9 * c_in_pad * lanes * isz_c           # per-kd im2col (2 alternating)
        + c_out_pad * lanes * 4                      # f32 conv accumulator
        + 2 * td * c_out_pad * hw_out * isz_c        # pre-norm output tile (x2)
        + 2 * 3 * c_out_pad * 9 * c_in_pad * isz_c   # weights
        + (4 << 20)                                  # bias/mask/stats + mosaic scratch
    )
    kernel1 = functools.partial(
        _conv3d_stats_kernel,
        c_in_pad=c_in_pad, wp=Wp, hw_out=hw_out, td=td,
        count=float(D * H * W), eps=1e-5)

    y_pre, mean, invstd = pl.pallas_call(
        kernel1,
        out_shape=(
            jax.ShapeDtypeStruct((N, D, c_out_pad, hw_out), compute_dtype),
            jax.ShapeDtypeStruct((N, c_out_pad, 1), jnp.float32),
            jax.ShapeDtypeStruct((N, c_out_pad, 1), jnp.float32),
        ),
        grid_spec=pltpu.PrefetchScalarGridSpec(
            num_scalar_prefetch=0,
            grid=(N, D // td),
            in_specs=[
                pl.BlockSpec(memory_space=pl.ANY),           # input volume (manual DMA)
                pl.BlockSpec((3, c_out_pad, 9 * c_in_pad), lambda n, s: (0, 0, 0)),
                pl.BlockSpec((c_out_pad, 1), lambda n, s: (0, 0)),
                pl.BlockSpec((1, hw_out), lambda n, s: (0, 0)),
            ],
            out_specs=(
                pl.BlockSpec((1, td, c_out_pad, hw_out), lambda n, s: (n, s, 0, 0)),
                pl.BlockSpec((1, c_out_pad, 1), lambda n, s: (n, 0, 0)),
                pl.BlockSpec((1, c_out_pad, 1), lambda n, s: (n, 0, 0)),
            ),
            scratch_shapes=[
                pltpu.VMEM((2, td + 2, c_in_pad, hw_in), compute_dtype),
                pltpu.VMEM((2, 9 * c_in_pad, lanes), compute_dtype),
                pltpu.VMEM((c_out_pad, lanes), jnp.float32),
                pltpu.VMEM((c_out_pad, 1), jnp.float32),
                pltpu.VMEM((c_out_pad, 1), jnp.float32),
                pltpu.SemaphoreType.DMA((2,)),
            ],
        ),
        compiler_params=pltpu.CompilerParams(
            dimension_semantics=("parallel", "arbitrary"),
            vmem_limit_bytes=_vmem_limit(vmem_est1),
        ),
    )(xk, w3, b2, mask)

    # ----------------------- pass 2: normalize + LeakyReLU -------------------
    vmem_est2 = (
        2 * td * c_out_pad * hw_out * (isz_c + isz_o)   # in/out tiles (double-buffered)
        + (2 << 20)
    )
    kernel2 = functools.partial(_norm_lrelu_kernel, td=td, neg_slope=0.2)
    out_k = pl.pallas_call(
        kernel2,
        out_shape=jax.ShapeDtypeStruct((N, D, c_out_pad, hw_out), out_dtype),
        grid_spec=pltpu.PrefetchScalarGridSpec(
            num_scalar_prefetch=0,
            grid=(N, D // td),
            in_specs=[
                pl.BlockSpec((1, c_out_pad, 1), lambda n, s: (n, 0, 0)),
                pl.BlockSpec((1, c_out_pad, 1), lambda n, s: (n, 0, 0)),
                pl.BlockSpec((1, td, c_out_pad, hw_out), lambda n, s: (n, s, 0, 0)),
            ],
            out_specs=pl.BlockSpec((1, td, c_out_pad, hw_out),
                                   lambda n, s: (n, s, 0, 0)),
        ),
        compiler_params=pltpu.CompilerParams(
            dimension_semantics=("parallel", "parallel"),
            vmem_limit_bytes=_vmem_limit(vmem_est2),
        ),
    )(mean, invstd, y_pre)

    # Crop channel / lane padding and junk columns, restore NCDHW.
    out = out_k[:, :, :C_out, :Hp * Wp].reshape(N, D, C_out, Hp, Wp)[..., :H, :W]
    return out.transpose(0, 2, 1, 3, 4)


if __name__ == "__main__":
    # Small deterministic example consistent with the module's forward.
    N, C_in, C_out = 2, 4, 8
    D = H = W = 16

    key = jax.random.PRNGKey(0)
    kx, kw, kb = jax.random.split(key, 3)
    x = jax.random.normal(kx, (N, C_in, D, H, W), dtype=jnp.float32)
    weight = 0.1 * jax.random.normal(kw, (C_out, C_in, 3, 3, 3), dtype=jnp.float32)
    bias = 0.1 * jax.random.normal(kb, (C_out,), dtype=jnp.float32)

    out = conv3d_block(x, weight, bias)
    out = jax.block_until_ready(out)
    assert out.shape == (N, C_out, D, H, W)

    # Reference (same bf16-rounded operands, f32 math) to validate the kernel.
    xr = x.astype(jnp.bfloat16).astype(jnp.float32)
    wr = weight.astype(jnp.bfloat16).astype(jnp.float32)
    xpad = jnp.pad(xr, ((0, 0), (0, 0), (1, 1), (1, 1), (1, 1)), mode="reflect")
    ref = lax.conv_general_dilated(
        xpad, wr, window_strides=(1, 1, 1), padding="VALID",
        dimension_numbers=("NCDHW", "OIDHW", "NCDHW"))
    ref = ref + bias.reshape(1, C_out, 1, 1, 1)
    mu = ref.mean(axis=(2, 3, 4), keepdims=True)
    var = ref.var(axis=(2, 3, 4), keepdims=True)            # biased, like PyTorch
    refn = (ref - mu) * lax.rsqrt(var + 1e-5)
    refn = jnp.where(refn >= 0, refn, 0.2 * refn)

    err = float(jnp.max(jnp.abs(out - refn)))
    assert err < 5e-2, f"max abs error vs reference: {err}"
    print("KERNEL_OK")
</pallas_src>

<mosaic_0001>
module attributes {stable_mosaic.version = 11 : i64} {
  func.func @_conv3d_stats_kernel(%arg0: i32, %arg1: i32, %arg2: memref<2x18x16x512xbf16, #tpu.memory_space<any>>, %arg3: memref<3x16x144xbf16, #tpu.memory_space<vmem>>, %arg4: memref<16x1xf32, #tpu.memory_space<vmem>>, %arg5: memref<1x384xf32, #tpu.memory_space<vmem>>, %arg6: memref<1x4x16x384xbf16, #tpu.memory_space<vmem>>, %arg7: memref<1x16x1xf32, #tpu.memory_space<vmem>>, %arg8: memref<1x16x1xf32, #tpu.memory_space<vmem>>, %arg9: memref<2x6x16x512xbf16, #tpu.memory_space<vmem>>, %arg10: memref<2x144x1536xbf16, #tpu.memory_space<vmem>>, %arg11: memref<16x1536xf32, #tpu.memory_space<vmem>>, %arg12: memref<16x1xf32, #tpu.memory_space<vmem>>, %arg13: memref<16x1xf32, #tpu.memory_space<vmem>>, %arg14: memref<2x!tpu.dma_semaphore, #tpu.memory_space<semaphore_mem>>) attributes {dimension_semantics = [#tpu.dimension_semantics<parallel>, #tpu.dimension_semantics<arbitrary>], iteration_bounds = array<i64: 2, 4>, scalar_prefetch = 0 : i64, scratch_operands = 6 : i64, tpu.core_type = #tpu.core_type<tc>, window_params = [{}, {pipeline_mode = #tpu.pipeline_mode<synchronous>, transform_indices = @transform_1, window_bounds = array<i64: 3, 16, 144>}, {pipeline_mode = #tpu.pipeline_mode<synchronous>, transform_indices = @transform_2, window_bounds = array<i64: 16, 1>}, {pipeline_mode = #tpu.pipeline_mode<synchronous>, transform_indices = @transform_3, window_bounds = array<i64: 1, 384>}, {transform_indices = @transform_4, window_bounds = array<i64: 1, 4, 16, 384>}, {transform_indices = @transform_5, window_bounds = array<i64: 1, 16, 1>}, {transform_indices = @transform_6, window_bounds = array<i64: 1, 16, 1>}]} {
    %c2_i32 = arith.constant 2 : i32
    %c0_i32 = arith.constant 0 : i32
    %0 = arith.cmpi eq, %c2_i32, %c0_i32 : i32
    %c1_i32 = arith.constant 1 : i32
    %1 = arith.select %0, %c1_i32, %c2_i32 : i32
    %2 = arith.remsi %arg1, %1 : i32
    %c0_i32_0 = arith.constant 0 : i32
    %3 = arith.cmpi ne, %2, %c0_i32_0 : i32
    %c0_i32_1 = arith.constant 0 : i32
    %4 = arith.cmpi slt, %2, %c0_i32_1 : i32
    %c0_i32_2 = arith.constant 0 : i32
    %5 = arith.cmpi slt, %1, %c0_i32_2 : i32
    %6 = arith.xori %4, %5 : i1
    %7 = arith.andi %6, %3 : i1
    %8 = arith.addi %2, %1 : i32
    %9 = arith.select %7, %8, %2 : i32
    %c0_i32_3 = arith.constant 0 : i32
    %10 = arith.cmpi eq, %arg1, %c0_i32_3 : i32
    %11 = arith.extui %10 : i1 to i32
    %c0_i32_4 = arith.constant 0 : i32
    %12 = arith.cmpi ne, %11, %c0_i32_4 : i32
    scf.if %12 {
      %c0_i32_433 = arith.constant 0 : i32
      %c0_i32_434 = arith.constant 0 : i32
      %c0_i32_435 = arith.constant 0 : i32
      %c0_i32_436 = arith.constant 0 : i32
      %c0_i32_437 = arith.constant 0 : i32
      %584 = tpu.memref_slice %arg2[%arg0, %c0_i32_435, %c0_i32_436, %c0_i32_437] : memref<2x18x16x512xbf16, #tpu.memory_space<any>> -> memref<1x6x16x512xbf16, #tpu.memory_space<any>>
      %585 = tpu.memref_squeeze %584 : memref<1x6x16x512xbf16, #tpu.memory_space<any>> -> memref<6x16x512xbf16, #tpu.memory_space<any>>
      %c0_i32_438 = arith.constant 0 : i32
      %c0_i32_439 = arith.constant 0 : i32
      %c0_i32_440 = arith.constant 0 : i32
      %586 = tpu.memref_slice %arg9[%c0_i32_433, %c0_i32_438, %c0_i32_439, %c0_i32_440] : memref<2x6x16x512xbf16, #tpu.memory_space<vmem>> -> memref<1x6x16x512xbf16, #tpu.memory_space<vmem>>
      %587 = tpu.memref_squeeze %586 : memref<1x6x16x512xbf16, #tpu.memory_space<vmem>> -> memref<6x16x512xbf16, #tpu.memory_space<vmem>>
      %588 = tpu.memref_slice %arg14[%c0_i32_434] : memref<2x!tpu.dma_semaphore, #tpu.memory_space<semaphore_mem>> -> memref<1x!tpu.dma_semaphore, #tpu.memory_space<semaphore_mem>>
      %589 = tpu.memref_squeeze %588 : memref<1x!tpu.dma_semaphore, #tpu.memory_space<semaphore_mem>> -> memref<!tpu.dma_semaphore, #tpu.memory_space<semaphore_mem>>
      tpu.enqueue_dma source(%585 : memref<6x16x512xbf16, #tpu.memory_space<any>>) target(%587 : memref<6x16x512xbf16, #tpu.memory_space<vmem>>) target_semaphore(%589 : memref<!tpu.dma_semaphore, #tpu.memory_space<semaphore_mem>>)
      %cst_441 = arith.constant 0.000000e+00 : f32
      %590 = vector.broadcast %cst_441 : f32 to vector<16x1xf32>
      %c0_442 = arith.constant 0 : index
      %c0_443 = arith.constant 0 : index
      %591 = vector.load %arg12[%c0_442, %c0_443] : memref<16x1xf32, #tpu.memory_space<vmem>>, vector<16x1xf32>
      tpu.vector_store %arg12[%c0_442, %c0_443], %590 {strides = array<i32>} : memref<16x1xf32, #tpu.memory_space<vmem>>, vector<16x1xf32>,
      %cst_444 = arith.constant 0.000000e+00 : f32
      %592 = vector.broadcast %cst_444 : f32 to vector<16x1xf32>
      %c0_445 = arith.constant 0 : index
      %c0_446 = arith.constant 0 : index
      %593 = vector.load %arg13[%c0_445, %c0_446] : memref<16x1xf32, #tpu.memory_space<vmem>>, vector<16x1xf32>
      tpu.vector_store %arg13[%c0_445, %c0_446], %592 {strides = array<i32>} : memref<16x1xf32, #tpu.memory_space<vmem>>, vector<16x1xf32>,
    } else {
    }
    %c0_i32_5 = arith.constant 0 : i32
    %c0_i32_6 = arith.constant 0 : i32
    %c0_i32_7 = arith.constant 0 : i32
    %13 = tpu.memref_slice %arg2[%arg0, %c0_i32_5, %c0_i32_6, %c0_i32_7] : memref<2x18x16x512xbf16, #tpu.memory_space<any>> -> memref<1x6x16x512xbf16, #tpu.memory_space<any>>
    %14 = tpu.memref_squeeze %13 : memref<1x6x16x512xbf16, #tpu.memory_space<any>> -> memref<6x16x512xbf16, #tpu.memory_space<any>>
    %c0_i32_8 = arith.constant 0 : i32
    %c0_i32_9 = arith.constant 0 : i32
    %c0_i32_10 = arith.constant 0 : i32
    %15 = tpu.memref_slice %arg9[%9, %c0_i32_8, %c0_i32_9, %c0_i32_10] : memref<2x6x16x512xbf16, #tpu.memory_space<vmem>> -> memref<1x6x16x512xbf16, #tpu.memory_space<vmem>>
    %16 = tpu.memref_squeeze %15 : memref<1x6x16x512xbf16, #tpu.memory_space<vmem>> -> memref<6x16x512xbf16, #tpu.memory_space<vmem>>
    %17 = tpu.memref_slice %arg14[%9] : memref<2x!tpu.dma_semaphore, #tpu.memory_space<semaphore_mem>> -> memref<1x!tpu.dma_semaphore, #tpu.memory_space<semaphore_mem>>
    %18 = tpu.memref_squeeze %17 : memref<1x!tpu.dma_semaphore, #tpu.memory_space<semaphore_mem>> -> memref<!tpu.dma_semaphore, #tpu.memory_space<semaphore_mem>>
    tpu.wait_dma2 semaphore(%18 : memref<!tpu.dma_semaphore, #tpu.memory_space<semaphore_mem>>) src(%14 : memref<6x16x512xbf16, #tpu.memory_space<any>>) dst(%16 : memref<6x16x512xbf16, #tpu.memory_space<vmem>>)
    %c1_i32_11 = arith.constant 1 : i32
    %19 = arith.addi %arg1, %c1_i32_11 : i32
    %c4_i32 = arith.constant 4 : i32
    %20 = arith.cmpi slt, %19, %c4_i32 : i32
    %21 = arith.extui %20 : i1 to i32
    %c0_i32_12 = arith.constant 0 : i32
    %22 = arith.cmpi ne, %21, %c0_i32_12 : i32
    scf.if %22 {
      %c1_i32_433 = arith.constant 1 : i32
      %584 = arith.addi %arg1, %c1_i32_433 : i32
      %c1_i32_434 = arith.constant 1 : i32
      %585 = arith.subi %c1_i32_434, %9 : i32
      %c4_i32_435 = arith.constant 4 : i32
      %586 = arith.muli %584, %c4_i32_435 : i32
      %c0_i32_436 = arith.constant 0 : i32
      %c0_i32_437 = arith.constant 0 : i32
      %587 = tpu.memref_slice %arg2[%arg0, %586, %c0_i32_436, %c0_i32_437] : memref<2x18x16x512xbf16, #tpu.memory_space<any>> -> memref<1x6x16x512xbf16, #tpu.memory_space<any>>
      %588 = tpu.memref_squeeze %587 : memref<1x6x16x512xbf16, #tpu.memory_space<any>> -> memref<6x16x512xbf16, #tpu.memory_space<any>>
      %c0_i32_438 = arith.constant 0 : i32
      %c0_i32_439 = arith.constant 0 : i32
      %c0_i32_440 = arith.constant 0 : i32
      %589 = tpu.memref_slice %arg9[%585, %c0_i32_438, %c0_i32_439, %c0_i32_440] : memref<2x6x16x512xbf16, #tpu.memory_space<vmem>> -> memref<1x6x16x512xbf16, #tpu.memory_space<vmem>>
      %590 = tpu.memref_squeeze %589 : memref<1x6x16x512xbf16, #tpu.memory_space<vmem>> -> memref<6x16x512xbf16, #tpu.memory_space<vmem>>
      %591 = tpu.memref_slice %arg14[%585] : memref<2x!tpu.dma_semaphore, #tpu.memory_space<semaphore_mem>> -> memref<1x!tpu.dma_semaphore, #tpu.memory_space<semaphore_mem>>
      %592 = tpu.memref_squeeze %591 : memref<1x!tpu.dma_semaphore, #tpu.memory_space<semaphore_mem>> -> memref<!tpu.dma_semaphore, #tpu.memory_space<semaphore_mem>>
      tpu.enqueue_dma source(%588 : memref<6x16x512xbf16, #tpu.memory_space<any>>) target(%590 : memref<6x16x512xbf16, #tpu.memory_space<vmem>>) target_semaphore(%592 : memref<!tpu.dma_semaphore, #tpu.memory_space<semaphore_mem>>)
    } else {
    }
    %23 = arith.index_cast %9 : i32 to index
    %c0 = arith.constant 0 : index
    %c0_13 = arith.constant 0 : index
    %c0_14 = arith.constant 0 : index
    %24 = vector.load %arg9[%23, %c0, %c0_13, %c0_14] : memref<2x6x16x512xbf16, #tpu.memory_space<vmem>>, vector<1x1x16x512xbf16>
    %25 = vector.shape_cast %24 : vector<1x1x16x512xbf16> to vector<16x512xbf16>
    %26 = vector.extract_strided_slice %25 {offsets = [0, 0], sizes = [16, 384], strides = [1, 1]} : vector<16x512xbf16> to vector<16x384xbf16>
    %c0_15 = arith.constant 0 : index
    %c0_16 = arith.constant 0 : index
    %c0_17 = arith.constant 0 : index
    %27 = vector.load %arg10[%c0_15, %c0_16, %c0_17] : memref<2x144x1536xbf16, #tpu.memory_space<vmem>>, vector<1x16x384xbf16>
    %28 = vector.shape_cast %27 : vector<1x16x384xbf16> to vector<16x384xbf16>
    %29 = vector.shape_cast %26 : vector<16x384xbf16> to vector<1x16x384xbf16>
    tpu.vector_store %arg10[%c0_15, %c0_16, %c0_17], %29 {strides = array<i32>} : memref<2x144x1536xbf16, #tpu.memory_space<vmem>>, vector<1x16x384xbf16>,
    %30 = vector.extract_strided_slice %25 {offsets = [0, 1], sizes = [16, 384], strides = [1, 1]} : vector<16x512xbf16> to vector<16x384xbf16>
    %c0_18 = arith.constant 0 : index
    %c16 = arith.constant 16 : index
    %c0_19 = arith.constant 0 : index
    %31 = vector.load %arg10[%c0_18, %c16, %c0_19] : memref<2x144x1536xbf16, #tpu.memory_space<vmem>>, vector<1x16x384xbf16>
    %32 = vector.shape_cast %31 : vector<1x16x384xbf16> to vector<16x384xbf16>
    %33 = vector.shape_cast %30 : vector<16x384xbf16> to vector<1x16x384xbf16>
    tpu.vector_store %arg10[%c0_18, %c16, %c0_19], %33 {strides = array<i32>} : memref<2x144x1536xbf16, #tpu.memory_space<vmem>>, vector<1x16x384xbf16>,
    %34 = vector.extract_strided_slice %25 {offsets = [0, 2], sizes = [16, 384], strides = [1, 1]} : vector<16x512xbf16> to vector<16x384xbf16>
    %c0_20 = arith.constant 0 : index
    %c32 = arith.constant 32 : index
    %c0_21 = arith.constant 0 : index
    %35 = vector.load %arg10[%c0_20, %c32, %c0_21] : memref<2x144x1536xbf16, #tpu.memory_space<vmem>>, vector<1x16x384xbf16>
    %36 = vector.shape_cast %35 : vector<1x16x384xbf16> to vector<16x384xbf16>
    %37 = vector.shape_cast %34 : vector<16x384xbf16> to vector<1x16x384xbf16>
    tpu.vector_store %arg10[%c0_20, %c32, %c0_21], %37 {strides = array<i32>} : memref<2x144x1536xbf16, #tpu.memory_space<vmem>>, vector<1x16x384xbf16>,
    %38 = vector.extract_strided_slice %25 {offsets = [0, 18], sizes = [16, 384], strides = [1, 1]} : vector<16x512xbf16> to vector<16x384xbf16>
    %c0_22 = arith.constant 0 : index
    %c48 = arith.constant 48 : index
    %c0_23 = arith.constant 0 : index
    %39 = vector.load %arg10[%c0_22, %c48, %c0_23] : memref<2x144x1536xbf16, #tpu.memory_space<vmem>>, vector<1x16x384xbf16>
    %40 = vector.shape_cast %39 : vector<1x16x384xbf16> to vector<16x384xbf16>
    %41 = vector.shape_cast %38 : vector<16x384xbf16> to vector<1x16x384xbf16>
    tpu.vector_store %arg10[%c0_22, %c48, %c0_23], %41 {strides = array<i32>} : memref<2x144x1536xbf16, #tpu.memory_space<vmem>>, vector<1x16x384xbf16>,
    %42 = vector.extract_strided_slice %25 {offsets = [0, 19], sizes = [16, 384], strides = [1, 1]} : vector<16x512xbf16> to vector<16x384xbf16>
    %c0_24 = arith.constant 0 : index
    %c64 = arith.constant 64 : index
    %c0_25 = arith.constant 0 : index
    %43 = vector.load %arg10[%c0_24, %c64, %c0_25] : memref<2x144x1536xbf16, #tpu.memory_space<vmem>>, vector<1x16x384xbf16>
    %44 = vector.shape_cast %43 : vector<1x16x384xbf16> to vector<16x384xbf16>
    %45 = vector.shape_cast %42 : vector<16x384xbf16> to vector<1x16x384xbf16>
    tpu.vector_store %arg10[%c0_24, %c64, %c0_25], %45 {strides = array<i32>} : memref<2x144x1536xbf16, #tpu.memory_space<vmem>>, vector<1x16x384xbf16>,
    %46 = vector.extract_strided_slice %25 {offsets = [0, 20], sizes = [16, 384], strides = [1, 1]} : vector<16x512xbf16> to vector<16x384xbf16>
    %c0_26 = arith.constant 0 : index
    %c80 = arith.constant 80 : index
    %c0_27 = arith.constant 0 : index
    %47 = vector.load %arg10[%c0_26, %c80, %c0_27] : memref<2x144x1536xbf16, #tpu.memory_space<vmem>>, vector<1x16x384xbf16>
    %48 = vector.shape_cast %47 : vector<1x16x384xbf16> to vector<16x384xbf16>
    %49 = vector.shape_cast %46 : vector<16x384xbf16> to vector<1x16x384xbf16>
    tpu.vector_store %arg10[%c0_26, %c80, %c0_27], %49 {strides = array<i32>} : memref<2x144x1536xbf16, #tpu.memory_space<vmem>>, vector<1x16x384xbf16>,
    %50 = vector.extract_strided_slice %25 {offsets = [0, 36], sizes = [16, 384], strides = [1, 1]} : vector<16x512xbf16> to vector<16x384xbf16>
    %c0_28 = arith.constant 0 : index
    %c96 = arith.constant 96 : index
    %c0_29 = arith.constant 0 : index
    %51 = vector.load %arg10[%c0_28, %c96, %c0_29] : memref<2x144x1536xbf16, #tpu.memory_space<vmem>>, vector<1x16x384xbf16>
    %52 = vector.shape_cast %51 : vector<1x16x384xbf16> to vector<16x384xbf16>
    %53 = vector.shape_cast %50 : vector<16x384xbf16> to vector<1x16x384xbf16>
    tpu.vector_store %arg10[%c0_28, %c96, %c0_29], %53 {strides = array<i32>} : memref<2x144x1536xbf16, #tpu.memory_space<vmem>>, vector<1x16x384xbf16>,
    %54 = vector.extract_strided_slice %25 {offsets = [0, 37], sizes = [16, 384], strides = [1, 1]} : vector<16x512xbf16> to vector<16x384xbf16>
    %c0_30 = arith.constant 0 : index
    %c112 = arith.constant 112 : index
    %c0_31 = arith.constant 0 : index
    %55 = vector.load %arg10[%c0_30, %c112, %c0_31] : memref<2x144x1536xbf16, #tpu.memory_space<vmem>>, vector<1x16x384xbf16>
    %56 = vector.shape_cast %55 : vector<1x16x384xbf16> to vector<16x384xbf16>
    %57 = vector.shape_cast %54 : vector<16x384xbf16> to vector<1x16x384xbf16>
    tpu.vector_store %arg10[%c0_30, %c112, %c0_31], %57 {strides = array<i32>} : memref<2x144x1536xbf16, #tpu.memory_space<vmem>>, vector<1x16x384xbf16>,
    %58 = vector.extract_strided_slice %25 {offsets = [0, 38], sizes = [16, 384], strides = [1, 1]} : vector<16x512xbf16> to vector<16x384xbf16>
    %c0_32 = arith.constant 0 : index
    %c128 = arith.constant 128 : index
    %c0_33 = arith.constant 0 : index
    %59 = vector.load %arg10[%c0_32, %c128, %c0_33] : memref<2x144x1536xbf16, #tpu.memory_space<vmem>>, vector<1x16x384xbf16>
    %60 = vector.shape_cast %59 : vector<1x16x384xbf16> to vector<16x384xbf16>
    %61 = vector.shape_cast %58 : vector<16x384xbf16> to vector<1x16x384xbf16>
    tpu.vector_store %arg10[%c0_32, %c128, %c0_33], %61 {strides = array<i32>} : memref<2x144x1536xbf16, #tpu.memory_space<vmem>>, vector<1x16x384xbf16>,
    %62 = arith.index_cast %9 : i32 to index
    %c1 = arith.constant 1 : index
    %c0_34 = arith.constant 0 : index
    %c0_35 = arith.constant 0 : index
    %63 = vector.load %arg9[%62, %c1, %c0_34, %c0_35] : memref<2x6x16x512xbf16, #tpu.memory_space<vmem>>, vector<1x1x16x512xbf16>
    %64 = vector.shape_cast %63 : vector<1x1x16x512xbf16> to vector<16x512xbf16>
    %65 = vector.extract_strided_slice %64 {offsets = [0, 0], sizes = [16, 384], strides = [1, 1]} : vector<16x512xbf16> to vector<16x384xbf16>
    %c0_36 = arith.constant 0 : index
    %c0_37 = arith.constant 0 : index
    %c384 = arith.constant 384 : index
    %66 = vector.load %arg10[%c0_36, %c0_37, %c384] : memref<2x144x1536xbf16, #tpu.memory_space<vmem>>, vector<1x16x384xbf16>
    %67 = vector.shape_cast %66 : vector<1x16x384xbf16> to vector<16x384xbf16>
    %68 = vector.shape_cast %65 : vector<16x384xbf16> to vector<1x16x384xbf16>
    tpu.vector_store %arg10[%c0_36, %c0_37, %c384], %68 {strides = array<i32>} : memref<2x144x1536xbf16, #tpu.memory_space<vmem>>, vector<1x16x384xbf16>,
    %69 = vector.extract_strided_slice %64 {offsets = [0, 1], sizes = [16, 384], strides = [1, 1]} : vector<16x512xbf16> to vector<16x384xbf16>
    %c0_38 = arith.constant 0 : index
    %c16_39 = arith.constant 16 : index
    %c384_40 = arith.constant 384 : index
    %70 = vector.load %arg10[%c0_38, %c16_39, %c384_40] : memref<2x144x1536xbf16, #tpu.memory_space<vmem>>, vector<1x16x384xbf16>
    %71 = vector.shape_cast %70 : vector<1x16x384xbf16> to vector<16x384xbf16>
    %72 = vector.shape_cast %69 : vector<16x384xbf16> to vector<1x16x384xbf16>
    tpu.vector_store %arg10[%c0_38, %c16_39, %c384_40], %72 {strides = array<i32>} : memref<2x144x1536xbf16, #tpu.memory_space<vmem>>, vector<1x16x384xbf16>,
    %73 = vector.extract_strided_slice %64 {offsets = [0, 2], sizes = [16, 384], strides = [1, 1]} : vector<16x512xbf16> to vector<16x384xbf16>
    %c0_41 = arith.constant 0 : index
    %c32_42 = arith.constant 32 : index
    %c384_43 = arith.constant 384 : index
    %74 = vector.load %arg10[%c0_41, %c32_42, %c384_43] : memref<2x144x1536xbf16, #tpu.memory_space<vmem>>, vector<1x16x384xbf16>
    %75 = vector.shape_cast %74 : vector<1x16x384xbf16> to vector<16x384xbf16>
    %76 = vector.shape_cast %73 : vector<16x384xbf16> to vector<1x16x384xbf16>
    tpu.vector_store %arg10[%c0_41, %c32_42, %c384_43], %76 {strides = array<i32>} : memref<2x144x1536xbf16, #tpu.memory_space<vmem>>, vector<1x16x384xbf16>,
    %77 = vector.extract_strided_slice %64 {offsets = [0, 18], sizes = [16, 384], strides = [1, 1]} : vector<16x512xbf16> to vector<16x384xbf16>
    %c0_44 = arith.constant 0 : index
    %c48_45 = arith.constant 48 : index
    %c384_46 = arith.constant 384 : index
    %78 = vector.load %arg10[%c0_44, %c48_45, %c384_46] : memref<2x144x1536xbf16, #tpu.memory_space<vmem>>, vector<1x16x384xbf16>
    %79 = vector.shape_cast %78 : vector<1x16x384xbf16> to vector<16x384xbf16>
    %80 = vector.shape_cast %77 : vector<16x384xbf16> to vector<1x16x384xbf16>
    tpu.vector_store %arg10[%c0_44, %c48_45, %c384_46], %80 {strides = array<i32>} : memref<2x144x1536xbf16, #tpu.memory_space<vmem>>, vector<1x16x384xbf16>,
    %81 = vector.extract_strided_slice %64 {offsets = [0, 19], sizes = [16, 384], strides = [1, 1]} : vector<16x512xbf16> to vector<16x384xbf16>
    %c0_47 = arith.constant 0 : index
    %c64_48 = arith.constant 64 : index
    %c384_49 = arith.constant 384 : index
    %82 = vector.load %arg10[%c0_47, %c64_48, %c384_49] : memref<2x144x1536xbf16, #tpu.memory_space<vmem>>, vector<1x16x384xbf16>
    %83 = vector.shape_cast %82 : vector<1x16x384xbf16> to vector<16x384xbf16>
    %84 = vector.shape_cast %81 : vector<16x384xbf16> to vector<1x16x384xbf16>
    tpu.vector_store %arg10[%c0_47, %c64_48, %c384_49], %84 {strides = array<i32>} : memref<2x144x1536xbf16, #tpu.memory_space<vmem>>, vector<1x16x384xbf16>,
    %85 = vector.extract_strided_slice %64 {offsets = [0, 20], sizes = [16, 384], strides = [1, 1]} : vector<16x512xbf16> to vector<16x384xbf16>
    %c0_50 = arith.constant 0 : index
    %c80_51 = arith.constant 80 : index
    %c384_52 = arith.constant 384 : index
    %86 = vector.load %arg10[%c0_50, %c80_51, %c384_52] : memref<2x144x1536xbf16, #tpu.memory_space<vmem>>, vector<1x16x384xbf16>
    %87 = vector.shape_cast %86 : vector<1x16x384xbf16> to vector<16x384xbf16>
    %88 = vector.shape_cast %85 : vector<16x384xbf16> to vector<1x16x384xbf16>
    tpu.vector_store %arg10[%c0_50, %c80_51, %c384_52], %88 {strides = array<i32>} : memref<2x144x1536xbf16, #tpu.memory_space<vmem>>, vector<1x16x384xbf16>,
    %89 = vector.extract_strided_slice %64 {offsets = [0, 36], sizes = [16, 384], strides = [1, 1]} : vector<16x512xbf16> to vector<16x384xbf16>
    %c0_53 = arith.constant 0 : index
    %c96_54 = arith.constant 96 : index
    %c384_55 = arith.constant 384 : index
    %90 = vector.load %arg10[%c0_53, %c96_54, %c384_55] : memref<2x144x1536xbf16, #tpu.memory_space<vmem>>, vector<1x16x384xbf16>
    %91 = vector.shape_cast %90 : vector<1x16x384xbf16> to vector<16x384xbf16>
    %92 = vector.shape_cast %89 : vector<16x384xbf16> to vector<1x16x384xbf16>
    tpu.vector_store %arg10[%c0_53, %c96_54, %c384_55], %92 {strides = array<i32>} : memref<2x144x1536xbf16, #tpu.memory_space<vmem>>, vector<1x16x384xbf16>,
    %93 = vector.extract_strided_slice %64 {offsets = [0, 37], sizes = [16, 384], strides = [1, 1]} : vector<16x512xbf16> to vector<16x384xbf16>
    %c0_56 = arith.constant 0 : index
    %c112_57 = arith.constant 112 : index
    %c384_58 = arith.constant 384 : index
    %94 = vector.load %arg10[%c0_56, %c112_57, %c384_58] : memref<2x144x1536xbf16, #tpu.memory_space<vmem>>, vector<1x16x384xbf16>
    %95 = vector.shape_cast %94 : vector<1x16x384xbf16> to vector<16x384xbf16>
    %96 = vector.shape_cast %93 : vector<16x384xbf16> to vector<1x16x384xbf16>
    tpu.vector_store %arg10[%c0_56, %c112_57, %c384_58], %96 {strides = array<i32>} : memref<2x144x1536xbf16, #tpu.memory_space<vmem>>, vector<1x16x384xbf16>,
    %97 = vector.extract_strided_slice %64 {offsets = [0, 38], sizes = [16, 384], strides = [1, 1]} : vector<16x512xbf16> to vector<16x384xbf16>
    %c0_59 = arith.constant 0 : index
    %c128_60 = arith.constant 128 : index
    %c384_61 = arith.constant 384 : index
    %98 = vector.load %arg10[%c0_59, %c128_60, %c384_61] : memref<2x144x1536xbf16, #tpu.memory_space<vmem>>, vector<1x16x384xbf16>
    %99 = vector.shape_cast %98 : vector<1x16x384xbf16> to vector<16x384xbf16>
    %100 = vector.shape_cast %97 : vector<16x384xbf16> to vector<1x16x384xbf16>
    tpu.vector_store %arg10[%c0_59, %c128_60, %c384_61], %100 {strides = array<i32>} : memref<2x144x1536xbf16, #tpu.memory_space<vmem>>, vector<1x16x384xbf16>,
    %101 = arith.index_cast %9 : i32 to index
    %c2 = arith.constant 2 : index
    %c0_62 = arith.constant 0 : index
    %c0_63 = arith.constant 0 : index
    %102 = vector.load %arg9[%101, %c2, %c0_62, %c0_63] : memref<2x6x16x512xbf16, #tpu.memory_space<vmem>>, vector<1x1x16x512xbf16>
    %103 = vector.shape_cast %102 : vector<1x1x16x512xbf16> to vector<16x512xbf16>
    %104 = vector.extract_strided_slice %103 {offsets = [0, 0], sizes = [16, 384], strides = [1, 1]} : vector<16x512xbf16> to vector<16x384xbf16>
    %c0_64 = arith.constant 0 : index
    %c0_65 = arith.constant 0 : index
    %c768 = arith.constant 768 : index
    %105 = vector.load %arg10[%c0_64, %c0_65, %c768] : memref<2x144x1536xbf16, #tpu.memory_space<vmem>>, vector<1x16x384xbf16>
    %106 = vector.shape_cast %105 : vector<1x16x384xbf16> to vector<16x384xbf16>
    %107 = vector.shape_cast %104 : vector<16x384xbf16> to vector<1x16x384xbf16>
    tpu.vector_store %arg10[%c0_64, %c0_65, %c768], %107 {strides = array<i32>} : memref<2x144x1536xbf16, #tpu.memory_space<vmem>>, vector<1x16x384xbf16>,
    %108 = vector.extract_strided_slice %103 {offsets = [0, 1], sizes = [16, 384], strides = [1, 1]} : vector<16x512xbf16> to vector<16x384xbf16>
    %c0_66 = arith.constant 0 : index
    %c16_67 = arith.constant 16 : index
    %c768_68 = arith.constant 768 : index
    %109 = vector.load %arg10[%c0_66, %c16_67, %c768_68] : memref<2x144x1536xbf16, #tpu.memory_space<vmem>>, vector<1x16x384xbf16>
    %110 = vector.shape_cast %109 : vector<1x16x384xbf16> to vector<16x384xbf16>
    %111 = vector.shape_cast %108 : vector<16x384xbf16> to vector<1x16x384xbf16>
    tpu.vector_store %arg10[%c0_66, %c16_67, %c768_68], %111 {strides = array<i32>} : memref<2x144x1536xbf16, #tpu.memory_space<vmem>>, vector<1x16x384xbf16>,
    %112 = vector.extract_strided_slice %103 {offsets = [0, 2], sizes = [16, 384], strides = [1, 1]} : vector<16x512xbf16> to vector<16x384xbf16>
    %c0_69 = arith.constant 0 : index
    %c32_70 = arith.constant 32 : index
    %c768_71 = arith.constant 768 : index
    %113 = vector.load %arg10[%c0_69, %c32_70, %c768_71] : memref<2x144x1536xbf16, #tpu.memory_space<vmem>>, vector<1x16x384xbf16>
    %114 = vector.shape_cast %113 : vector<1x16x384xbf16> to vector<16x384xbf16>
    %115 = vector.shape_cast %112 : vector<16x384xbf16> to vector<1x16x384xbf16>
    tpu.vector_store %arg10[%c0_69, %c32_70, %c768_71], %115 {strides = array<i32>} : memref<2x144x1536xbf16, #tpu.memory_space<vmem>>, vector<1x16x384xbf16>,
    %116 = vector.extract_strided_slice %103 {offsets = [0, 18], sizes = [16, 384], strides = [1, 1]} : vector<16x512xbf16> to vector<16x384xbf16>
    %c0_72 = arith.constant 0 : index
    %c48_73 = arith.constant 48 : index
    %c768_74 = arith.constant 768 : index
    %117 = vector.load %arg10[%c0_72, %c48_73, %c768_74] : memref<2x144x1536xbf16, #tpu.memory_space<vmem>>, vector<1x16x384xbf16>
    %118 = vector.shape_cast %117 : vector<1x16x384xbf16> to vector<16x384xbf16>
    %119 = vector.shape_cast %116 : vector<16x384xbf16> to vector<1x16x384xbf16>
    tpu.vector_store %arg10[%c0_72, %c48_73, %c768_74], %119 {strides = array<i32>} : memref<2x144x1536xbf16, #tpu.memory_space<vmem>>, vector<1x16x384xbf16>,
    %120 = vector.extract_strided_slice %103 {offsets = [0, 19], sizes = [16, 384], strides = [1, 1]} : vector<16x512xbf16> to vector<16x384xbf16>
    %c0_75 = arith.constant 0 : index
    %c64_76 = arith.constant 64 : index
    %c768_77 = arith.constant 768 : index
    %121 = vector.load %arg10[%c0_75, %c64_76, %c768_77] : memref<2x144x1536xbf16, #tpu.memory_space<vmem>>, vector<1x16x384xbf16>
    %122 = vector.shape_cast %121 : vector<1x16x384xbf16> to vector<16x384xbf16>
    %123 = vector.shape_cast %120 : vector<16x384xbf16> to vector<1x16x384xbf16>
    tpu.vector_store %arg10[%c0_75, %c64_76, %c768_77], %123 {strides = array<i32>} : memref<2x144x1536xbf16, #tpu.memory_space<vmem>>, vector<1x16x384xbf16>,
    %124 = vector.extract_strided_slice %103 {offsets = [0, 20], sizes = [16, 384], strides = [1, 1]} : vector<16x512xbf16> to vector<16x384xbf16>
    %c0_78 = arith.constant 0 : index
    %c80_79 = arith.constant 80 : index
    %c768_80 = arith.constant 768 : index
    %125 = vector.load %arg10[%c0_78, %c80_79, %c768_80] : memref<2x144x1536xbf16, #tpu.memory_space<vmem>>, vector<1x16x384xbf16>
    %126 = vector.shape_cast %125 : vector<1x16x384xbf16> to vector<16x384xbf16>
    %127 = vector.shape_cast %124 : vector<16x384xbf16> to vector<1x16x384xbf16>
    tpu.vector_store %arg10[%c0_78, %c80_79, %c768_80], %127 {strides = array<i32>} : memref<2x144x1536xbf16, #tpu.memory_space<vmem>>, vector<1x16x384xbf16>,
    %128 = vector.extract_strided_slice %103 {offsets = [0, 36], sizes = [16, 384], strides = [1, 1]} : vector<16x512xbf16> to vector<16x384xbf16>
    %c0_81 = arith.constant 0 : index
    %c96_82 = arith.constant 96 : index
    %c768_83 = arith.constant 768 : index
    %129 = vector.load %arg10[%c0_81, %c96_82, %c768_83] : memref<2x144x1536xbf16, #tpu.memory_space<vmem>>, vector<1x16x384xbf16>
    %130 = vector.shape_cast %129 : vector<1x16x384xbf16> to vector<16x384xbf16>
    %131 = vector.shape_cast %128 : vector<16x384xbf16> to vector<1x16x384xbf16>
    tpu.vector_store %arg10[%c0_81, %c96_82, %c768_83], %131 {strides = array<i32>} : memref<2x144x1536xbf16, #tpu.memory_space<vmem>>, vector<1x16x384xbf16>,
    %132 = vector.extract_strided_slice %103 {offsets = [0, 37], sizes = [16, 384], strides = [1, 1]} : vector<16x512xbf16> to vector<16x384xbf16>
    %c0_84 = arith.constant 0 : index
    %c112_85 = arith.constant 112 : index
    %c768_86 = arith.constant 768 : index
    %133 = vector.load %arg10[%c0_84, %c112_85, %c768_86] : memref<2x144x1536xbf16, #tpu.memory_space<vmem>>, vector<1x16x384xbf16>
    %134 = vector.shape_cast %133 : vector<1x16x384xbf16> to vector<16x384xbf16>
    %135 = vector.shape_cast %132 : vector<16x384xbf16> to vector<1x16x384xbf16>
    tpu.vector_store %arg10[%c0_84, %c112_85, %c768_86], %135 {strides = array<i32>} : memref<2x144x1536xbf16, #tpu.memory_space<vmem>>, vector<1x16x384xbf16>,
    %136 = vector.extract_strided_slice %103 {offsets = [0, 38], sizes = [16, 384], strides = [1, 1]} : vector<16x512xbf16> to vector<16x384xbf16>
    %c0_87 = arith.constant 0 : index
    %c128_88 = arith.constant 128 : index
    %c768_89 = arith.constant 768 : index
    %137 = vector.load %arg10[%c0_87, %c128_88, %c768_89] : memref<2x144x1536xbf16, #tpu.memory_space<vmem>>, vector<1x16x384xbf16>
    %138 = vector.shape_cast %137 : vector<1x16x384xbf16> to vector<16x384xbf16>
    %139 = vector.shape_cast %136 : vector<16x384xbf16> to vector<1x16x384xbf16>
    tpu.vector_store %arg10[%c0_87, %c128_88, %c768_89], %139 {strides = array<i32>} : memref<2x144x1536xbf16, #tpu.memory_space<vmem>>, vector<1x16x384xbf16>,
    %140 = arith.index_cast %9 : i32 to index
    %c3 = arith.constant 3 : index
    %c0_90 = arith.constant 0 : index
    %c0_91 = arith.constant 0 : index
    %141 = vector.load %arg9[%140, %c3, %c0_90, %c0_91] : memref<2x6x16x512xbf16, #tpu.memory_space<vmem>>, vector<1x1x16x512xbf16>
    %142 = vector.shape_cast %141 : vector<1x1x16x512xbf16> to vector<16x512xbf16>
    %143 = vector.extract_strided_slice %142 {offsets = [0, 0], sizes = [16, 384], strides = [1, 1]} : vector<16x512xbf16> to vector<16x384xbf16>
    %c0_92 = arith.constant 0 : index
    %c0_93 = arith.constant 0 : index
    %c1152 = arith.constant 1152 : index
    %144 = vector.load %arg10[%c0_92, %c0_93, %c1152] : memref<2x144x1536xbf16, #tpu.memory_space<vmem>>, vector<1x16x384xbf16>
    %145 = vector.shape_cast %144 : vector<1x16x384xbf16> to vector<16x384xbf16>
    %146 = vector.shape_cast %143 : vector<16x384xbf16> to vector<1x16x384xbf16>
    tpu.vector_store %arg10[%c0_92, %c0_93, %c1152], %146 {strides = array<i32>} : memref<2x144x1536xbf16, #tpu.memory_space<vmem>>, vector<1x16x384xbf16>,
    %147 = vector.extract_strided_slice %142 {offsets = [0, 1], sizes = [16, 384], strides = [1, 1]} : vector<16x512xbf16> to vector<16x384xbf16>
    %c0_94 = arith.constant 0 : index
    %c16_95 = arith.constant 16 : index
    %c1152_96 = arith.constant 1152 : index
    %148 = vector.load %arg10[%c0_94, %c16_95, %c1152_96] : memref<2x144x1536xbf16, #tpu.memory_space<vmem>>, vector<1x16x384xbf16>
    %149 = vector.shape_cast %148 : vector<1x16x384xbf16> to vector<16x384xbf16>
    %150 = vector.shape_cast %147 : vector<16x384xbf16> to vector<1x16x384xbf16>
    tpu.vector_store %arg10[%c0_94, %c16_95, %c1152_96], %150 {strides = array<i32>} : memref<2x144x1536xbf16, #tpu.memory_space<vmem>>, vector<1x16x384xbf16>,
    %151 = vector.extract_strided_slice %142 {offsets = [0, 2], sizes = [16, 384], strides = [1, 1]} : vector<16x512xbf16> to vector<16x384xbf16>
    %c0_97 = arith.constant 0 : index
    %c32_98 = arith.constant 32 : index
    %c1152_99 = arith.constant 1152 : index
    %152 = vector.load %arg10[%c0_97, %c32_98, %c1152_99] : memref<2x144x1536xbf16, #tpu.memory_space<vmem>>, vector<1x16x384xbf16>
    %153 = vector.shape_cast %152 : vector<1x16x384xbf16> to vector<16x384xbf16>
    %154 = vector.shape_cast %151 : vector<16x384xbf16> to vector<1x16x384xbf16>
    tpu.vector_store %arg10[%c0_97, %c32_98, %c1152_99], %154 {strides = array<i32>} : memref<2x144x1536xbf16, #tpu.memory_space<vmem>>, vector<1x16x384xbf16>,
    %155 = vector.extract_strided_slice %142 {offsets = [0, 18], sizes = [16, 384], strides = [1, 1]} : vector<16x512xbf16> to vector<16x384xbf16>
    %c0_100 = arith.constant 0 : index
    %c48_101 = arith.constant 48 : index
    %c1152_102 = arith.constant 1152 : index
    %156 = vector.load %arg10[%c0_100, %c48_101, %c1152_102] : memref<2x144x1536xbf16, #tpu.memory_space<vmem>>, vector<1x16x384xbf16>
    %157 = vector.shape_cast %156 : vector<1x16x384xbf16> to vector<16x384xbf16>
    %158 = vector.shape_cast %155 : vector<16x384xbf16> to vector<1x16x384xbf16>
    tpu.vector_store %arg10[%c0_100, %c48_101, %c1152_102], %158 {strides = array<i32>} : memref<2x144x1536xbf16, #tpu.memory_space<vmem>>, vector<1x16x384xbf16>,
    %159 = vector.extract_strided_slice %142 {offsets = [0, 19], sizes = [16, 384], strides = [1, 1]} : vector<16x512xbf16> to vector<16x384xbf16>
    %c0_103 = arith.constant 0 : index
    %c64_104 = arith.constant 64 : index
    %c1152_105 = arith.constant 1152 : index
    %160 = vector.load %arg10[%c0_103, %c64_104, %c1152_105] : memref<2x144x1536xbf16, #tpu.memory_space<vmem>>, vector<1x16x384xbf16>
    %161 = vector.shape_cast %160 : vector<1x16x384xbf16> to vector<16x384xbf16>
    %162 = vector.shape_cast %159 : vector<16x384xbf16> to vector<1x16x384xbf16>
    tpu.vector_store %arg10[%c0_103, %c64_104, %c1152_105], %162 {strides = array<i32>} : memref<2x144x1536xbf16, #tpu.memory_space<vmem>>, vector<1x16x384xbf16>,
    %163 = vector.extract_strided_slice %142 {offsets = [0, 20], sizes = [16, 384], strides = [1, 1]} : vector<16x512xbf16> to vector<16x384xbf16>
    %c0_106 = arith.constant 0 : index
    %c80_107 = arith.constant 80 : index
    %c1152_108 = arith.constant 1152 : index
    %164 = vector.load %arg10[%c0_106, %c80_107, %c1152_108] : memref<2x144x1536xbf16, #tpu.memory_space<vmem>>, vector<1x16x384xbf16>
    %165 = vector.shape_cast %164 : vector<1x16x384xbf16> to vector<16x384xbf16>
    %166 = vector.shape_cast %163 : vector<16x384xbf16> to vector<1x16x384xbf16>
    tpu.vector_store %arg10[%c0_106, %c80_107, %c1152_108], %166 {strides = array<i32>} : memref<2x144x1536xbf16, #tpu.memory_space<vmem>>, vector<1x16x384xbf16>,
    %167 = vector.extract_strided_slice %142 {offsets = [0, 36], sizes = [16, 384], strides = [1, 1]} : vector<16x512xbf16> to vector<16x384xbf16>
    %c0_109 = arith.constant 0 : index
    %c96_110 = arith.constant 96 : index
    %c1152_111 = arith.constant 1152 : index
    %168 = vector.load %arg10[%c0_109, %c96_110, %c1152_111] : memref<2x144x1536xbf16, #tpu.memory_space<vmem>>, vector<1x16x384xbf16>
    %169 = vector.shape_cast %168 : vector<1x16x384xbf16> to vector<16x384xbf16>
    %170 = vector.shape_cast %167 : vector<16x384xbf16> to vector<1x16x384xbf16>
    tpu.vector_store %arg10[%c0_109, %c96_110, %c1152_111], %170 {strides = array<i32>} : memref<2x144x1536xbf16, #tpu.memory_space<vmem>>, vector<1x16x384xbf16>,
    %171 = vector.extract_strided_slice %142 {offsets = [0, 37], sizes = [16, 384], strides = [1, 1]} : vector<16x512xbf16> to vector<16x384xbf16>
    %c0_112 = arith.constant 0 : index
    %c112_113 = arith.constant 112 : index
    %c1152_114 = arith.constant 1152 : index
    %172 = vector.load %arg10[%c0_112, %c112_113, %c1152_114] : memref<2x144x1536xbf16, #tpu.memory_space<vmem>>, vector<1x16x384xbf16>
    %173 = vector.shape_cast %172 : vector<1x16x384xbf16> to vector<16x384xbf16>
    %174 = vector.shape_cast %171 : vector<16x384xbf16> to vector<1x16x384xbf16>
    tpu.vector_store %arg10[%c0_112, %c112_113, %c1152_114], %174 {strides = array<i32>} : memref<2x144x1536xbf16, #tpu.memory_space<vmem>>, vector<1x16x384xbf16>,
    %175 = vector.extract_strided_slice %142 {offsets = [0, 38], sizes = [16, 384], strides = [1, 1]} : vector<16x512xbf16> to vector<16x384xbf16>
    %c0_115 = arith.constant 0 : index
    %c128_116 = arith.constant 128 : index
    %c1152_117 = arith.constant 1152 : index
    %176 = vector.load %arg10[%c0_115, %c128_116, %c1152_117] : memref<2x144x1536xbf16, #tpu.memory_space<vmem>>, vector<1x16x384xbf16>
    %177 = vector.shape_cast %176 : vector<1x16x384xbf16> to vector<16x384xbf16>
    %178 = vector.shape_cast %175 : vector<16x384xbf16> to vector<1x16x384xbf16>
    tpu.vector_store %arg10[%c0_115, %c128_116, %c1152_117], %178 {strides = array<i32>} : memref<2x144x1536xbf16, #tpu.memory_space<vmem>>, vector<1x16x384xbf16>,
    %c0_118 = arith.constant 0 : index
    %c0_119 = arith.constant 0 : index
    %c0_120 = arith.constant 0 : index
    %179 = vector.load %arg3[%c0_118, %c0_119, %c0_120] : memref<3x16x144xbf16, #tpu.memory_space<vmem>>, vector<1x16x144xbf16>
    %180 = vector.shape_cast %179 : vector<1x16x144xbf16> to vector<16x144xbf16>
    %c0_121 = arith.constant 0 : index
    %c0_122 = arith.constant 0 : index
    %c0_123 = arith.constant 0 : index
    %181 = vector.load %arg10[%c0_121, %c0_122, %c0_123] : memref<2x144x1536xbf16, #tpu.memory_space<vmem>>, vector<1x144x1536xbf16>
    %182 = vector.shape_cast %181 : vector<1x144x1536xbf16> to vector<144x1536xbf16>
    %cst = arith.constant dense<0.000000e+00> : vector<16x1536xf32>
    %183 = tpu.matmul %180, %182, %cst {dimension_numbers = #tpu.dot_dimension_numbers<[1], [0], [0], [1], [0, 0, 1, 1], [], []>} : vector<16x144xbf16>, vector<144x1536xbf16>, vector<16x1536xf32> -> vector<16x1536xf32>
    %c0_124 = arith.constant 0 : index
    %c0_125 = arith.constant 0 : index
    %184 = vector.load %arg4[%c0_124, %c0_125] : memref<16x1xf32, #tpu.memory_space<vmem>>, vector<16x1xf32>
    %185 = vector.broadcast %184 : vector<16x1xf32> to vector<16x1536xf32>
    %186 = arith.addf %183, %185 : vector<16x1536xf32>
    %c0_126 = arith.constant 0 : index
    %c0_127 = arith.constant 0 : index
    %187 = vector.load %arg11[%c0_126, %c0_127] : memref<16x1536xf32, #tpu.memory_space<vmem>>, vector<16x1536xf32>
    tpu.vector_store %arg11[%c0_126, %c0_127], %186 {strides = array<i32>} : memref<16x1536xf32, #tpu.memory_space<vmem>>, vector<16x1536xf32>,
    %188 = arith.index_cast %9 : i32 to index
    %c1_128 = arith.constant 1 : index
    %c0_129 = arith.constant 0 : index
    %c0_130 = arith.constant 0 : index
    %189 = vector.load %arg9[%188, %c1_128, %c0_129, %c0_130] : memref<2x6x16x512xbf16, #tpu.memory_space<vmem>>, vector<1x1x16x512xbf16>
    %190 = vector.shape_cast %189 : vector<1x1x16x512xbf16> to vector<16x512xbf16>
    %191 = vector.extract_strided_slice %190 {offsets = [0, 0], sizes = [16, 384], strides = [1, 1]} : vector<16x512xbf16> to vector<16x384xbf16>
    %c1_131 = arith.constant 1 : index
    %c0_132 = arith.constant 0 : index
    %c0_133 = arith.constant 0 : index
    %192 = vector.load %arg10[%c1_131, %c0_132, %c0_133] : memref<2x144x1536xbf16, #tpu.memory_space<vmem>>, vector<1x16x384xbf16>
    %193 = vector.shape_cast %192 : vector<1x16x384xbf16> to vector<16x384xbf16>
    %194 = vector.shape_cast %191 : vector<16x384xbf16> to vector<1x16x384xbf16>
    tpu.vector_store %arg10[%c1_131, %c0_132, %c0_133], %194 {strides = array<i32>} : memref<2x144x1536xbf16, #tpu.memory_space<vmem>>, vector<1x16x384xbf16>,
    %195 = vector.extract_strided_slice %190 {offsets = [0, 1], sizes = [16, 384], strides = [1, 1]} : vector<16x512xbf16> to vector<16x384xbf16>
    %c1_134 = arith.constant 1 : index
    %c16_135 = arith.constant 16 : index
    %c0_136 = arith.constant 0 : index
    %196 = vector.load %arg10[%c1_134, %c16_135, %c0_136] : memref<2x144x1536xbf16, #tpu.memory_space<vmem>>, vector<1x16x384xbf16>
    %197 = vector.shape_cast %196 : vector<1x16x384xbf16> to vector<16x384xbf16>
    %198 = vector.shape_cast %195 : vector<16x384xbf16> to vector<1x16x384xbf16>
    tpu.vector_store %arg10[%c1_134, %c16_135, %c0_136], %198 {strides = array<i32>} : memref<2x144x1536xbf16, #tpu.memory_space<vmem>>, vector<1x16x384xbf16>,
    %199 = vector.extract_strided_slice %190 {offsets = [0, 2], sizes = [16, 384], strides = [1, 1]} : vector<16x512xbf16> to vector<16x384xbf16>
    %c1_137 = arith.constant 1 : index
    %c32_138 = arith.constant 32 : index
    %c0_139 = arith.constant 0 : index
    %200 = vector.load %arg10[%c1_137, %c32_138, %c0_139] : memref<2x144x1536xbf16, #tpu.memory_space<vmem>>, vector<1x16x384xbf16>
    %201 = vector.shape_cast %200 : vector<1x16x384xbf16> to vector<16x384xbf16>
    %202 = vector.shape_cast %199 : vector<16x384xbf16> to vector<1x16x384xbf16>
    tpu.vector_store %arg10[%c1_137, %c32_138, %c0_139], %202 {strides = array<i32>} : memref<2x144x1536xbf16, #tpu.memory_space<vmem>>, vector<1x16x384xbf16>,
    %203 = vector.extract_strided_slice %190 {offsets = [0, 18], sizes = [16, 384], strides = [1, 1]} : vector<16x512xbf16> to vector<16x384xbf16>
    %c1_140 = arith.constant 1 : index
    %c48_141 = arith.constant 48 : index
    %c0_142 = arith.constant 0 : index
    %204 = vector.load %arg10[%c1_140, %c48_141, %c0_142] : memref<2x144x1536xbf16, #tpu.memory_space<vmem>>, vector<1x16x384xbf16>
    %205 = vector.shape_cast %204 : vector<1x16x384xbf16> to vector<16x384xbf16>
    %206 = vector.shape_cast %203 : vector<16x384xbf16> to vector<1x16x384xbf16>
    tpu.vector_store %arg10[%c1_140, %c48_141, %c0_142], %206 {strides = array<i32>} : memref<2x144x1536xbf16, #tpu.memory_space<vmem>>, vector<1x16x384xbf16>,
    %207 = vector.extract_strided_slice %190 {offsets = [0, 19], sizes = [16, 384], strides = [1, 1]} : vector<16x512xbf16> to vector<16x384xbf16>
    %c1_143 = arith.constant 1 : index
    %c64_144 = arith.constant 64 : index
    %c0_145 = arith.constant 0 : index
    %208 = vector.load %arg10[%c1_143, %c64_144, %c0_145] : memref<2x144x1536xbf16, #tpu.memory_space<vmem>>, vector<1x16x384xbf16>
    %209 = vector.shape_cast %208 : vector<1x16x384xbf16> to vector<16x384xbf16>
    %210 = vector.shape_cast %207 : vector<16x384xbf16> to vector<1x16x384xbf16>
    tpu.vector_store %arg10[%c1_143, %c64_144, %c0_145], %210 {strides = array<i32>} : memref<2x144x1536xbf16, #tpu.memory_space<vmem>>, vector<1x16x384xbf16>,
    %211 = vector.extract_strided_slice %190 {offsets = [0, 20], sizes = [16, 384], strides = [1, 1]} : vector<16x512xbf16> to vector<16x384xbf16>
    %c1_146 = arith.constant 1 : index
    %c80_147 = arith.constant 80 : index
    %c0_148 = arith.constant 0 : index
    %212 = vector.load %arg10[%c1_146, %c80_147, %c0_148] : memref<2x144x1536xbf16, #tpu.memory_space<vmem>>, vector<1x16x384xbf16>
    %213 = vector.shape_cast %212 : vector<1x16x384xbf16> to vector<16x384xbf16>
    %214 = vector.shape_cast %211 : vector<16x384xbf16> to vector<1x16x384xbf16>
    tpu.vector_store %arg10[%c1_146, %c80_147, %c0_148], %214 {strides = array<i32>} : memref<2x144x1536xbf16, #tpu.memory_space<vmem>>, vector<1x16x384xbf16>,
    %215 = vector.extract_strided_slice %190 {offsets = [0, 36], sizes = [16, 384], strides = [1, 1]} : vector<16x512xbf16> to vector<16x384xbf16>
    %c1_149 = arith.constant 1 : index
    %c96_150 = arith.constant 96 : index
    %c0_151 = arith.constant 0 : index
    %216 = vector.load %arg10[%c1_149, %c96_150, %c0_151] : memref<2x144x1536xbf16, #tpu.memory_space<vmem>>, vector<1x16x384xbf16>
    %217 = vector.shape_cast %216 : vector<1x16x384xbf16> to vector<16x384xbf16>
    %218 = vector.shape_cast %215 : vector<16x384xbf16> to vector<1x16x384xbf16>
    tpu.vector_store %arg10[%c1_149, %c96_150, %c0_151], %218 {strides = array<i32>} : memref<2x144x1536xbf16, #tpu.memory_space<vmem>>, vector<1x16x384xbf16>,
    %219 = vector.extract_strided_slice %190 {offsets = [0, 37], sizes = [16, 384], strides = [1, 1]} : vector<16x512xbf16> to vector<16x384xbf16>
    %c1_152 = arith.constant 1 : index
    %c112_153 = arith.constant 112 : index
    %c0_154 = arith.constant 0 : index
    %220 = vector.load %arg10[%c1_152, %c112_153, %c0_154] : memref<2x144x1536xbf16, #tpu.memory_space<vmem>>, vector<1x16x384xbf16>
    %221 = vector.shape_cast %220 : vector<1x16x384xbf16> to vector<16x384xbf16>
    %222 = vector.shape_cast %219 : vector<16x384xbf16> to vector<1x16x384xbf16>
    tpu.vector_store %arg10[%c1_152, %c112_153, %c0_154], %222 {strides = array<i32>} : memref<2x144x1536xbf16, #tpu.memory_space<vmem>>, vector<1x16x384xbf16>,
    %223 = vector.extract_strided_slice %190 {offsets = [0, 38], sizes = [16, 384], strides = [1, 1]} : vector<16x512xbf16> to vector<16x384xbf16>
    %c1_155 = arith.constant 1 : index
    %c128_156 = arith.constant 128 : index
    %c0_157 = arith.constant 0 : index
    %224 = vector.load %arg10[%c1_155, %c128_156, %c0_157] : memref<2x144x1536xbf16, #tpu.memory_space<vmem>>, vector<1x16x384xbf16>
    %225 = vector.shape_cast %224 : vector<1x16x384xbf16> to vector<16x384xbf16>
    %226 = vector.shape_cast %223 : vector<16x384xbf16> to vector<1x16x384xbf16>
    tpu.vector_store %arg10[%c1_155, %c128_156, %c0_157], %226 {strides = array<i32>} : memref<2x144x1536xbf16, #tpu.memory_space<vmem>>, vector<1x16x384xbf16>,
    %227 = arith.index_cast %9 : i32 to index
    %c2_158 = arith.constant 2 : index
    %c0_159 = arith.constant 0 : index
    %c0_160 = arith.constant 0 : index
    %228 = vector.load %arg9[%227, %c2_158, %c0_159, %c0_160] : memref<2x6x16x512xbf16, #tpu.memory_space<vmem>>, vector<1x1x16x512xbf16>
    %229 = vector.shape_cast %228 : vector<1x1x16x512xbf16> to vector<16x512xbf16>
    %230 = vector.extract_strided_slice %229 {offsets = [0, 0], sizes = [16, 384], strides = [1, 1]} : vector<16x512xbf16> to vector<16x384xbf16>
    %c1_161 = arith.constant 1 : index
    %c0_162 = arith.constant 0 : index
    %c384_163 = arith.constant 384 : index
    %231 = vector.load %arg10[%c1_161, %c0_162, %c384_163] : memref<2x144x1536xbf16, #tpu.memory_space<vmem>>, vector<1x16x384xbf16>
    %232 = vector.shape_cast %231 : vector<1x16x384xbf16> to vector<16x384xbf16>
    %233 = vector.shape_cast %230 : vector<16x384xbf16> to vector<1x16x384xbf16>
    tpu.vector_store %arg10[%c1_161, %c0_162, %c384_163], %233 {strides = array<i32>} : memref<2x144x1536xbf16, #tpu.memory_space<vmem>>, vector<1x16x384xbf16>,
    %234 = vector.extract_strided_slice %229 {offsets = [0, 1], sizes = [16, 384], strides = [1, 1]} : vector<16x512xbf16> to vector<16x384xbf16>
    %c1_164 = arith.constant 1 : index
    %c16_165 = arith.constant 16 : index
    %c384_166 = arith.constant 384 : index
    %235 = vector.load %arg10[%c1_164, %c16_165, %c384_166] : memref<2x144x1536xbf16, #tpu.memory_space<vmem>>, vector<1x16x384xbf16>
    %236 = vector.shape_cast %235 : vector<1x16x384xbf16> to vector<16x384xbf16>
    %237 = vector.shape_cast %234 : vector<16x384xbf16> to vector<1x16x384xbf16>
    tpu.vector_store %arg10[%c1_164, %c16_165, %c384_166], %237 {strides = array<i32>} : memref<2x144x1536xbf16, #tpu.memory_space<vmem>>, vector<1x16x384xbf16>,
    %238 = vector.extract_strided_slice %229 {offsets = [0, 2], sizes = [16, 384], strides = [1, 1]} : vector<16x512xbf16> to vector<16x384xbf16>
    %c1_167 = arith.constant 1 : index
    %c32_168 = arith.constant 32 : index
    %c384_169 = arith.constant 384 : index
    %239 = vector.load %arg10[%c1_167, %c32_168, %c384_169] : memref<2x144x1536xbf16, #tpu.memory_space<vmem>>, vector<1x16x384xbf16>
    %240 = vector.shape_cast %239 : vector<1x16x384xbf16> to vector<16x384xbf16>
    %241 = vector.shape_cast %238 : vector<16x384xbf16> to vector<1x16x384xbf16>
    tpu.vector_store %arg10[%c1_167, %c32_168, %c384_169], %241 {strides = array<i32>} : memref<2x144x1536xbf16, #tpu.memory_space<vmem>>, vector<1x16x384xbf16>,
    %242 = vector.extract_strided_slice %229 {offsets = [0, 18], sizes = [16, 384], strides = [1, 1]} : vector<16x512xbf16> to vector<16x384xbf16>
    %c1_170 = arith.constant 1 : index
    %c48_171 = arith.constant 48 : index
    %c384_172 = arith.constant 384 : index
    %243 = vector.load %arg10[%c1_170, %c48_171, %c384_172] : memref<2x144x1536xbf16, #tpu.memory_space<vmem>>, vector<1x16x384xbf16>
    %244 = vector.shape_cast %243 : vector<1x16x384xbf16> to vector<16x384xbf16>
    %245 = vector.shape_cast %242 : vector<16x384xbf16> to vector<1x16x384xbf16>
    tpu.vector_store %arg10[%c1_170, %c48_171, %c384_172], %245 {strides = array<i32>} : memref<2x144x1536xbf16, #tpu.memory_space<vmem>>, vector<1x16x384xbf16>,
    %246 = vector.extract_strided_slice %229 {offsets = [0, 19], sizes = [16, 384], strides = [1, 1]} : vector<16x512xbf16> to vector<16x384xbf16>
    %c1_173 = arith.constant 1 : index
    %c64_174 = arith.constant 64 : index
    %c384_175 = arith.constant 384 : index
    %247 = vector.load %arg10[%c1_173, %c64_174, %c384_175] : memref<2x144x1536xbf16, #tpu.memory_space<vmem>>, vector<1x16x384xbf16>
    %248 = vector.shape_cast %247 : vector<1x16x384xbf16> to vector<16x384xbf16>
    %249 = vector.shape_cast %246 : vector<16x384xbf16> to vector<1x16x384xbf16>
    tpu.vector_store %arg10[%c1_173, %c64_174, %c384_175], %249 {strides = array<i32>} : memref<2x144x1536xbf16, #tpu.memory_space<vmem>>, vector<1x16x384xbf16>,
    %250 = vector.extract_strided_slice %229 {offsets = [0, 20], sizes = [16, 384], strides = [1, 1]} : vector<16x512xbf16> to vector<16x384xbf16>
    %c1_176 = arith.constant 1 : index
    %c80_177 = arith.constant 80 : index
    %c384_178 = arith.constant 384 : index
    %251 = vector.load %arg10[%c1_176, %c80_177, %c384_178] : memref<2x144x1536xbf16, #tpu.memory_space<vmem>>, vector<1x16x384xbf16>
    %252 = vector.shape_cast %251 : vector<1x16x384xbf16> to vector<16x384xbf16>
    %253 = vector.shape_cast %250 : vector<16x384xbf16> to vector<1x16x384xbf16>
    tpu.vector_store %arg10[%c1_176, %c80_177, %c384_178], %253 {strides = array<i32>} : memref<2x144x1536xbf16, #tpu.memory_space<vmem>>, vector<1x16x384xbf16>,
    %254 = vector.extract_strided_slice %229 {offsets = [0, 36], sizes = [16, 384], strides = [1, 1]} : vector<16x512xbf16> to vector<16x384xbf16>
    %c1_179 = arith.constant 1 : index
    %c96_180 = arith.constant 96 : index
    %c384_181 = arith.constant 384 : index
    %255 = vector.load %arg10[%c1_179, %c96_180, %c384_181] : memref<2x144x1536xbf16, #tpu.memory_space<vmem>>, vector<1x16x384xbf16>
    %256 = vector.shape_cast %255 : vector<1x16x384xbf16> to vector<16x384xbf16>
    %257 = vector.shape_cast %254 : vector<16x384xbf16> to vector<1x16x384xbf16>
    tpu.vector_store %arg10[%c1_179, %c96_180, %c384_181], %257 {strides = array<i32>} : memref<2x144x1536xbf16, #tpu.memory_space<vmem>>, vector<1x16x384xbf16>,
    %258 = vector.extract_strided_slice %229 {offsets = [0, 37], sizes = [16, 384], strides = [1, 1]} : vector<16x512xbf16> to vector<16x384xbf16>
    %c1_182 = arith.constant 1 : index
    %c112_183 = arith.constant 112 : index
    %c384_184 = arith.constant 384 : index
    %259 = vector.load %arg10[%c1_182, %c112_183, %c384_184] : memref<2x144x1536xbf16, #tpu.memory_space<vmem>>, vector<1x16x384xbf16>
    %260 = vector.shape_cast %259 : vector<1x16x384xbf16> to vector<16x384xbf16>
    %261 = vector.shape_cast %258 : vector<16x384xbf16> to vector<1x16x384xbf16>
    tpu.vector_store %arg10[%c1_182, %c112_183, %c384_184], %261 {strides = array<i32>} : memref<2x144x1536xbf16, #tpu.memory_space<vmem>>, vector<1x16x384xbf16>,
    %262 = vector.extract_strided_slice %229 {offsets = [0, 38], sizes = [16, 384], strides = [1, 1]} : vector<16x512xbf16> to vector<16x384xbf16>
    %c1_185 = arith.constant 1 : index
    %c128_186 = arith.constant 128 : index
    %c384_187 = arith.constant 384 : index
    %263 = vector.load %arg10[%c1_185, %c128_186, %c384_187] : memref<2x144x1536xbf16, #tpu.memory_space<vmem>>, vector<1x16x384xbf16>
    %264 = vector.shape_cast %263 : vector<1x16x384xbf16> to vector<16x384xbf16>
    %265 = vector.shape_cast %262 : vector<16x384xbf16> to vector<1x16x384xbf16>
    tpu.vector_store %arg10[%c1_185, %c128_186, %c384_187], %265 {strides = array<i32>} : memref<2x144x1536xbf16, #tpu.memory_space<vmem>>, vector<1x16x384xbf16>,
    %266 = arith.index_cast %9 : i32 to index
    %c3_188 = arith.constant 3 : index
    %c0_189 = arith.constant 0 : index
    %c0_190 = arith.constant 0 : index
    %267 = vector.load %arg9[%266, %c3_188, %c0_189, %c0_190] : memref<2x6x16x512xbf16, #tpu.memory_space<vmem>>, vector<1x1x16x512xbf16>
    %268 = vector.shape_cast %267 : vector<1x1x16x512xbf16> to vector<16x512xbf16>
    %269 = vector.extract_strided_slice %268 {offsets = [0, 0], sizes = [16, 384], strides = [1, 1]} : vector<16x512xbf16> to vector<16x384xbf16>
    %c1_191 = arith.constant 1 : index
    %c0_192 = arith.constant 0 : index
    %c768_193 = arith.constant 768 : index
    %270 = vector.load %arg10[%c1_191, %c0_192, %c768_193] : memref<2x144x1536xbf16, #tpu.memory_space<vmem>>, vector<1x16x384xbf16>
    %271 = vector.shape_cast %270 : vector<1x16x384xbf16> to vector<16x384xbf16>
    %272 = vector.shape_cast %269 : vector<16x384xbf16> to vector<1x16x384xbf16>
    tpu.vector_store %arg10[%c1_191, %c0_192, %c768_193], %272 {strides = array<i32>} : memref<2x144x1536xbf16, #tpu.memory_space<vmem>>, vector<1x16x384xbf16>,
    %273 = vector.extract_strided_slice %268 {offsets = [0, 1], sizes = [16, 384], strides = [1, 1]} : vector<16x512xbf16> to vector<16x384xbf16>
    %c1_194 = arith.constant 1 : index
    %c16_195 = arith.constant 16 : index
    %c768_196 = arith.constant 768 : index
    %274 = vector.load %arg10[%c1_194, %c16_195, %c768_196] : memref<2x144x1536xbf16, #tpu.memory_space<vmem>>, vector<1x16x384xbf16>
    %275 = vector.shape_cast %274 : vector<1x16x384xbf16> to vector<16x384xbf16>
    %276 = vector.shape_cast %273 : vector<16x384xbf16> to vector<1x16x384xbf16>
    tpu.vector_store %arg10[%c1_194, %c16_195, %c768_196], %276 {strides = array<i32>} : memref<2x144x1536xbf16, #tpu.memory_space<vmem>>, vector<1x16x384xbf16>,
    %277 = vector.extract_strided_slice %268 {offsets = [0, 2], sizes = [16, 384], strides = [1, 1]} : vector<16x512xbf16> to vector<16x384xbf16>
    %c1_197 = arith.constant 1 : index
    %c32_198 = arith.constant 32 : index
    %c768_199 = arith.constant 768 : index
    %278 = vector.load %arg10[%c1_197, %c32_198, %c768_199] : memref<2x144x1536xbf16, #tpu.memory_space<vmem>>, vector<1x16x384xbf16>
    %279 = vector.shape_cast %278 : vector<1x16x384xbf16> to vector<16x384xbf16>
    %280 = vector.shape_cast %277 : vector<16x384xbf16> to vector<1x16x384xbf16>
    tpu.vector_store %arg10[%c1_197, %c32_198, %c768_199], %280 {strides = array<i32>} : memref<2x144x1536xbf16, #tpu.memory_space<vmem>>, vector<1x16x384xbf16>,
    %281 = vector.extract_strided_slice %268 {offsets = [0, 18], sizes = [16, 384], strides = [1, 1]} : vector<16x512xbf16> to vector<16x384xbf16>
    %c1_200 = arith.constant 1 : index
    %c48_201 = arith.constant 48 : index
    %c768_202 = arith.constant 768 : index
    %282 = vector.load %arg10[%c1_200, %c48_201, %c768_202] : memref<2x144x1536xbf16, #tpu.memory_space<vmem>>, vector<1x16x384xbf16>
    %283 = vector.shape_cast %282 : vector<1x16x384xbf16> to vector<16x384xbf16>
    %284 = vector.shape_cast %281 : vector<16x384xbf16> to vector<1x16x384xbf16>
    tpu.vector_store %arg10[%c1_200, %c48_201, %c768_202], %284 {strides = array<i32>} : memref<2x144x1536xbf16, #tpu.memory_space<vmem>>, vector<1x16x384xbf16>,
    %285 = vector.extract_strided_slice %268 {offsets = [0, 19], sizes = [16, 384], strides = [1, 1]} : vector<16x512xbf16> to vector<16x384xbf16>
    %c1_203 = arith.constant 1 : index
    %c64_204 = arith.constant 64 : index
    %c768_205 = arith.constant 768 : index
    %286 = vector.load %arg10[%c1_203, %c64_204, %c768_205] : memref<2x144x1536xbf16, #tpu.memory_space<vmem>>, vector<1x16x384xbf16>
    %287 = vector.shape_cast %286 : vector<1x16x384xbf16> to vector<16x384xbf16>
    %288 = vector.shape_cast %285 : vector<16x384xbf16> to vector<1x16x384xbf16>
    tpu.vector_store %arg10[%c1_203, %c64_204, %c768_205], %288 {strides = array<i32>} : memref<2x144x1536xbf16, #tpu.memory_space<vmem>>, vector<1x16x384xbf16>,
    %289 = vector.extract_strided_slice %268 {offsets = [0, 20], sizes = [16, 384], strides = [1, 1]} : vector<16x512xbf16> to vector<16x384xbf16>
    %c1_206 = arith.constant 1 : index
    %c80_207 = arith.constant 80 : index
    %c768_208 = arith.constant 768 : index
    %290 = vector.load %arg10[%c1_206, %c80_207, %c768_208] : memref<2x144x1536xbf16, #tpu.memory_space<vmem>>, vector<1x16x384xbf16>
    %291 = vector.shape_cast %290 : vector<1x16x384xbf16> to vector<16x384xbf16>
    %292 = vector.shape_cast %289 : vector<16x384xbf16> to vector<1x16x384xbf16>
    tpu.vector_store %arg10[%c1_206, %c80_207, %c768_208], %292 {strides = array<i32>} : memref<2x144x1536xbf16, #tpu.memory_space<vmem>>, vector<1x16x384xbf16>,
    %293 = vector.extract_strided_slice %268 {offsets = [0, 36], sizes = [16, 384], strides = [1, 1]} : vector<16x512xbf16> to vector<16x384xbf16>
    %c1_209 = arith.constant 1 : index
    %c96_210 = arith.constant 96 : index
    %c768_211 = arith.constant 768 : index
    %294 = vector.load %arg10[%c1_209, %c96_210, %c768_211] : memref<2x144x1536xbf16, #tpu.memory_space<vmem>>, vector<1x16x384xbf16>
    %295 = vector.shape_cast %294 : vector<1x16x384xbf16> to vector<16x384xbf16>
    %296 = vector.shape_cast %293 : vector<16x384xbf16> to vector<1x16x384xbf16>
    tpu.vector_store %arg10[%c1_209, %c96_210, %c768_211], %296 {strides = array<i32>} : memref<2x144x1536xbf16, #tpu.memory_space<vmem>>, vector<1x16x384xbf16>,
    %297 = vector.extract_strided_slice %268 {offsets = [0, 37], sizes = [16, 384], strides = [1, 1]} : vector<16x512xbf16> to vector<16x384xbf16>
    %c1_212 = arith.constant 1 : index
    %c112_213 = arith.constant 112 : index
    %c768_214 = arith.constant 768 : index
    %298 = vector.load %arg10[%c1_212, %c112_213, %c768_214] : memref<2x144x1536xbf16, #tpu.memory_space<vmem>>, vector<1x16x384xbf16>
    %299 = vector.shape_cast %298 : vector<1x16x384xbf16> to vector<16x384xbf16>
    %300 = vector.shape_cast %297 : vector<16x384xbf16> to vector<1x16x384xbf16>
    tpu.vector_store %arg10[%c1_212, %c112_213, %c768_214], %300 {strides = array<i32>} : memref<2x144x1536xbf16, #tpu.memory_space<vmem>>, vector<1x16x384xbf16>,
    %301 = vector.extract_strided_slice %268 {offsets = [0, 38], sizes = [16, 384], strides = [1, 1]} : vector<16x512xbf16> to vector<16x384xbf16>
    %c1_215 = arith.constant 1 : index
    %c128_216 = arith.constant 128 : index
    %c768_217 = arith.constant 768 : index
    %302 = vector.load %arg10[%c1_215, %c128_216, %c768_217] : memref<2x144x1536xbf16, #tpu.memory_space<vmem>>, vector<1x16x384xbf16>
    %303 = vector.shape_cast %302 : vector<1x16x384xbf16> to vector<16x384xbf16>
    %304 = vector.shape_cast %301 : vector<16x384xbf16> to vector<1x16x384xbf16>
    tpu.vector_store %arg10[%c1_215, %c128_216, %c768_217], %304 {strides = array<i32>} : memref<2x144x1536xbf16, #tpu.memory_space<vmem>>, vector<1x16x384xbf16>,
    %305 = arith.index_cast %9 : i32 to index
    %c4 = arith.constant 4 : index
    %c0_218 = arith.constant 0 : index
    %c0_219 = arith.constant 0 : index
    %306 = vector.load %arg9[%305, %c4, %c0_218, %c0_219] : memref<2x6x16x512xbf16, #tpu.memory_space<vmem>>, vector<1x1x16x512xbf16>
    %307 = vector.shape_cast %306 : vector<1x1x16x512xbf16> to vector<16x512xbf16>
    %308 = vector.extract_strided_slice %307 {offsets = [0, 0], sizes = [16, 384], strides = [1, 1]} : vector<16x512xbf16> to vector<16x384xbf16>
    %c1_220 = arith.constant 1 : index
    %c0_221 = arith.constant 0 : index
    %c1152_222 = arith.constant 1152 : index
    %309 = vector.load %arg10[%c1_220, %c0_221, %c1152_222] : memref<2x144x1536xbf16, #tpu.memory_space<vmem>>, vector<1x16x384xbf16>
    %310 = vector.shape_cast %309 : vector<1x16x384xbf16> to vector<16x384xbf16>
    %311 = vector.shape_cast %308 : vector<16x384xbf16> to vector<1x16x384xbf16>
    tpu.vector_store %arg10[%c1_220, %c0_221, %c1152_222], %311 {strides = array<i32>} : memref<2x144x1536xbf16, #tpu.memory_space<vmem>>, vector<1x16x384xbf16>,
    %312 = vector.extract_strided_slice %307 {offsets = [0, 1], sizes = [16, 384], strides = [1, 1]} : vector<16x512xbf16> to vector<16x384xbf16>
    %c1_223 = arith.constant 1 : index
    %c16_224 = arith.constant 16 : index
    %c1152_225 = arith.constant 1152 : index
    %313 = vector.load %arg10[%c1_223, %c16_224, %c1152_225] : memref<2x144x1536xbf16, #tpu.memory_space<vmem>>, vector<1x16x384xbf16>
    %314 = vector.shape_cast %313 : vector<1x16x384xbf16> to vector<16x384xbf16>
    %315 = vector.shape_cast %312 : vector<16x384xbf16> to vector<1x16x384xbf16>
    tpu.vector_store %arg10[%c1_223, %c16_224, %c1152_225], %315 {strides = array<i32>} : memref<2x144x1536xbf16, #tpu.memory_space<vmem>>, vector<1x16x384xbf16>,
    %316 = vector.extract_strided_slice %307 {offsets = [0, 2], sizes = [16, 384], strides = [1, 1]} : vector<16x512xbf16> to vector<16x384xbf16>
    %c1_226 = arith.constant 1 : index
    %c32_227 = arith.constant 32 : index
    %c1152_228 = arith.constant 1152 : index
    %317 = vector.load %arg10[%c1_226, %c32_227, %c1152_228] : memref<2x144x1536xbf16, #tpu.memory_space<vmem>>, vector<1x16x384xbf16>
    %318 = vector.shape_cast %317 : vector<1x16x384xbf16> to vector<16x384xbf16>
    %319 = vector.shape_cast %316 : vector<16x384xbf16> to vector<1x16x384xbf16>
    tpu.vector_store %arg10[%c1_226, %c32_227, %c1152_228], %319 {strides = array<i32>} : memref<2x144x1536xbf16, #tpu.memory_space<vmem>>, vector<1x16x384xbf16>,
    %320 = vector.extract_strided_slice %307 {offsets = [0, 18], sizes = [16, 384], strides = [1, 1]} : vector<16x512xbf16> to vector<16x384xbf16>
    %c1_229 = arith.constant 1 : index
    %c48_230 = arith.constant 48 : index
    %c1152_231 = arith.constant 1152 : index
    %321 = vector.load %arg10[%c1_229, %c48_230, %c1152_231] : memref<2x144x1536xbf16, #tpu.memory_space<vmem>>, vector<1x16x384xbf16>
    %322 = vector.shape_cast %321 : vector<1x16x384xbf16> to vector<16x384xbf16>
    %323 = vector.shape_cast %320 : vector<16x384xbf16> to vector<1x16x384xbf16>
    tpu.vector_store %arg10[%c1_229, %c48_230, %c1152_231], %323 {strides = array<i32>} : memref<2x144x1536xbf16, #tpu.memory_space<vmem>>, vector<1x16x384xbf16>,
    %324 = vector.extract_strided_slice %307 {offsets = [0, 19], sizes = [16, 384], strides = [1, 1]} : vector<16x512xbf16> to vector<16x384xbf16>
    %c1_232 = arith.constant 1 : index
    %c64_233 = arith.constant 64 : index
    %c1152_234 = arith.constant 1152 : index
    %325 = vector.load %arg10[%c1_232, %c64_233, %c1152_234] : memref<2x144x1536xbf16, #tpu.memory_space<vmem>>, vector<1x16x384xbf16>
    %326 = vector.shape_cast %325 : vector<1x16x384xbf16> to vector<16x384xbf16>
    %327 = vector.shape_cast %324 : vector<16x384xbf16> to vector<1x16x384xbf16>
    tpu.vector_store %arg10[%c1_232, %c64_233, %c1152_234], %327 {strides = array<i32>} : memref<2x144x1536xbf16, #tpu.memory_space<vmem>>, vector<1x16x384xbf16>,
    %328 = vector.extract_strided_slice %307 {offsets = [0, 20], sizes = [16, 384], strides = [1, 1]} : vector<16x512xbf16> to vector<16x384xbf16>
    %c1_235 = arith.constant 1 : index
    %c80_236 = arith.constant 80 : index
    %c1152_237 = arith.constant 1152 : index
    %329 = vector.load %arg10[%c1_235, %c80_236, %c1152_237] : memref<2x144x1536xbf16, #tpu.memory_space<vmem>>, vector<1x16x384xbf16>
    %330 = vector.shape_cast %329 : vector<1x16x384xbf16> to vector<16x384xbf16>
    %331 = vector.shape_cast %328 : vector<16x384xbf16> to vector<1x16x384xbf16>
    tpu.vector_store %arg10[%c1_235, %c80_236, %c1152_237], %331 {strides = array<i32>} : memref<2x144x1536xbf16, #tpu.memory_space<vmem>>, vector<1x16x384xbf16>,
    %332 = vector.extract_strided_slice %307 {offsets = [0, 36], sizes = [16, 384], strides = [1, 1]} : vector<16x512xbf16> to vector<16x384xbf16>
    %c1_238 = arith.constant 1 : index
    %c96_239 = arith.constant 96 : index
    %c1152_240 = arith.constant 1152 : index
    %333 = vector.load %arg10[%c1_238, %c96_239, %c1152_240] : memref<2x144x1536xbf16, #tpu.memory_space<vmem>>, vector<1x16x384xbf16>
    %334 = vector.shape_cast %333 : vector<1x16x384xbf16> to vector<16x384xbf16>
    %335 = vector.shape_cast %332 : vector<16x384xbf16> to vector<1x16x384xbf16>
    tpu.vector_store %arg10[%c1_238, %c96_239, %c1152_240], %335 {strides = array<i32>} : memref<2x144x1536xbf16, #tpu.memory_space<vmem>>, vector<1x16x384xbf16>,
    %336 = vector.extract_strided_slice %307 {offsets = [0, 37], sizes = [16, 384], strides = [1, 1]} : vector<16x512xbf16> to vector<16x384xbf16>
    %c1_241 = arith.constant 1 : index
    %c112_242 = arith.constant 112 : index
    %c1152_243 = arith.constant 1152 : index
    %337 = vector.load %arg10[%c1_241, %c112_242, %c1152_243] : memref<2x144x1536xbf16, #tpu.memory_space<vmem>>, vector<1x16x384xbf16>
    %338 = vector.shape_cast %337 : vector<1x16x384xbf16> to vector<16x384xbf16>
    %339 = vector.shape_cast %336 : vector<16x384xbf16> to vector<1x16x384xbf16>
    tpu.vector_store %arg10[%c1_241, %c112_242, %c1152_243], %339 {strides = array<i32>} : memref<2x144x1536xbf16, #tpu.memory_space<vmem>>, vector<1x16x384xbf16>,
    %340 = vector.extract_strided_slice %307 {offsets = [0, 38], sizes = [16, 384], strides = [1, 1]} : vector<16x512xbf16> to vector<16x384xbf16>
    %c1_244 = arith.constant 1 : index
    %c128_245 = arith.constant 128 : index
    %c1152_246 = arith.constant 1152 : index
    %341 = vector.load %arg10[%c1_244, %c128_245, %c1152_246] : memref<2x144x1536xbf16, #tpu.memory_space<vmem>>, vector<1x16x384xbf16>
    %342 = vector.shape_cast %341 : vector<1x16x384xbf16> to vector<16x384xbf16>
    %343 = vector.shape_cast %340 : vector<16x384xbf16> to vector<1x16x384xbf16>
    tpu.vector_store %arg10[%c1_244, %c128_245, %c1152_246], %343 {strides = array<i32>} : memref<2x144x1536xbf16, #tpu.memory_space<vmem>>, vector<1x16x384xbf16>,
    %c1_247 = arith.constant 1 : index
    %c0_248 = arith.constant 0 : index
    %c0_249 = arith.constant 0 : index
    %344 = vector.load %arg3[%c1_247, %c0_248, %c0_249] : memref<3x16x144xbf16, #tpu.memory_space<vmem>>, vector<1x16x144xbf16>
    %345 = vector.shape_cast %344 : vector<1x16x144xbf16> to vector<16x144xbf16>
    %c1_250 = arith.constant 1 : index
    %c0_251 = arith.constant 0 : index
    %c0_252 = arith.constant 0 : index
    %346 = vector.load %arg10[%c1_250, %c0_251, %c0_252] : memref<2x144x1536xbf16, #tpu.memory_space<vmem>>, vector<1x144x1536xbf16>
    %347 = vector.shape_cast %346 : vector<1x144x1536xbf16> to vector<144x1536xbf16>
    %cst_253 = arith.constant dense<0.000000e+00> : vector<16x1536xf32>
    %348 = tpu.matmul %345, %347, %cst_253 {dimension_numbers = #tpu.dot_dimension_numbers<[1], [0], [0], [1], [0, 0, 1, 1], [], []>} : vector<16x144xbf16>, vector<144x1536xbf16>, vector<16x1536xf32> -> vector<16x1536xf32>
    %c0_254 = arith.constant 0 : index
    %c0_255 = arith.constant 0 : index
    %349 = vector.load %arg11[%c0_254, %c0_255] : memref<16x1536xf32, #tpu.memory_space<vmem>>, vector<16x1536xf32>
    %350 = arith.addf %349, %348 : vector<16x1536xf32>
    %c0_256 = arith.constant 0 : index
    %c0_257 = arith.constant 0 : index
    %351 = vector.load %arg11[%c0_256, %c0_257] : memref<16x1536xf32, #tpu.memory_space<vmem>>, vector<16x1536xf32>
    tpu.vector_store %arg11[%c0_256, %c0_257], %350 {strides = array<i32>} : memref<16x1536xf32, #tpu.memory_space<vmem>>, vector<16x1536xf32>,
    %352 = arith.index_cast %9 : i32 to index
    %c2_258 = arith.constant 2 : index
    %c0_259 = arith.constant 0 : index
    %c0_260 = arith.constant 0 : index
    %353 = vector.load %arg9[%352, %c2_258, %c0_259, %c0_260] : memref<2x6x16x512xbf16, #tpu.memory_space<vmem>>, vector<1x1x16x512xbf16>
    %354 = vector.shape_cast %353 : vector<1x1x16x512xbf16> to vector<16x512xbf16>
    %355 = vector.extract_strided_slice %354 {offsets = [0, 0], sizes = [16, 384], strides = [1, 1]} : vector<16x512xbf16> to vector<16x384xbf16>
    %c0_261 = arith.constant 0 : index
    %c0_262 = arith.constant 0 : index
    %c0_263 = arith.constant 0 : index
    %356 = vector.load %arg10[%c0_261, %c0_262, %c0_263] : memref<2x144x1536xbf16, #tpu.memory_space<vmem>>, vector<1x16x384xbf16>
    %357 = vector.shape_cast %356 : vector<1x16x384xbf16> to vector<16x384xbf16>
    %358 = vector.shape_cast %355 : vector<16x384xbf16> to vector<1x16x384xbf16>
    tpu.vector_store %arg10[%c0_261, %c0_262, %c0_263], %358 {strides = array<i32>} : memref<2x144x1536xbf16, #tpu.memory_space<vmem>>, vector<1x16x384xbf16>,
    %359 = vector.extract_strided_slice %354 {offsets = [0, 1], sizes = [16, 384], strides = [1, 1]} : vector<16x512xbf16> to vector<16x384xbf16>
    %c0_264 = arith.constant 0 : index
    %c16_265 = arith.constant 16 : index
    %c0_266 = arith.constant 0 : index
    %360 = vector.load %arg10[%c0_264, %c16_265, %c0_266] : memref<2x144x1536xbf16, #tpu.memory_space<vmem>>, vector<1x16x384xbf16>
    %361 = vector.shape_cast %360 : vector<1x16x384xbf16> to vector<16x384xbf16>
    %362 = vector.shape_cast %359 : vector<16x384xbf16> to vector<1x16x384xbf16>
    tpu.vector_store %arg10[%c0_264, %c16_265, %c0_266], %362 {strides = array<i32>} : memref<2x144x1536xbf16, #tpu.memory_space<vmem>>, vector<1x16x384xbf16>,
    %363 = vector.extract_strided_slice %354 {offsets = [0, 2], sizes = [16, 384], strides = [1, 1]} : vector<16x512xbf16> to vector<16x384xbf16>
    %c0_267 = arith.constant 0 : index
    %c32_268 = arith.constant 32 : index
    %c0_269 = arith.constant 0 : index
    %364 = vector.load %arg10[%c0_267, %c32_268, %c0_269] : memref<2x144x1536xbf16, #tpu.memory_space<vmem>>, vector<1x16x384xbf16>
    %365 = vector.shape_cast %364 : vector<1x16x384xbf16> to vector<16x384xbf16>
    %366 = vector.shape_cast %363 : vector<16x384xbf16> to vector<1x16x384xbf16>
    tpu.vector_store %arg10[%c0_267, %c32_268, %c0_269], %366 {strides = array<i32>} : memref<2x144x1536xbf16, #tpu.memory_space<vmem>>, vector<1x16x384xbf16>,
    %367 = vector.extract_strided_slice %354 {offsets = [0, 18], sizes = [16, 384], strides = [1, 1]} : vector<16x512xbf16> to vector<16x384xbf16>
    %c0_270 = arith.constant 0 : index
    %c48_271 = arith.constant 48 : index
    %c0_272 = arith.constant 0 : index
    %368 = vector.load %arg10[%c0_270, %c48_271, %c0_272] : memref<2x144x1536xbf16, #tpu.memory_space<vmem>>, vector<1x16x384xbf16>
    %369 = vector.shape_cast %368 : vector<1x16x384xbf16> to vector<16x384xbf16>
    %370 = vector.shape_cast %367 : vector<16x384xbf16> to vector<1x16x384xbf16>
    tpu.vector_store %arg10[%c0_270, %c48_271, %c0_272], %370 {strides = array<i32>} : memref<2x144x1536xbf16, #tpu.memory_space<vmem>>, vector<1x16x384xbf16>,
    %371 = vector.extract_strided_slice %354 {offsets = [0, 19], sizes = [16, 384], strides = [1, 1]} : vector<16x512xbf16> to vector<16x384xbf16>
    %c0_273 = arith.constant 0 : index
    %c64_274 = arith.constant 64 : index
    %c0_275 = arith.constant 0 : index
    %372 = vector.load %arg10[%c0_273, %c64_274, %c0_275] : memref<2x144x1536xbf16, #tpu.memory_space<vmem>>, vector<1x16x384xbf16>
    %373 = vector.shape_cast %372 : vector<1x16x384xbf16> to vector<16x384xbf16>
    %374 = vector.shape_cast %371 : vector<16x384xbf16> to vector<1x16x384xbf16>
    tpu.vector_store %arg10[%c0_273, %c64_274, %c0_275], %374 {strides = array<i32>} : memref<2x144x1536xbf16, #tpu.memory_space<vmem>>, vector<1x16x384xbf16>,
    %375 = vector.extract_strided_slice %354 {offsets = [0, 20], sizes = [16, 384], strides = [1, 1]} : vector<16x512xbf16> to vector<16x384xbf16>
    %c0_276 = arith.constant 0 : index
    %c80_277 = arith.constant 80 : index
    %c0_278 = arith.constant 0 : index
    %376 = vector.load %arg10[%c0_276, %c80_277, %c0_278] : memref<2x144x1536xbf16, #tpu.memory_space<vmem>>, vector<1x16x384xbf16>
    %377 = vector.shape_cast %376 : vector<1x16x384xbf16> to vector<16x384xbf16>
    %378 = vector.shape_cast %375 : vector<16x384xbf16> to vector<1x16x384xbf16>
    tpu.vector_store %arg10[%c0_276, %c80_277, %c0_278], %378 {strides = array<i32>} : memref<2x144x1536xbf16, #tpu.memory_space<vmem>>, vector<1x16x384xbf16>,
    %379 = vector.extract_strided_slice %354 {offsets = [0, 36], sizes = [16, 384], strides = [1, 1]} : vector<16x512xbf16> to vector<16x384xbf16>
    %c0_279 = arith.constant 0 : index
    %c96_280 = arith.constant 96 : index
    %c0_281 = arith.constant 0 : index
    %380 = vector.load %arg10[%c0_279, %c96_280, %c0_281] : memref<2x144x1536xbf16, #tpu.memory_space<vmem>>, vector<1x16x384xbf16>
    %381 = vector.shape_cast %380 : vector<1x16x384xbf16> to vector<16x384xbf16>
    %382 = vector.shape_cast %379 : vector<16x384xbf16> to vector<1x16x384xbf16>
    tpu.vector_store %arg10[%c0_279, %c96_280, %c0_281], %382 {strides = array<i32>} : memref<2x144x1536xbf16, #tpu.memory_space<vmem>>, vector<1x16x384xbf16>,
    %383 = vector.extract_strided_slice %354 {offsets = [0, 37], sizes = [16, 384], strides = [1, 1]} : vector<16x512xbf16> to vector<16x384xbf16>
    %c0_282 = arith.constant 0 : index
    %c112_283 = arith.constant 112 : index
    %c0_284 = arith.constant 0 : index
    %384 = vector.load %arg10[%c0_282, %c112_283, %c0_284] : memref<2x144x1536xbf16, #tpu.memory_space<vmem>>, vector<1x16x384xbf16>
    %385 = vector.shape_cast %384 : vector<1x16x384xbf16> to vector<16x384xbf16>
    %386 = vector.shape_cast %383 : vector<16x384xbf16> to vector<1x16x384xbf16>
    tpu.vector_store %arg10[%c0_282, %c112_283, %c0_284], %386 {strides = array<i32>} : memref<2x144x1536xbf16, #tpu.memory_space<vmem>>, vector<1x16x384xbf16>,
    %387 = vector.extract_strided_slice %354 {offsets = [0, 38], sizes = [16, 384], strides = [1, 1]} : vector<16x512xbf16> to vector<16x384xbf16>
    %c0_285 = arith.constant 0 : index
    %c128_286 = arith.constant 128 : index
    %c0_287 = arith.constant 0 : index
    %388 = vector.load %arg10[%c0_285, %c128_286, %c0_287] : memref<2x144x1536xbf16, #tpu.memory_space<vmem>>, vector<1x16x384xbf16>
    %389 = vector.shape_cast %388 : vector<1x16x384xbf16> to vector<16x384xbf16>
    %390 = vector.shape_cast %387 : vector<16x384xbf16> to vector<1x16x384xbf16>
    tpu.vector_store %arg10[%c0_285, %c128_286, %c0_287], %390 {strides = array<i32>} : memref<2x144x1536xbf16, #tpu.memory_space<vmem>>, vector<1x16x384xbf16>,
    %391 = arith.index_cast %9 : i32 to index
    %c3_288 = arith.constant 3 : index
    %c0_289 = arith.constant 0 : index
    %c0_290 = arith.constant 0 : index
    %392 = vector.load %arg9[%391, %c3_288, %c0_289, %c0_290] : memref<2x6x16x512xbf16, #tpu.memory_space<vmem>>, vector<1x1x16x512xbf16>
    %393 = vector.shape_cast %392 : vector<1x1x16x512xbf16> to vector<16x512xbf16>
    %394 = vector.extract_strided_slice %393 {offsets = [0, 0], sizes = [16, 384], strides = [1, 1]} : vector<16x512xbf16> to vector<16x384xbf16>
    %c0_291 = arith.constant 0 : index
    %c0_292 = arith.constant 0 : index
    %c384_293 = arith.constant 384 : index
    %395 = vector.load %arg10[%c0_291, %c0_292, %c384_293] : memref<2x144x1536xbf16, #tpu.memory_space<vmem>>, vector<1x16x384xbf16>
    %396 = vector.shape_cast %395 : vector<1x16x384xbf16> to vector<16x384xbf16>
    %397 = vector.shape_cast %394 : vector<16x384xbf16> to vector<1x16x384xbf16>
    tpu.vector_store %arg10[%c0_291, %c0_292, %c384_293], %397 {strides = array<i32>} : memref<2x144x1536xbf16, #tpu.memory_space<vmem>>, vector<1x16x384xbf16>,
    %398 = vector.extract_strided_slice %393 {offsets = [0, 1], sizes = [16, 384], strides = [1, 1]} : vector<16x512xbf16> to vector<16x384xbf16>
    %c0_294 = arith.constant 0 : index
    %c16_295 = arith.constant 16 : index
    %c384_296 = arith.constant 384 : index
    %399 = vector.load %arg10[%c0_294, %c16_295, %c384_296] : memref<2x144x1536xbf16, #tpu.memory_space<vmem>>, vector<1x16x384xbf16>
    %400 = vector.shape_cast %399 : vector<1x16x384xbf16> to vector<16x384xbf16>
    %401 = vector.shape_cast %398 : vector<16x384xbf16> to vector<1x16x384xbf16>
    tpu.vector_store %arg10[%c0_294, %c16_295, %c384_296], %401 {strides = array<i32>} : memref<2x144x1536xbf16, #tpu.memory_space<vmem>>, vector<1x16x384xbf16>,
    %402 = vector.extract_strided_slice %393 {offsets = [0, 2], sizes = [16, 384], strides = [1, 1]} : vector<16x512xbf16> to vector<16x384xbf16>
    %c0_297 = arith.constant 0 : index
    %c32_298 = arith.constant 32 : index
    %c384_299 = arith.constant 384 : index
    %403 = vector.load %arg10[%c0_297, %c32_298, %c384_299] : memref<2x144x1536xbf16, #tpu.memory_space<vmem>>, vector<1x16x384xbf16>
    %404 = vector.shape_cast %403 : vector<1x16x384xbf16> to vector<16x384xbf16>
    %405 = vector.shape_cast %402 : vector<16x384xbf16> to vector<1x16x384xbf16>
    tpu.vector_store %arg10[%c0_297, %c32_298, %c384_299], %405 {strides = array<i32>} : memref<2x144x1536xbf16, #tpu.memory_space<vmem>>, vector<1x16x384xbf16>,
    %406 = vector.extract_strided_slice %393 {offsets = [0, 18], sizes = [16, 384], strides = [1, 1]} : vector<16x512xbf16> to vector<16x384xbf16>
    %c0_300 = arith.constant 0 : index
    %c48_301 = arith.constant 48 : index
    %c384_302 = arith.constant 384 : index
    %407 = vector.load %arg10[%c0_300, %c48_301, %c384_302] : memref<2x144x1536xbf16, #tpu.memory_space<vmem>>, vector<1x16x384xbf16>
    %408 = vector.shape_cast %407 : vector<1x16x384xbf16> to vector<16x384xbf16>
    %409 = vector.shape_cast %406 : vector<16x384xbf16> to vector<1x16x384xbf16>
    tpu.vector_store %arg10[%c0_300, %c48_301, %c384_302], %409 {strides = array<i32>} : memref<2x144x1536xbf16, #tpu.memory_space<vmem>>, vector<1x16x384xbf16>,
    %410 = vector.extract_strided_slice %393 {offsets = [0, 19], sizes = [16, 384], strides = [1, 1]} : vector<16x512xbf16> to vector<16x384xbf16>
    %c0_303 = arith.constant 0 : index
    %c64_304 = arith.constant 64 : index
    %c384_305 = arith.constant 384 : index
    %411 = vector.load %arg10[%c0_303, %c64_304, %c384_305] : memref<2x144x1536xbf16, #tpu.memory_space<vmem>>, vector<1x16x384xbf16>
    %412 = vector.shape_cast %411 : vector<1x16x384xbf16> to vector<16x384xbf16>
    %413 = vector.shape_cast %410 : vector<16x384xbf16> to vector<1x16x384xbf16>
    tpu.vector_store %arg10[%c0_303, %c64_304, %c384_305], %413 {strides = array<i32>} : memref<2x144x1536xbf16, #tpu.memory_space<vmem>>, vector<1x16x384xbf16>,
    %414 = vector.extract_strided_slice %393 {offsets = [0, 20], sizes = [16, 384], strides = [1, 1]} : vector<16x512xbf16> to vector<16x384xbf16>
    %c0_306 = arith.constant 0 : index
    %c80_307 = arith.constant 80 : index
    %c384_308 = arith.constant 384 : index
    %415 = vector.load %arg10[%c0_306, %c80_307, %c384_308] : memref<2x144x1536xbf16, #tpu.memory_space<vmem>>, vector<1x16x384xbf16>
    %416 = vector.shape_cast %415 : vector<1x16x384xbf16> to vector<16x384xbf16>
    %417 = vector.shape_cast %414 : vector<16x384xbf16> to vector<1x16x384xbf16>
    tpu.vector_store %arg10[%c0_306, %c80_307, %c384_308], %417 {strides = array<i32>} : memref<2x144x1536xbf16, #tpu.memory_space<vmem>>, vector<1x16x384xbf16>,
    %418 = vector.extract_strided_slice %393 {offsets = [0, 36], sizes = [16, 384], strides = [1, 1]} : vector<16x512xbf16> to vector<16x384xbf16>
    %c0_309 = arith.constant 0 : index
    %c96_310 = arith.constant 96 : index
    %c384_311 = arith.constant 384 : index
    %419 = vector.load %arg10[%c0_309, %c96_310, %c384_311] : memref<2x144x1536xbf16, #tpu.memory_space<vmem>>, vector<1x16x384xbf16>
    %420 = vector.shape_cast %419 : vector<1x16x384xbf16> to vector<16x384xbf16>
    %421 = vector.shape_cast %418 : vector<16x384xbf16> to vector<1x16x384xbf16>
    tpu.vector_store %arg10[%c0_309, %c96_310, %c384_311], %421 {strides = array<i32>} : memref<2x144x1536xbf16, #tpu.memory_space<vmem>>, vector<1x16x384xbf16>,
    %422 = vector.extract_strided_slice %393 {offsets = [0, 37], sizes = [16, 384], strides = [1, 1]} : vector<16x512xbf16> to vector<16x384xbf16>
    %c0_312 = arith.constant 0 : index
    %c112_313 = arith.constant 112 : index
    %c384_314 = arith.constant 384 : index
    %423 = vector.load %arg10[%c0_312, %c112_313, %c384_314] : memref<2x144x1536xbf16, #tpu.memory_space<vmem>>, vector<1x16x384xbf16>
    %424 = vector.shape_cast %423 : vector<1x16x384xbf16> to vector<16x384xbf16>
    %425 = vector.shape_cast %422 : vector<16x384xbf16> to vector<1x16x384xbf16>
    tpu.vector_store %arg10[%c0_312, %c112_313, %c384_314], %425 {strides = array<i32>} : memref<2x144x1536xbf16, #tpu.memory_space<vmem>>, vector<1x16x384xbf16>,
    %426 = vector.extract_strided_slice %393 {offsets = [0, 38], sizes = [16, 384], strides = [1, 1]} : vector<16x512xbf16> to vector<16x384xbf16>
    %c0_315 = arith.constant 0 : index
    %c128_316 = arith.constant 128 : index
    %c384_317 = arith.constant 384 : index
    %427 = vector.load %arg10[%c0_315, %c128_316, %c384_317] : memref<2x144x1536xbf16, #tpu.memory_space<vmem>>, vector<1x16x384xbf16>
    %428 = vector.shape_cast %427 : vector<1x16x384xbf16> to vector<16x384xbf16>
    %429 = vector.shape_cast %426 : vector<16x384xbf16> to vector<1x16x384xbf16>
    tpu.vector_store %arg10[%c0_315, %c128_316, %c384_317], %429 {strides = array<i32>} : memref<2x144x1536xbf16, #tpu.memory_space<vmem>>, vector<1x16x384xbf16>,
    %430 = arith.index_cast %9 : i32 to index
    %c4_318 = arith.constant 4 : index
    %c0_319 = arith.constant 0 : index
    %c0_320 = arith.constant 0 : index
    %431 = vector.load %arg9[%430, %c4_318, %c0_319, %c0_320] : memref<2x6x16x512xbf16, #tpu.memory_space<vmem>>, vector<1x1x16x512xbf16>
    %432 = vector.shape_cast %431 : vector<1x1x16x512xbf16> to vector<16x512xbf16>
    %433 = vector.extract_strided_slice %432 {offsets = [0, 0], sizes = [16, 384], strides = [1, 1]} : vector<16x512xbf16> to vector<16x384xbf16>
    %c0_321 = arith.constant 0 : index
    %c0_322 = arith.constant 0 : index
    %c768_323 = arith.constant 768 : index
    %434 = vector.load %arg10[%c0_321, %c0_322, %c768_323] : memref<2x144x1536xbf16, #tpu.memory_space<vmem>>, vector<1x16x384xbf16>
    %435 = vector.shape_cast %434 : vector<1x16x384xbf16> to vector<16x384xbf16>
    %436 = vector.shape_cast %433 : vector<16x384xbf16> to vector<1x16x384xbf16>
    tpu.vector_store %arg10[%c0_321, %c0_322, %c768_323], %436 {strides = array<i32>} : memref<2x144x1536xbf16, #tpu.memory_space<vmem>>, vector<1x16x384xbf16>,
    %437 = vector.extract_strided_slice %432 {offsets = [0, 1], sizes = [16, 384], strides = [1, 1]} : vector<16x512xbf16> to vector<16x384xbf16>
    %c0_324 = arith.constant 0 : index
    %c16_325 = arith.constant 16 : index
    %c768_326 = arith.constant 768 : index
    %438 = vector.load %arg10[%c0_324, %c16_325, %c768_326] : memref<2x144x1536xbf16, #tpu.memory_space<vmem>>, vector<1x16x384xbf16>
    %439 = vector.shape_cast %438 : vector<1x16x384xbf16> to vector<16x384xbf16>
    %440 = vector.shape_cast %437 : vector<16x384xbf16> to vector<1x16x384xbf16>
    tpu.vector_store %arg10[%c0_324, %c16_325, %c768_326], %440 {strides = array<i32>} : memref<2x144x1536xbf16, #tpu.memory_space<vmem>>, vector<1x16x384xbf16>,
    %441 = vector.extract_strided_slice %432 {offsets = [0, 2], sizes = [16, 384], strides = [1, 1]} : vector<16x512xbf16> to vector<16x384xbf16>
    %c0_327 = arith.constant 0 : index
    %c32_328 = arith.constant 32 : index
    %c768_329 = arith.constant 768 : index
    %442 = vector.load %arg10[%c0_327, %c32_328, %c768_329] : memref<2x144x1536xbf16, #tpu.memory_space<vmem>>, vector<1x16x384xbf16>
    %443 = vector.shape_cast %442 : vector<1x16x384xbf16> to vector<16x384xbf16>
    %444 = vector.shape_cast %441 : vector<16x384xbf16> to vector<1x16x384xbf16>
    tpu.vector_store %arg10[%c0_327, %c32_328, %c768_329], %444 {strides = array<i32>} : memref<2x144x1536xbf16, #tpu.memory_space<vmem>>, vector<1x16x384xbf16>,
    %445 = vector.extract_strided_slice %432 {offsets = [0, 18], sizes = [16, 384], strides = [1, 1]} : vector<16x512xbf16> to vector<16x384xbf16>
    %c0_330 = arith.constant 0 : index
    %c48_331 = arith.constant 48 : index
    %c768_332 = arith.constant 768 : index
    %446 = vector.load %arg10[%c0_330, %c48_331, %c768_332] : memref<2x144x1536xbf16, #tpu.memory_space<vmem>>, vector<1x16x384xbf16>
    %447 = vector.shape_cast %446 : vector<1x16x384xbf16> to vector<16x384xbf16>
    %448 = vector.shape_cast %445 : vector<16x384xbf16> to vector<1x16x384xbf16>
    tpu.vector_store %arg10[%c0_330, %c48_331, %c768_332], %448 {strides = array<i32>} : memref<2x144x1536xbf16, #tpu.memory_space<vmem>>, vector<1x16x384xbf16>,
    %449 = vector.extract_strided_slice %432 {offsets = [0, 19], sizes = [16, 384], strides = [1, 1]} : vector<16x512xbf16> to vector<16x384xbf16>
    %c0_333 = arith.constant 0 : index
    %c64_334 = arith.constant 64 : index
    %c768_335 = arith.constant 768 : index
    %450 = vector.load %arg10[%c0_333, %c64_334, %c768_335] : memref<2x144x1536xbf16, #tpu.memory_space<vmem>>, vector<1x16x384xbf16>
    %451 = vector.shape_cast %450 : vector<1x16x384xbf16> to vector<16x384xbf16>
    %452 = vector.shape_cast %449 : vector<16x384xbf16> to vector<1x16x384xbf16>
    tpu.vector_store %arg10[%c0_333, %c64_334, %c768_335], %452 {strides = array<i32>} : memref<2x144x1536xbf16, #tpu.memory_space<vmem>>, vector<1x16x384xbf16>,
    %453 = vector.extract_strided_slice %432 {offsets = [0, 20], sizes = [16, 384], strides = [1, 1]} : vector<16x512xbf16> to vector<16x384xbf16>
    %c0_336 = arith.constant 0 : index
    %c80_337 = arith.constant 80 : index
    %c768_338 = arith.constant 768 : index
    %454 = vector.load %arg10[%c0_336, %c80_337, %c768_338] : memref<2x144x1536xbf16, #tpu.memory_space<vmem>>, vector<1x16x384xbf16>
    %455 = vector.shape_cast %454 : vector<1x16x384xbf16> to vector<16x384xbf16>
    %456 = vector.shape_cast %453 : vector<16x384xbf16> to vector<1x16x384xbf16>
    tpu.vector_store %arg10[%c0_336, %c80_337, %c768_338], %456 {strides = array<i32>} : memref<2x144x1536xbf16, #tpu.memory_space<vmem>>, vector<1x16x384xbf16>,
    %457 = vector.extract_strided_slice %432 {offsets = [0, 36], sizes = [16, 384], strides = [1, 1]} : vector<16x512xbf16> to vector<16x384xbf16>
    %c0_339 = arith.constant 0 : index
    %c96_340 = arith.constant 96 : index
    %c768_341 = arith.constant 768 : index
    %458 = vector.load %arg10[%c0_339, %c96_340, %c768_341] : memref<2x144x1536xbf16, #tpu.memory_space<vmem>>, vector<1x16x384xbf16>
    %459 = vector.shape_cast %458 : vector<1x16x384xbf16> to vector<16x384xbf16>
    %460 = vector.shape_cast %457 : vector<16x384xbf16> to vector<1x16x384xbf16>
    tpu.vector_store %arg10[%c0_339, %c96_340, %c768_341], %460 {strides = array<i32>} : memref<2x144x1536xbf16, #tpu.memory_space<vmem>>, vector<1x16x384xbf16>,
    %461 = vector.extract_strided_slice %432 {offsets = [0, 37], sizes = [16, 384], strides = [1, 1]} : vector<16x512xbf16> to vector<16x384xbf16>
    %c0_342 = arith.constant 0 : index
    %c112_343 = arith.constant 112 : index
    %c768_344 = arith.constant 768 : index
    %462 = vector.load %arg10[%c0_342, %c112_343, %c768_344] : memref<2x144x1536xbf16, #tpu.memory_space<vmem>>, vector<1x16x384xbf16>
    %463 = vector.shape_cast %462 : vector<1x16x384xbf16> to vector<16x384xbf16>
    %464 = vector.shape_cast %461 : vector<16x384xbf16> to vector<1x16x384xbf16>
    tpu.vector_store %arg10[%c0_342, %c112_343, %c768_344], %464 {strides = array<i32>} : memref<2x144x1536xbf16, #tpu.memory_space<vmem>>, vector<1x16x384xbf16>,
    %465 = vector.extract_strided_slice %432 {offsets = [0, 38], sizes = [16, 384], strides = [1, 1]} : vector<16x512xbf16> to vector<16x384xbf16>
    %c0_345 = arith.constant 0 : index
    %c128_346 = arith.constant 128 : index
    %c768_347 = arith.constant 768 : index
    %466 = vector.load %arg10[%c0_345, %c128_346, %c768_347] : memref<2x144x1536xbf16, #tpu.memory_space<vmem>>, vector<1x16x384xbf16>
    %467 = vector.shape_cast %466 : vector<1x16x384xbf16> to vector<16x384xbf16>
    %468 = vector.shape_cast %465 : vector<16x384xbf16> to vector<1x16x384xbf16>
    tpu.vector_store %arg10[%c0_345, %c128_346, %c768_347], %468 {strides = array<i32>} : memref<2x144x1536xbf16, #tpu.memory_space<vmem>>, vector<1x16x384xbf16>,
    %469 = arith.index_cast %9 : i32 to index
    %c5 = arith.constant 5 : index
    %c0_348 = arith.constant 0 : index
    %c0_349 = arith.constant 0 : index
    %470 = vector.load %arg9[%469, %c5, %c0_348, %c0_349] : memref<2x6x16x512xbf16, #tpu.memory_space<vmem>>, vector<1x1x16x512xbf16>
    %471 = vector.shape_cast %470 : vector<1x1x16x512xbf16> to vector<16x512xbf16>
    %472 = vector.extract_strided_slice %471 {offsets = [0, 0], sizes = [16, 384], strides = [1, 1]} : vector<16x512xbf16> to vector<16x384xbf16>
    %c0_350 = arith.constant 0 : index
    %c0_351 = arith.constant 0 : index
    %c1152_352 = arith.constant 1152 : index
    %473 = vector.load %arg10[%c0_350, %c0_351, %c1152_352] : memref<2x144x1536xbf16, #tpu.memory_space<vmem>>, vector<1x16x384xbf16>
    %474 = vector.shape_cast %473 : vector<1x16x384xbf16> to vector<16x384xbf16>
    %475 = vector.shape_cast %472 : vector<16x384xbf16> to vector<1x16x384xbf16>
    tpu.vector_store %arg10[%c0_350, %c0_351, %c1152_352], %475 {strides = array<i32>} : memref<2x144x1536xbf16, #tpu.memory_space<vmem>>, vector<1x16x384xbf16>,
    %476 = vector.extract_strided_slice %471 {offsets = [0, 1], sizes = [16, 384], strides = [1, 1]} : vector<16x512xbf16> to vector<16x384xbf16>
    %c0_353 = arith.constant 0 : index
    %c16_354 = arith.constant 16 : index
    %c1152_355 = arith.constant 1152 : index
    %477 = vector.load %arg10[%c0_353, %c16_354, %c1152_355] : memref<2x144x1536xbf16, #tpu.memory_space<vmem>>, vector<1x16x384xbf16>
    %478 = vector.shape_cast %477 : vector<1x16x384xbf16> to vector<16x384xbf16>
    %479 = vector.shape_cast %476 : vector<16x384xbf16> to vector<1x16x384xbf16>
    tpu.vector_store %arg10[%c0_353, %c16_354, %c1152_355], %479 {strides = array<i32>} : memref<2x144x1536xbf16, #tpu.memory_space<vmem>>, vector<1x16x384xbf16>,
    %480 = vector.extract_strided_slice %471 {offsets = [0, 2], sizes = [16, 384], strides = [1, 1]} : vector<16x512xbf16> to vector<16x384xbf16>
    %c0_356 = arith.constant 0 : index
    %c32_357 = arith.constant 32 : index
    %c1152_358 = arith.constant 1152 : index
    %481 = vector.load %arg10[%c0_356, %c32_357, %c1152_358] : memref<2x144x1536xbf16, #tpu.memory_space<vmem>>, vector<1x16x384xbf16>
    %482 = vector.shape_cast %481 : vector<1x16x384xbf16> to vector<16x384xbf16>
    %483 = vector.shape_cast %480 : vector<16x384xbf16> to vector<1x16x384xbf16>
    tpu.vector_store %arg10[%c0_356, %c32_357, %c1152_358], %483 {strides = array<i32>} : memref<2x144x1536xbf16, #tpu.memory_space<vmem>>, vector<1x16x384xbf16>,
    %484 = vector.extract_strided_slice %471 {offsets = [0, 18], sizes = [16, 384], strides = [1, 1]} : vector<16x512xbf16> to vector<16x384xbf16>
    %c0_359 = arith.constant 0 : index
    %c48_360 = arith.constant 48 : index
    %c1152_361 = arith.constant 1152 : index
    %485 = vector.load %arg10[%c0_359, %c48_360, %c1152_361] : memref<2x144x1536xbf16, #tpu.memory_space<vmem>>, vector<1x16x384xbf16>
    %486 = vector.shape_cast %485 : vector<1x16x384xbf16> to vector<16x384xbf16>
    %487 = vector.shape_cast %484 : vector<16x384xbf16> to vector<1x16x384xbf16>
    tpu.vector_store %arg10[%c0_359, %c48_360, %c1152_361], %487 {strides = array<i32>} : memref<2x144x1536xbf16, #tpu.memory_space<vmem>>, vector<1x16x384xbf16>,
    %488 = vector.extract_strided_slice %471 {offsets = [0, 19], sizes = [16, 384], strides = [1, 1]} : vector<16x512xbf16> to vector<16x384xbf16>
    %c0_362 = arith.constant 0 : index
    %c64_363 = arith.constant 64 : index
    %c1152_364 = arith.constant 1152 : index
    %489 = vector.load %arg10[%c0_362, %c64_363, %c1152_364] : memref<2x144x1536xbf16, #tpu.memory_space<vmem>>, vector<1x16x384xbf16>
    %490 = vector.shape_cast %489 : vector<1x16x384xbf16> to vector<16x384xbf16>
    %491 = vector.shape_cast %488 : vector<16x384xbf16> to vector<1x16x384xbf16>
    tpu.vector_store %arg10[%c0_362, %c64_363, %c1152_364], %491 {strides = array<i32>} : memref<2x144x1536xbf16, #tpu.memory_space<vmem>>, vector<1x16x384xbf16>,
    %492 = vector.extract_strided_slice %471 {offsets = [0, 20], sizes = [16, 384], strides = [1, 1]} : vector<16x512xbf16> to vector<16x384xbf16>
    %c0_365 = arith.constant 0 : index
    %c80_366 = arith.constant 80 : index
    %c1152_367 = arith.constant 1152 : index
    %493 = vector.load %arg10[%c0_365, %c80_366, %c1152_367] : memref<2x144x1536xbf16, #tpu.memory_space<vmem>>, vector<1x16x384xbf16>
    %494 = vector.shape_cast %493 : vector<1x16x384xbf16> to vector<16x384xbf16>
    %495 = vector.shape_cast %492 : vector<16x384xbf16> to vector<1x16x384xbf16>
    tpu.vector_store %arg10[%c0_365, %c80_366, %c1152_367], %495 {strides = array<i32>} : memref<2x144x1536xbf16, #tpu.memory_space<vmem>>, vector<1x16x384xbf16>,
    %496 = vector.extract_strided_slice %471 {offsets = [0, 36], sizes = [16, 384], strides = [1, 1]} : vector<16x512xbf16> to vector<16x384xbf16>
    %c0_368 = arith.constant 0 : index
    %c96_369 = arith.constant 96 : index
    %c1152_370 = arith.constant 1152 : index
    %497 = vector.load %arg10[%c0_368, %c96_369, %c1152_370] : memref<2x144x1536xbf16, #tpu.memory_space<vmem>>, vector<1x16x384xbf16>
    %498 = vector.shape_cast %497 : vector<1x16x384xbf16> to vector<16x384xbf16>
    %499 = vector.shape_cast %496 : vector<16x384xbf16> to vector<1x16x384xbf16>
    tpu.vector_store %arg10[%c0_368, %c96_369, %c1152_370], %499 {strides = array<i32>} : memref<2x144x1536xbf16, #tpu.memory_space<vmem>>, vector<1x16x384xbf16>,
    %500 = vector.extract_strided_slice %471 {offsets = [0, 37], sizes = [16, 384], strides = [1, 1]} : vector<16x512xbf16> to vector<16x384xbf16>
    %c0_371 = arith.constant 0 : index
    %c112_372 = arith.constant 112 : index
    %c1152_373 = arith.constant 1152 : index
    %501 = vector.load %arg10[%c0_371, %c112_372, %c1152_373] : memref<2x144x1536xbf16, #tpu.memory_space<vmem>>, vector<1x16x384xbf16>
    %502 = vector.shape_cast %501 : vector<1x16x384xbf16> to vector<16x384xbf16>
    %503 = vector.shape_cast %500 : vector<16x384xbf16> to vector<1x16x384xbf16>
    tpu.vector_store %arg10[%c0_371, %c112_372, %c1152_373], %503 {strides = array<i32>} : memref<2x144x1536xbf16, #tpu.memory_space<vmem>>, vector<1x16x384xbf16>,
    %504 = vector.extract_strided_slice %471 {offsets = [0, 38], sizes = [16, 384], strides = [1, 1]} : vector<16x512xbf16> to vector<16x384xbf16>
    %c0_374 = arith.constant 0 : index
    %c128_375 = arith.constant 128 : index
    %c1152_376 = arith.constant 1152 : index
    %505 = vector.load %arg10[%c0_374, %c128_375, %c1152_376] : memref<2x144x1536xbf16, #tpu.memory_space<vmem>>, vector<1x16x384xbf16>
    %506 = vector.shape_cast %505 : vector<1x16x384xbf16> to vector<16x384xbf16>
    %507 = vector.shape_cast %504 : vector<16x384xbf16> to vector<1x16x384xbf16>
    tpu.vector_store %arg10[%c0_374, %c128_375, %c1152_376], %507 {strides = array<i32>} : memref<2x144x1536xbf16, #tpu.memory_space<vmem>>, vector<1x16x384xbf16>,
    %c2_377 = arith.constant 2 : index
    %c0_378 = arith.constant 0 : index
    %c0_379 = arith.constant 0 : index
    %508 = vector.load %arg3[%c2_377, %c0_378, %c0_379] : memref<3x16x144xbf16, #tpu.memory_space<vmem>>, vector<1x16x144xbf16>
    %509 = vector.shape_cast %508 : vector<1x16x144xbf16> to vector<16x144xbf16>
    %c0_380 = arith.constant 0 : index
    %c0_381 = arith.constant 0 : index
    %c0_382 = arith.constant 0 : index
    %510 = vector.load %arg10[%c0_380, %c0_381, %c0_382] : memref<2x144x1536xbf16, #tpu.memory_space<vmem>>, vector<1x144x1536xbf16>
    %511 = vector.shape_cast %510 : vector<1x144x1536xbf16> to vector<144x1536xbf16>
    %cst_383 = arith.constant dense<0.000000e+00> : vector<16x1536xf32>
    %512 = tpu.matmul %509, %511, %cst_383 {dimension_numbers = #tpu.dot_dimension_numbers<[1], [0], [0], [1], [0, 0, 1, 1], [], []>} : vector<16x144xbf16>, vector<144x1536xbf16>, vector<16x1536xf32> -> vector<16x1536xf32>
    %c0_384 = arith.constant 0 : index
    %c0_385 = arith.constant 0 : index
    %513 = vector.load %arg11[%c0_384, %c0_385] : memref<16x1536xf32, #tpu.memory_space<vmem>>, vector<16x1536xf32>
    %514 = arith.addf %513, %512 : vector<16x1536xf32>
    %c0_386 = arith.constant 0 : index
    %c0_387 = arith.constant 0 : index
    %515 = vector.load %arg11[%c0_386, %c0_387] : memref<16x1536xf32, #tpu.memory_space<vmem>>, vector<16x1536xf32>
    tpu.vector_store %arg11[%c0_386, %c0_387], %514 {strides = array<i32>} : memref<16x1536xf32, #tpu.memory_space<vmem>>, vector<16x1536xf32>,
    %c0_388 = arith.constant 0 : index
    %c0_389 = arith.constant 0 : index
    %516 = vector.load %arg5[%c0_388, %c0_389] : memref<1x384xf32, #tpu.memory_space<vmem>>, vector<1x384xf32>
    %cst_390 = arith.constant 0.000000e+00 : f32
    %517 = vector.broadcast %cst_390 : f32 to vector<16x1xf32>
    %cst_391 = arith.constant 0.000000e+00 : f32
    %518 = vector.broadcast %cst_391 : f32 to vector<16x1xf32>
    %c0_392 = arith.constant 0 : index
    %c0_393 = arith.constant 0 : index
    %519 = vector.load %arg11[%c0_392, %c0_393] : memref<16x1536xf32, #tpu.memory_space<vmem>>, vector<16x384xf32>
    %520 = arith.truncf %519 : vector<16x384xf32> to vector<16x384xbf16>
    %c0_394 = arith.constant 0 : index
    %c0_395 = arith.constant 0 : index
    %c0_396 = arith.constant 0 : index
    %c0_397 = arith.constant 0 : index
    %521 = vector.load %arg6[%c0_394, %c0_395, %c0_396, %c0_397] : memref<1x4x16x384xbf16, #tpu.memory_space<vmem>>, vector<1x1x16x384xbf16>
    %522 = vector.shape_cast %521 : vector<1x1x16x384xbf16> to vector<16x384xbf16>
    %523 = vector.shape_cast %520 : vector<16x384xbf16> to vector<1x1x16x384xbf16>
    tpu.vector_store %arg6[%c0_394, %c0_395, %c0_396, %c0_397], %523 {strides = array<i32>} : memref<1x4x16x384xbf16, #tpu.memory_space<vmem>>, vector<1x1x16x384xbf16>,
    %524 = vector.broadcast %516 : vector<1x384xf32> to vector<16x384xf32>
    %525 = arith.mulf %519, %524 : vector<16x384xf32>
    %cst_398 = arith.constant dense<0.000000e+00> : vector<16xf32>
    %526 = vector.multi_reduction <add>, %525, %cst_398 [1] : vector<16x384xf32> to vector<16xf32>
    %527 = vector.shape_cast %526 : vector<16xf32> to vector<16x1xf32>
    %528 = arith.addf %517, %527 : vector<16x1xf32>
    %529 = arith.mulf %525, %525 : vector<16x384xf32>
    %cst_399 = arith.constant dense<0.000000e+00> : vector<16xf32>
    %530 = vector.multi_reduction <add>, %529, %cst_399 [1] : vector<16x384xf32> to vector<16xf32>
    %531 = vector.shape_cast %530 : vector<16xf32> to vector<16x1xf32>
    %532 = arith.addf %518, %531 : vector<16x1xf32>
    %c0_400 = arith.constant 0 : index
    %c384_401 = arith.constant 384 : index
    %533 = vector.load %arg11[%c0_400, %c384_401] : memref<16x1536xf32, #tpu.memory_space<vmem>>, vector<16x384xf32>
    %534 = arith.truncf %533 : vector<16x384xf32> to vector<16x384xbf16>
    %c0_402 = arith.constant 0 : index
    %c1_403 = arith.constant 1 : index
    %c0_404 = arith.constant 0 : index
    %c0_405 = arith.constant 0 : index
    %535 = vector.load %arg6[%c0_402, %c1_403, %c0_404, %c0_405] : memref<1x4x16x384xbf16, #tpu.memory_space<vmem>>, vector<1x1x16x384xbf16>
    %536 = vector.shape_cast %535 : vector<1x1x16x384xbf16> to vector<16x384xbf16>
    %537 = vector.shape_cast %534 : vector<16x384xbf16> to vector<1x1x16x384xbf16>
    tpu.vector_store %arg6[%c0_402, %c1_403, %c0_404, %c0_405], %537 {strides = array<i32>} : memref<1x4x16x384xbf16, #tpu.memory_space<vmem>>, vector<1x1x16x384xbf16>,
    %538 = vector.broadcast %516 : vector<1x384xf32> to vector<16x384xf32>
    %539 = arith.mulf %533, %538 : vector<16x384xf32>
    %cst_406 = arith.constant dense<0.000000e+00> : vector<16xf32>
    %540 = vector.multi_reduction <add>, %539, %cst_406 [1] : vector<16x384xf32> to vector<16xf32>
    %541 = vector.shape_cast %540 : vector<16xf32> to vector<16x1xf32>
    %542 = arith.addf %528, %541 : vector<16x1xf32>
    %543 = arith.mulf %539, %539 : vector<16x384xf32>
    %cst_407 = arith.constant dense<0.000000e+00> : vector<16xf32>
    %544 = vector.multi_reduction <add>, %543, %cst_407 [1] : vector<16x384xf32> to vector<16xf32>
    %545 = vector.shape_cast %544 : vector<16xf32> to vector<16x1xf32>
    %546 = arith.addf %532, %545 : vector<16x1xf32>
    %c0_408 = arith.constant 0 : index
    %c768_409 = arith.constant 768 : index
    %547 = vector.load %arg11[%c0_408, %c768_409] : memref<16x1536xf32, #tpu.memory_space<vmem>>, vector<16x384xf32>
    %548 = arith.truncf %547 : vector<16x384xf32> to vector<16x384xbf16>
    %c0_410 = arith.constant 0 : index
    %c2_411 = arith.constant 2 : index
    %c0_412 = arith.constant 0 : index
    %c0_413 = arith.constant 0 : index
    %549 = vector.load %arg6[%c0_410, %c2_411, %c0_412, %c0_413] : memref<1x4x16x384xbf16, #tpu.memory_space<vmem>>, vector<1x1x16x384xbf16>
    %550 = vector.shape_cast %549 : vector<1x1x16x384xbf16> to vector<16x384xbf16>
    %551 = vector.shape_cast %548 : vector<16x384xbf16> to vector<1x1x16x384xbf16>
    tpu.vector_store %arg6[%c0_410, %c2_411, %c0_412, %c0_413], %551 {strides = array<i32>} : memref<1x4x16x384xbf16, #tpu.memory_space<vmem>>, vector<1x1x16x384xbf16>,
    %552 = vector.broadcast %516 : vector<1x384xf32> to vector<16x384xf32>
    %553 = arith.mulf %547, %552 : vector<16x384xf32>
    %cst_414 = arith.constant dense<0.000000e+00> : vector<16xf32>
    %554 = vector.multi_reduction <add>, %553, %cst_414 [1] : vector<16x384xf32> to vector<16xf32>
    %555 = vector.shape_cast %554 : vector<16xf32> to vector<16x1xf32>
    %556 = arith.addf %542, %555 : vector<16x1xf32>
    %557 = arith.mulf %553, %553 : vector<16x384xf32>
    %cst_415 = arith.constant dense<0.000000e+00> : vector<16xf32>
    %558 = vector.multi_reduction <add>, %557, %cst_415 [1] : vector<16x384xf32> to vector<16xf32>
    %559 = vector.shape_cast %558 : vector<16xf32> to vector<16x1xf32>
    %560 = arith.addf %546, %559 : vector<16x1xf32>
    %c0_416 = arith.constant 0 : index
    %c1152_417 = arith.constant 1152 : index
    %561 = vector.load %arg11[%c0_416, %c1152_417] : memref<16x1536xf32, #tpu.memory_space<vmem>>, vector<16x384xf32>
    %562 = arith.truncf %561 : vector<16x384xf32> to vector<16x384xbf16>
    %c0_418 = arith.constant 0 : index
    %c3_419 = arith.constant 3 : index
    %c0_420 = arith.constant 0 : index
    %c0_421 = arith.constant 0 : index
    %563 = vector.load %arg6[%c0_418, %c3_419, %c0_420, %c0_421] : memref<1x4x16x384xbf16, #tpu.memory_space<vmem>>, vector<1x1x16x384xbf16>
    %564 = vector.shape_cast %563 : vector<1x1x16x384xbf16> to vector<16x384xbf16>
    %565 = vector.shape_cast %562 : vector<16x384xbf16> to vector<1x1x16x384xbf16>
    tpu.vector_store %arg6[%c0_418, %c3_419, %c0_420, %c0_421], %565 {strides = array<i32>} : memref<1x4x16x384xbf16, #tpu.memory_space<vmem>>, vector<1x1x16x384xbf16>,
    %566 = vector.broadcast %516 : vector<1x384xf32> to vector<16x384xf32>
    %567 = arith.mulf %561, %566 : vector<16x384xf32>
    %cst_422 = arith.constant dense<0.000000e+00> : vector<16xf32>
    %568 = vector.multi_reduction <add>, %567, %cst_422 [1] : vector<16x384xf32> to vector<16xf32>
    %569 = vector.shape_cast %568 : vector<16xf32> to vector<16x1xf32>
    %570 = arith.addf %556, %569 : vector<16x1xf32>
    %571 = arith.mulf %567, %567 : vector<16x384xf32>
    %cst_423 = arith.constant dense<0.000000e+00> : vector<16xf32>
    %572 = vector.multi_reduction <add>, %571, %cst_423 [1] : vector<16x384xf32> to vector<16xf32>
    %573 = vector.shape_cast %572 : vector<16xf32> to vector<16x1xf32>
    %574 = arith.addf %560, %573 : vector<16x1xf32>
    %c0_424 = arith.constant 0 : index
    %c0_425 = arith.constant 0 : index
    %575 = vector.load %arg12[%c0_424, %c0_425] : memref<16x1xf32, #tpu.memory_space<vmem>>, vector<16x1xf32>
    %576 = arith.addf %575, %570 : vector<16x1xf32>
    %c0_426 = arith.constant 0 : index
    %c0_427 = arith.constant 0 : index
    %577 = vector.load %arg12[%c0_426, %c0_427] : memref<16x1xf32, #tpu.memory_space<vmem>>, vector<16x1xf32>
    tpu.vector_store %arg12[%c0_426, %c0_427], %576 {strides = array<i32>} : memref<16x1xf32, #tpu.memory_space<vmem>>, vector<16x1xf32>,
    %c0_428 = arith.constant 0 : index
    %c0_429 = arith.constant 0 : index
    %578 = vector.load %arg13[%c0_428, %c0_429] : memref<16x1xf32, #tpu.memory_space<vmem>>, vector<16x1xf32>
    %579 = arith.addf %578, %574 : vector<16x1xf32>
    %c0_430 = arith.constant 0 : index
    %c0_431 = arith.constant 0 : index
    %580 = vector.load %arg13[%c0_430, %c0_431] : memref<16x1xf32, #tpu.memory_space<vmem>>, vector<16x1xf32>
    tpu.vector_store %arg13[%c0_430, %c0_431], %579 {strides = array<i32>} : memref<16x1xf32, #tpu.memory_space<vmem>>, vector<16x1xf32>,
    %c3_i32 = arith.constant 3 : i32
    %581 = arith.cmpi eq, %arg1, %c3_i32 : i32
    %582 = arith.extui %581 : i1 to i32
    %c0_i32_432 = arith.constant 0 : i32
    %583 = arith.cmpi ne, %582, %c0_i32_432 : i32
    scf.if %583 {
      %c0_433 = arith.constant 0 : index
      %c0_434 = arith.constant 0 : index
      %584 = vector.load %arg12[%c0_433, %c0_434] : memref<16x1xf32, #tpu.memory_space<vmem>>, vector<16x1xf32>
      %cst_435 = arith.constant 2.44140625E-4 : f32
      %585 = vector.broadcast %cst_435 : f32 to vector<16x1xf32>
      %586 = arith.mulf %584, %585 : vector<16x1xf32>
      %c0_436 = arith.constant 0 : index
      %c0_437 = arith.constant 0 : index
      %587 = vector.load %arg13[%c0_436, %c0_437] : memref<16x1xf32, #tpu.memory_space<vmem>>, vector<16x1xf32>
      %cst_438 = arith.constant 2.44140625E-4 : f32
      %588 = vector.broadcast %cst_438 : f32 to vector<16x1xf32>
      %589 = arith.mulf %587, %588 : vector<16x1xf32>
      %590 = arith.mulf %586, %586 : vector<16x1xf32>
      %591 = arith.subf %589, %590 : vector<16x1xf32>
      %c0_439 = arith.constant 0 : index
      %c0_440 = arith.constant 0 : index
      %c0_441 = arith.constant 0 : index
      %592 = vector.load %arg7[%c0_439, %c0_440, %c0_441] : memref<1x16x1xf32, #tpu.memory_space<vmem>>, vector<1x16x1xf32>
      %593 = vector.shape_cast %592 : vector<1x16x1xf32> to vector<16x1xf32>
      %594 = vector.shape_cast %586 : vector<16x1xf32> to vector<1x16x1xf32>
      tpu.vector_store %arg7[%c0_439, %c0_440, %c0_441], %594 {strides = array<i32>} : memref<1x16x1xf32, #tpu.memory_space<vmem>>, vector<1x16x1xf32>,
      %cst_442 = arith.constant 9.99999974E-6 : f32
      %595 = vector.broadcast %cst_442 : f32 to vector<16x1xf32>
      %596 = arith.addf %591, %595 : vector<16x1xf32>
      %597 = math.rsqrt %596 : vector<16x1xf32>
      %c0_443 = arith.constant 0 : index
      %c0_444 = arith.constant 0 : index
      %c0_445 = arith.constant 0 : index
      %598 = vector.load %arg8[%c0_443, %c0_444, %c0_445] : memref<1x16x1xf32, #tpu.memory_space<vmem>>, vector<1x16x1xf32>
      %599 = vector.shape_cast %598 : vector<1x16x1xf32> to vector<16x1xf32>
      %600 = vector.shape_cast %597 : vector<16x1xf32> to vector<1x16x1xf32>
      tpu.vector_store %arg8[%c0_443, %c0_444, %c0_445], %600 {strides = array<i32>} : memref<1x16x1xf32, #tpu.memory_space<vmem>>, vector<1x16x1xf32>,
    } else {
    }
    return
  }
  func.func @transform_1(%arg0: i32, %arg1: i32) -> (i32, i32, i32) {
    %c0_i32 = arith.constant 0 : i32
    %c0_i32_0 = arith.constant 0 : i32
    %c0_i32_1 = arith.constant 0 : i32
    %c0_i32_2 = arith.constant 0 : i32
    return %c0_i32, %c0_i32_0, %c0_i32_1 : i32, i32, i32
  }
  func.func @transform_2(%arg0: i32, %arg1: i32) -> (i32, i32) {
    %c0_i32 = arith.constant 0 : i32
    %c0_i32_0 = arith.constant 0 : i32
    %c0_i32_1 = arith.constant 0 : i32
    return %c0_i32, %c0_i32_0 : i32, i32
  }
  func.func @transform_3(%arg0: i32, %arg1: i32) -> (i32, i32) {
    %c0_i32 = arith.constant 0 : i32
    %c0_i32_0 = arith.constant 0 : i32
    %c0_i32_1 = arith.constant 0 : i32
    return %c0_i32, %c0_i32_0 : i32, i32
  }
  func.func @transform_4(%arg0: i32, %arg1: i32) -> (i32, i32, i32, i32) {
    %c0_i32 = arith.constant 0 : i32
    %c0_i32_0 = arith.constant 0 : i32
    %c0_i32_1 = arith.constant 0 : i32
    return %arg0, %arg1, %c0_i32, %c0_i32_0 : i32, i32, i32, i32
  }
  func.func @transform_5(%arg0: i32, %arg1: i32) -> (i32, i32, i32) {
    %c0_i32 = arith.constant 0 : i32
    %c0_i32_0 = arith.constant 0 : i32
    %c0_i32_1 = arith.constant 0 : i32
    return %arg0, %c0_i32, %c0_i32_0 : i32, i32, i32
  }
  func.func @transform_6(%arg0: i32, %arg1: i32) -> (i32, i32, i32) {
    %c0_i32 = arith.constant 0 : i32
    %c0_i32_0 = arith.constant 0 : i32
    %c0_i32_1 = arith.constant 0 : i32
    return %arg0, %c0_i32, %c0_i32_0 : i32, i32, i32
  }
}

module attributes {stable_mosaic.version = 11 : i64} {
  func.func @_norm_lrelu_kernel(%arg0: i32, %arg1: i32, %arg2: memref<1x16x1xf32, #tpu.memory_space<vmem>>, %arg3: memref<1x16x1xf32, #tpu.memory_space<vmem>>, %arg4: memref<1x4x16x384xbf16, #tpu.memory_space<vmem>>, %arg5: memref<1x4x16x384xf32, #tpu.memory_space<vmem>>) attributes {dimension_semantics = [#tpu.dimension_semantics<parallel>, #tpu.dimension_semantics<parallel>], iteration_bounds = array<i64: 2, 4>, scalar_prefetch = 0 : i64, scratch_operands = 0 : i64, tpu.core_type = #tpu.core_type<tc>, window_params = [{transform_indices = @transform_0, window_bounds = array<i64: 1, 16, 1>}, {transform_indices = @transform_1, window_bounds = array<i64: 1, 16, 1>}, {transform_indices = @transform_2, window_bounds = array<i64: 1, 4, 16, 384>}, {transform_indices = @transform_3, window_bounds = array<i64: 1, 4, 16, 384>}]} {
    %c0 = arith.constant 0 : index
    %c0_0 = arith.constant 0 : index
    %c0_1 = arith.constant 0 : index
    %0 = vector.load %arg2[%c0, %c0_0, %c0_1] : memref<1x16x1xf32, #tpu.memory_space<vmem>>, vector<1x16x1xf32>
    %1 = vector.shape_cast %0 : vector<1x16x1xf32> to vector<16x1xf32>
    %c0_2 = arith.constant 0 : index
    %c0_3 = arith.constant 0 : index
    %c0_4 = arith.constant 0 : index
    %2 = vector.load %arg3[%c0_2, %c0_3, %c0_4] : memref<1x16x1xf32, #tpu.memory_space<vmem>>, vector<1x16x1xf32>
    %3 = vector.shape_cast %2 : vector<1x16x1xf32> to vector<16x1xf32>
    %c0_5 = arith.constant 0 : index
    %c0_6 = arith.constant 0 : index
    %c0_7 = arith.constant 0 : index
    %c0_8 = arith.constant 0 : index
    %4 = vector.load %arg4[%c0_5, %c0_6, %c0_7, %c0_8] : memref<1x4x16x384xbf16, #tpu.memory_space<vmem>>, vector<1x1x16x384xbf16>
    %5 = vector.shape_cast %4 : vector<1x1x16x384xbf16> to vector<16x384xbf16>
    %6 = arith.extf %5 : vector<16x384xbf16> to vector<16x384xf32>
    %7 = vector.broadcast %1 : vector<16x1xf32> to vector<16x384xf32>
    %8 = arith.subf %6, %7 : vector<16x384xf32>
    %9 = vector.broadcast %3 : vector<16x1xf32> to vector<16x384xf32>
    %10 = arith.mulf %8, %9 : vector<16x384xf32>
    %cst = arith.constant 0.000000e+00 : f32
    %11 = vector.broadcast %cst : f32 to vector<16x384xf32>
    %12 = arith.cmpf oge, %10, %11 : vector<16x384xf32>
    %cst_9 = arith.constant 2.000000e-01 : f32
    %13 = vector.broadcast %cst_9 : f32 to vector<16x384xf32>
    %14 = arith.mulf %13, %10 : vector<16x384xf32>
    %15 = arith.select %12, %10, %14 : vector<16x384xi1>, vector<16x384xf32>
    %c0_10 = arith.constant 0 : index
    %c0_11 = arith.constant 0 : index
    %c0_12 = arith.constant 0 : index
    %c0_13 = arith.constant 0 : index
    %16 = vector.load %arg5[%c0_10, %c0_11, %c0_12, %c0_13] : memref<1x4x16x384xf32, #tpu.memory_space<vmem>>, vector<1x1x16x384xf32>
    %17 = vector.shape_cast %16 : vector<1x1x16x384xf32> to vector<16x384xf32>
    %18 = vector.shape_cast %15 : vector<16x384xf32> to vector<1x1x16x384xf32>
    tpu.vector_store %arg5[%c0_10, %c0_11, %c0_12, %c0_13], %18 {strides = array<i32>} : memref<1x4x16x384xf32, #tpu.memory_space<vmem>>, vector<1x1x16x384xf32>,
    %c0_14 = arith.constant 0 : index
    %c1 = arith.constant 1 : index
    %c0_15 = arith.constant 0 : index
    %c0_16 = arith.constant 0 : index
    %19 = vector.load %arg4[%c0_14, %c1, %c0_15, %c0_16] : memref<1x4x16x384xbf16, #tpu.memory_space<vmem>>, vector<1x1x16x384xbf16>
    %20 = vector.shape_cast %19 : vector<1x1x16x384xbf16> to vector<16x384xbf16>
    %21 = arith.extf %20 : vector<16x384xbf16> to vector<16x384xf32>
    %22 = vector.broadcast %1 : vector<16x1xf32> to vector<16x384xf32>
    %23 = arith.subf %21, %22 : vector<16x384xf32>
    %24 = vector.broadcast %3 : vector<16x1xf32> to vector<16x384xf32>
    %25 = arith.mulf %23, %24 : vector<16x384xf32>
    %cst_17 = arith.constant 0.000000e+00 : f32
    %26 = vector.broadcast %cst_17 : f32 to vector<16x384xf32>
    %27 = arith.cmpf oge, %25, %26 : vector<16x384xf32>
    %cst_18 = arith.constant 2.000000e-01 : f32
    %28 = vector.broadcast %cst_18 : f32 to vector<16x384xf32>
    %29 = arith.mulf %28, %25 : vector<16x384xf32>
    %30 = arith.select %27, %25, %29 : vector<16x384xi1>, vector<16x384xf32>
    %c0_19 = arith.constant 0 : index
    %c1_20 = arith.constant 1 : index
    %c0_21 = arith.constant 0 : index
    %c0_22 = arith.constant 0 : index
    %31 = vector.load %arg5[%c0_19, %c1_20, %c0_21, %c0_22] : memref<1x4x16x384xf32, #tpu.memory_space<vmem>>, vector<1x1x16x384xf32>
    %32 = vector.shape_cast %31 : vector<1x1x16x384xf32> to vector<16x384xf32>
    %33 = vector.shape_cast %30 : vector<16x384xf32> to vector<1x1x16x384xf32>
    tpu.vector_store %arg5[%c0_19, %c1_20, %c0_21, %c0_22], %33 {strides = array<i32>} : memref<1x4x16x384xf32, #tpu.memory_space<vmem>>, vector<1x1x16x384xf32>,
    %c0_23 = arith.constant 0 : index
    %c2 = arith.constant 2 : index
    %c0_24 = arith.constant 0 : index
    %c0_25 = arith.constant 0 : index
    %34 = vector.load %arg4[%c0_23, %c2, %c0_24, %c0_25] : memref<1x4x16x384xbf16, #tpu.memory_space<vmem>>, vector<1x1x16x384xbf16>
    %35 = vector.shape_cast %34 : vector<1x1x16x384xbf16> to vector<16x384xbf16>
    %36 = arith.extf %35 : vector<16x384xbf16> to vector<16x384xf32>
    %37 = vector.broadcast %1 : vector<16x1xf32> to vector<16x384xf32>
    %38 = arith.subf %36, %37 : vector<16x384xf32>
    %39 = vector.broadcast %3 : vector<16x1xf32> to vector<16x384xf32>
    %40 = arith.mulf %38, %39 : vector<16x384xf32>
    %cst_26 = arith.constant 0.000000e+00 : f32
    %41 = vector.broadcast %cst_26 : f32 to vector<16x384xf32>
    %42 = arith.cmpf oge, %40, %41 : vector<16x384xf32>
    %cst_27 = arith.constant 2.000000e-01 : f32
    %43 = vector.broadcast %cst_27 : f32 to vector<16x384xf32>
    %44 = arith.mulf %43, %40 : vector<16x384xf32>
    %45 = arith.select %42, %40, %44 : vector<16x384xi1>, vector<16x384xf32>
    %c0_28 = arith.constant 0 : index
    %c2_29 = arith.constant 2 : index
    %c0_30 = arith.constant 0 : index
    %c0_31 = arith.constant 0 : index
    %46 = vector.load %arg5[%c0_28, %c2_29, %c0_30, %c0_31] : memref<1x4x16x384xf32, #tpu.memory_space<vmem>>, vector<1x1x16x384xf32>
    %47 = vector.shape_cast %46 : vector<1x1x16x384xf32> to vector<16x384xf32>
    %48 = vector.shape_cast %45 : vector<16x384xf32> to vector<1x1x16x384xf32>
    tpu.vector_store %arg5[%c0_28, %c2_29, %c0_30, %c0_31], %48 {strides = array<i32>} : memref<1x4x16x384xf32, #tpu.memory_space<vmem>>, vector<1x1x16x384xf32>,
    %c0_32 = arith.constant 0 : index
    %c3 = arith.constant 3 : index
    %c0_33 = arith.constant 0 : index
    %c0_34 = arith.constant 0 : index
    %49 = vector.load %arg4[%c0_32, %c3, %c0_33, %c0_34] : memref<1x4x16x384xbf16, #tpu.memory_space<vmem>>, vector<1x1x16x384xbf16>
    %50 = vector.shape_cast %49 : vector<1x1x16x384xbf16> to vector<16x384xbf16>
    %51 = arith.extf %50 : vector<16x384xbf16> to vector<16x384xf32>
    %52 = vector.broadcast %1 : vector<16x1xf32> to vector<16x384xf32>
    %53 = arith.subf %51, %52 : vector<16x384xf32>
    %54 = vector.broadcast %3 : vector<16x1xf32> to vector<16x384xf32>
    %55 = arith.mulf %53, %54 : vector<16x384xf32>
    %cst_35 = arith.constant 0.000000e+00 : f32
    %56 = vector.broadcast %cst_35 : f32 to vector<16x384xf32>
    %57 = arith.cmpf oge, %55, %56 : vector<16x384xf32>
    %cst_36 = arith.constant 2.000000e-01 : f32
    %58 = vector.broadcast %cst_36 : f32 to vector<16x384xf32>
    %59 = arith.mulf %58, %55 : vector<16x384xf32>
    %60 = arith.select %57, %55, %59 : vector<16x384xi1>, vector<16x384xf32>
    %c0_37 = arith.constant 0 : index
    %c3_38 = arith.constant 3 : index
    %c0_39 = arith.constant 0 : index
    %c0_40 = arith.constant 0 : index
    %61 = vector.load %arg5[%c0_37, %c3_38, %c0_39, %c0_40] : memref<1x4x16x384xf32, #tpu.memory_space<vmem>>, vector<1x1x16x384xf32>
    %62 = vector.shape_cast %61 : vector<1x1x16x384xf32> to vector<16x384xf32>
    %63 = vector.shape_cast %60 : vector<16x384xf32> to vector<1x1x16x384xf32>
    tpu.vector_store %arg5[%c0_37, %c3_38, %c0_39, %c0_40], %63 {strides = array<i32>} : memref<1x4x16x384xf32, #tpu.memory_space<vmem>>, vector<1x1x16x384xf32>,
    return
  }
  func.func @transform_0(%arg0: i32, %arg1: i32) -> (i32, i32, i32) {
    %c0_i32 = arith.constant 0 : i32
    %c0_i32_0 = arith.constant 0 : i32
    %c0_i32_1 = arith.constant 0 : i32
    return %arg0, %c0_i32, %c0_i32_0 : i32, i32, i32
  }
  func.func @transform_1(%arg0: i32, %arg1: i32) -> (i32, i32, i32) {
    %c0_i32 = arith.constant 0 : i32
    %c0_i32_0 = arith.constant 0 : i32
    %c0_i32_1 = arith.constant 0 : i32
    return %arg0, %c0_i32, %c0_i32_0 : i32, i32, i32
  }
  func.func @transform_2(%arg0: i32, %arg1: i32) -> (i32, i32, i32, i32) {
    %c0_i32 = arith.constant 0 : i32
    %c0_i32_0 = arith.constant 0 : i32
    %c0_i32_1 = arith.constant 0 : i32
    return %arg0, %arg1, %c0_i32, %c0_i32_0 : i32, i32, i32, i32
  }
  func.func @transform_3(%arg0: i32, %arg1: i32) -> (i32, i32, i32, i32) {
    %c0_i32 = arith.constant 0 : i32
    %c0_i32_0 = arith.constant 0 : i32
    %c0_i32_1 = arith.constant 0 : i32
    return %arg0, %arg1, %c0_i32, %c0_i32_0 : i32, i32, i32, i32
  }
}

</mosaic_0001>

<bundles_post_ra>
// kernel: conv3d_block.3
= control target key start
LH: loop header
LB: loop body
LE: loop exit
PB: predicated region body
PF: predicated region fallthrough
CT: control target
= control target key end

     0   :  { %s745_s12 = smov 0   ;;  %s747_s13 = smov 0   ;;  %s925_s0 = inlined_call_operand.vmem [shape: f32[2,16,1], index: 0, kind: input, shape index: {}]   ;;  %s926_s1 = inlined_call_operand.vmem [shape: f32[2,16,1], index: 1, kind: input, shape index: {}]   ;;  %s927_s2 = inlined_call_operand.vmem [shape: bf16[2,16,16,384], index: 2, kind: input, shape index: {}]   ;;  %s928_s3 = inlined_call_operand.vmem [shape: f32[2,16,16,384], index: 3, kind: output, shape index: {}]  }
   0x1   :  { %s749_s14 = smov 0   ;;  %s751_s15 = smov 0  }
   0x2   :  { %s753_s16 = smov 0  }
   0x3 LB: > { %s22_s17 = sadd.s32 1, %s714_s14  ;;  %s25_s18 = sadd.s32 1, %s718_s15  ;;  %s722_s16 = sphi %s753_s16, %s13_s16   ;;  %s718_s15 = sphi %s751_s15, %s932_s15   ;;  %s714_s14 = sphi %s749_s14, %s931_s14   ;;  %s710_s13 = sphi %s747_s13, %s930_s13   ;;  %s706_s12 = sphi %s745_s12, %s929_s12  }
   0x4   : > { %p23_p0 = scmp.ge.s32.totalorder %s22_s17, 4  ;;  %p596_p1 = scmp.ge.s32.totalorder %s722_s16, 1 }
   0x5   : > { %p179_p2 = scmp.lt.s32.totalorder %s722_s16, 9 }
   0x6   : > { %s934_s17 = smov (%p23_p0, %s22_s17), 0  ;;  %s936_s18 = smov (!%p23_p0, %s25_s18), %s718_s15 }
   0x7   : > { %p180_p3 = pnand %p596_p1, %p179_p2  ;;  %p27_p4 = scmp.ge.s32.totalorder %s936_s18, 2 }
   0x8   : > { %p223_p5 = scmp.lt.s32.totalorder (!%p180_p3), %s710_s13, 1  ;;  %v724_v0 = vmov (!%p180_p3), 0   ;;  %s601_s26 = sshll.u32 (!%p180_p3), %s706_s12, 2 }
   0x9   : > { %s938_s18 = smov (%p27_p4, %s936_s18), 0  ;;  %183 = sbr.rel (%p180_p3) target bundleno = 183 (0xb7), region = 32 }
   0xa   : > { %683 = vset.pattern.permute.xlu1 (!%p180_p3), %v724_v0  ;;  %682 = vset.pattern.permute.xlu0 (!%p180_p3), %v724_v0  ;;  %p236_p6 = scmp.lt.s32.totalorder (!%p180_p3), %s601_s26, 15 }
  0x10   : > { %s940_s13 = smov (!%p223_p5, %s710_s13), 1  ;;  %s942_s26 = smov (!%p236_p6, %s601_s26), 15 }
  0x11   : > { %s637_s19 = sshll.u32 %s940_s13, 4  ;;  %s640_s27 = smul.u32 96, %s940_s13 }
  0x12   : > { %s232_s22 = scalar_lea.vmem %s926_s1, %s637_s19  ;;  %s227_s25 = scalar_lea.vmem %s925_s0, %s637_s19 }
  0x13   : > { %v257_v1 = vld [vmem:[%s232_s22] sm:$0xff]  ;;  %v258_v3 = vld [vmem:[%s232_s22 + $0x8] sm:$0xff]  ;;  %s639_s28 = smul.u32 6, %s942_s26 }
  0x14   : > { %287 = vperm.xlu1 %683, %v257_v1   ;;  %v255_v2 = vld [vmem:[%s227_s25] sm:$0xff]  ;;  %v256_v4 = vld [vmem:[%s227_s25 + $0x8] sm:$0xff] }
  0x15   : > { %271 = vperm.xlu0 %682, %v255_v2   ;;  %s784_s29 = sadd.s32 %s640_s27, %s639_s28 }
  0x16   : > { %s602_s30 = sshll.u32 %s784_s29, 2  ;;  %s604_s7 = sshll.u32 %s784_s29, 3 }
  0x17   : > { %s242_s6 = scalar_lea.vmem %s927_s2, %s602_s30  ;;  %s826_s10 = scalar_lea.vmem %s928_s3, %s604_s7 }
  0x18   : > { %292 = vperm.xlu1 %683, %v258_v3   ;;  %v259_v5 = vld [vmem:[%s242_s6] sm:$0xff]  ;;  %v605_v7 = vld [vmem:[%s242_s6 + $0x18] sm:$0xff]  ;;  %v615_v8 = vld [vmem:[%s242_s6 + $0x30] sm:$0xff] }
  0x19   : > { %276 = vperm.xlu0 %682, %v256_v4   ;;  %v260_v6 = vld [vmem:[%s242_s6 + $0x8] ss:$24 sps:$4 sm:$0xff]   ;;  %v790_v9 = vld [vmem:[%s242_s6 + $0x38] ss:$24 sps:$4 sm:$0xff]   ;;  %v263_v11 = vunpack.c.l.bf16 %v259_v5  ;;  %v264_v12 = vunpack.c.h.bf16 %v259_v5  ;;  %v330_v14 = vunpack.c.l.bf16 %v605_v7  ;;  %v796_v16 = vld [vmem:[%s242_s6 + $0x14] ss:$24 sps:$4 sm:$0xff]   ;;  %v331_v18 = vunpack.c.h.bf16 %v605_v7 }
  0x1a   : > { %v792_v10 = vld [vmem:[%s242_s6 + $0x48] sm:$0xff]  ;;  %v265_v13 = vunpack.c.l.bf16 %v260_v6  ;;  %v332_v19 = vunpack.c.h.bf16 %v260_v6  ;;  %v378_v20 = vunpack.c.l.bf16 %v615_v8  ;;  %v379_v21 = vunpack.c.h.bf16 %v615_v8  ;;  %v800_v22 = vld [vmem:[%s242_s6 + $0x3c] sm:$0xff]  ;;  %v808_v28 = vld [vmem:[%s242_s6 + $0x54] sm:$0xff] }
  0x1b   : > { %v794_v15 = vld [vmem:[%s242_s6 + $0xc] sm:$0xff]  ;;  %v798_v17 = vld [vmem:[%s242_s6 + $0x24] sm:$0xff]  ;;  %v380_v23 = vunpack.c.l.bf16 %v790_v9  ;;  %v426_v24 = vunpack.c.l.bf16 %v792_v10  ;;  %v427_v25 = vunpack.c.h.bf16 %v792_v10  ;;  %v428_v26 = vunpack.c.h.bf16 %v790_v9 }
  0x1c   : > { %v806_v27 = vld [vmem:[%s242_s6 + $0x44] ss:$24 sps:$4 sm:$0xff]   ;;  %v266_v29 = vunpack.c.l.bf16 %v794_v15  ;;  %v267_v30 = vunpack.c.h.bf16 %v794_v15  ;;  %v268_v31 = vunpack.c.l.bf16 %v796_v16  ;;  %v333_v32 = vunpack.c.l.bf16 %v798_v17 }
  0x1d   : > { %v334_v33 = vunpack.c.h.bf16 %v798_v17  ;;  %v335_v34 = vunpack.c.h.bf16 %v796_v16  ;;  %v381_v35 = vunpack.c.l.bf16 %v800_v22  ;;  %v382_v36 = vunpack.c.h.bf16 %v800_v22 }
  0x1e   : > { %v383_v38 = vunpack.c.l.bf16 %v806_v27  ;;  %v429_v39 = vunpack.c.l.bf16 %v808_v28  ;;  %v430_v40 = vunpack.c.h.bf16 %v808_v28  ;;  %v431_v41 = vunpack.c.h.bf16 %v806_v27 }
  0x93   : > { %v288_v46 = vpop.permute.xlu1 %287 }
  0x94   : > { %v272_v37 = vpop.permute.xlu0 %271 }
  0x95   : > { %v279_v42 = vsub.f32 %v263_v11, %v272_v37  ;;  %v280_v43 = vsub.f32 %v264_v12, %v272_v37  ;;  %v281_v44 = vsub.f32 %v265_v13, %v272_v37  ;;  %v336_v45 = vsub.f32 %v330_v14, %v272_v37 }
  0x96   : > { %v337_v47 = vsub.f32 %v331_v18, %v272_v37  ;;  %v338_v48 = vsub.f32 %v332_v19, %v272_v37  ;;  %v384_v49 = vsub.f32 %v378_v20, %v272_v37  ;;  %v385_v50 = vsub.f32 %v379_v21, %v272_v37 }
  0x97   : > { %v295_v51 = vmul.f32 %v288_v46, %v279_v42  ;;  %v296_v52 = vmul.f32 %v288_v46, %v280_v43  ;;  %v297_v53 = vmul.f32 %v288_v46, %v281_v44  ;;  %v342_v54 = vmul.f32 %v336_v45, %v288_v46 }
  0x98   : > { %v343_v55 = vmul.f32 %v337_v47, %v288_v46  ;;  %v344_v56 = vmul.f32 %v338_v48, %v288_v46  ;;  %v386_v57 = vsub.f32 %v380_v23, %v272_v37  ;;  %v390_v58 = vmul.f32 %v384_v49, %v288_v46  ;;  %v831_v8 = vpop.permute.xlu0 %276  ;;  %v847_v47 = vpop.permute.xlu1 %292 }
  0x99   : > { %vm301_vm0 = vcmp.ge.f32.partialorder %v295_v51, 0.0  ;;  %vm302_vm1 = vcmp.ge.f32.partialorder %v296_v52, 0.0  ;;  %vm303_vm2 = vcmp.ge.f32.partialorder %v297_v53, 0.0  ;;  %v307_v59 = vmul.f32 0.2, %v295_v51 }
  0x9a   : > { %v308_v60 = vmul.f32 0.2, %v296_v52  ;;  %v309_v61 = vmul.f32 0.2, %v297_v53  ;;  %vm348_vm3 = vcmp.ge.f32.partialorder %v342_v54, 0.0  ;;  %vm349_vm4 = vcmp.ge.f32.partialorder %v343_v55, 0.0 }
  0x9b   : > { %v313_v62 = vsel %vm301_vm0, %v295_v51, %v307_v59  ;;  %vm350_vm5 = vcmp.ge.f32.partialorder %v344_v56, 0.0  ;;  %v354_v63 = vmul.f32 0.2, %v342_v54  ;;  %v355_v0 = vmul.f32 0.2, %v343_v55 }
  0x9c   : > { %v314_v1 = vsel %vm302_vm1, %v296_v52, %v308_v60  ;;  %v315_v2 = vsel %vm303_vm2, %v297_v53, %v309_v61  ;;  %319 = vst [vmem:[%s826_s10] sm:$0xff] %v313_v62  ;;  %v356_v3 = vmul.f32 0.2, %v344_v56  ;;  %v391_v4 = vmul.f32 %v385_v50, %v288_v46 }
  0x9d   : > { %320 = vst [vmem:[%s826_s10 + $0x8] sm:$0xff] %v314_v1  ;;  %321 = vst [vmem:[%s826_s10 + $0x10] sm:$0xff] %v315_v2  ;;  %v360_v5 = vsel %vm348_vm3, %v342_v54, %v354_v63  ;;  %v361_v6 = vsel %vm349_vm4, %v343_v55, %v355_v0  ;;  %v392_v7 = vmul.f32 %v386_v57, %v288_v46  ;;  %vm396_vm6 = vcmp.ge.f32.partialorder %v390_v58, 0.0 }
  0x9e   : > { %v362_v11 = vsel %vm350_vm5, %v344_v56, %v356_v3  ;;  %609 = vst [vmem:[%s826_s10 + $0x30] sm:$0xff] %v360_v5  ;;  %610 = vst [vmem:[%s826_s10 + $0x38] sm:$0xff] %v361_v6  ;;  %vm397_vm7 = vcmp.ge.f32.partialorder %v391_v4, 0.0  ;;  %v402_v12 = vmul.f32 0.2, %v390_v58  ;;  %v432_v18 = vsub.f32 %v426_v24, %v272_v37 }
  0x9f   : > { %v403_v13 = vmul.f32 0.2, %v391_v4  ;;  %611 = vst [vmem:[%s826_s10 + $0x40] sm:$0xff] %v362_v11  ;;  %vm398_vm8 = vcmp.ge.f32.partialorder %v392_v7, 0.0  ;;  %v404_v14 = vmul.f32 0.2, %v392_v7  ;;  %v433_v19 = vsub.f32 %v427_v25, %v272_v37 }
  0xa0   : > { %v408_v20 = vsel %vm396_vm6, %v390_v58, %v402_v12  ;;  %v434_v23 = vsub.f32 %v428_v26, %v272_v37  ;;  %v282_v42 = vsub.f32 %v266_v29, %v831_v8  ;;  %v438_v44 = vmul.f32 %v432_v18, %v288_v46 }
  0xa1   : > { %v409_v21 = vsel %vm397_vm7, %v391_v4, %v403_v13  ;;  %v410_v43 = vsel %vm398_vm8, %v392_v7, %v404_v14  ;;  %619 = vst [vmem:[%s826_s10 + $0x60] sm:$0xff] %v408_v20  ;;  %v439_v45 = vmul.f32 %v433_v19, %v288_v46  ;;  %v283_v10 = vsub.f32 %v267_v30, %v831_v8 }
  0xa2   : > { %620 = vst [vmem:[%s826_s10 + $0x68] sm:$0xff] %v409_v21  ;;  %621 = vst [vmem:[%s826_s10 + $0x70] sm:$0xff] %v410_v43  ;;  %v440_v24 = vmul.f32 %v434_v23, %v288_v46  ;;  %v284_v9 = vsub.f32 %v268_v31, %v831_v8  ;;  %v298_v25 = vmul.f32 %v847_v47, %v282_v42  ;;  %vm444_vm9 = vcmp.ge.f32.partialorder %v438_v44, 0.0 }
  0xa3   : > { %v339_v26 = vsub.f32 %v333_v32, %v831_v8  ;;  %vm445_vm10 = vcmp.ge.f32.partialorder %v439_v45, 0.0  ;;  %v450_v29 = vmul.f32 0.2, %v438_v44  ;;  %v451_v15 = vmul.f32 0.2, %v439_v45 }
  0xa4   : > { %vm446_vm11 = vcmp.ge.f32.partialorder %v440_v24, 0.0  ;;  %v452_v30 = vmul.f32 0.2, %v440_v24  ;;  %v299_v37 = vmul.f32 %v847_v47, %v283_v10  ;;  %v300_v46 = vmul.f32 %v847_v47, %v284_v9 }
  0xa5   : > { %v456_v31 = vsel %vm444_vm9, %v438_v44, %v450_v29  ;;  %v457_v48 = vsel %vm445_vm10, %v439_v45, %v451_v15  ;;  %vm304_vm12 = vcmp.ge.f32.partialorder %v298_v25, 0.0  ;;  %v310_v49 = vmul.f32 0.2, %v298_v25 }
  0xa6   : > { %v458_v50 = vsel %vm446_vm11, %v440_v24, %v452_v30  ;;  %629 = vst [vmem:[%s826_s10 + $0x90] sm:$0xff] %v456_v31  ;;  %630 = vst [vmem:[%s826_s10 + $0x98] sm:$0xff] %v457_v48  ;;  %vm305_vm13 = vcmp.ge.f32.partialorder %v299_v37, 0.0  ;;  %vm306_vm14 = vcmp.ge.f32.partialorder %v300_v46, 0.0  ;;  %v311_v32 = vmul.f32 0.2, %v299_v37 }
  0xa7   : > { %631 = vst [vmem:[%s826_s10 + $0xa0] sm:$0xff] %v458_v50  ;;  %v312_v51 = vmul.f32 0.2, %v300_v46  ;;  %v316_v52 = vsel %vm304_vm12, %v298_v25, %v310_v49  ;;  %v340_v53 = vsub.f32 %v334_v33, %v831_v8  ;;  %v341_v54 = vsub.f32 %v335_v34, %v831_v8 }
  0xa8   : > { %v317_v55 = vsel %vm305_vm13, %v299_v37, %v311_v32  ;;  %322 = vst [vmem:[%s826_s10 + $0x18] sm:$0xff] %v316_v52  ;;  %v345_v56 = vmul.f32 %v339_v26, %v847_v47  ;;  %v387_v57 = vsub.f32 %v381_v35, %v831_v8  ;;  %v388_v58 = vsub.f32 %v382_v36, %v831_v8 }
  0xa9   : > { %v318_v59 = vsel %vm306_vm14, %v300_v46, %v312_v51  ;;  %323 = vst [vmem:[%s826_s10 + $0x20] sm:$0xff] %v317_v55  ;;  %v346_v17 = vmul.f32 %v340_v53, %v847_v47  ;;  %v347_v33 = vmul.f32 %v341_v54, %v847_v47  ;;  %v389_v16 = vsub.f32 %v383_v38, %v831_v8 }
  0xaa   : > { %324 = vst [vmem:[%s826_s10 + $0x28] sm:$0xff] %v318_v59  ;;  %vm351_vm15 = vcmp.ge.f32.partialorder %v345_v56, 0.0  ;;  %v357_v34 = vmul.f32 0.2, %v345_v56  ;;  %v393_v35 = vmul.f32 %v387_v57, %v847_v47  ;;  %v394_v22 = vmul.f32 %v388_v58, %v847_v47 }
  0xab   : > { %vm352_vm0 = vcmp.ge.f32.partialorder %v346_v17, 0.0  ;;  %vm353_vm1 = vcmp.ge.f32.partialorder %v347_v33, 0.0  ;;  %v358_v36 = vmul.f32 0.2, %v346_v17  ;;  %v359_v60 = vmul.f32 0.2, %v347_v33 }
  0xac   : > { %v363_v61 = vsel %vm351_vm15, %v345_v56, %v357_v34  ;;  %v395_v62 = vmul.f32 %v389_v16, %v847_v47  ;;  %vm399_vm2 = vcmp.ge.f32.partialorder %v393_v35, 0.0  ;;  %vm400_vm3 = vcmp.ge.f32.partialorder %v394_v22, 0.0 }
  0xad   : > { %v364_v38 = vsel %vm352_vm0, %v346_v17, %v358_v36  ;;  %v365_v63 = vsel %vm353_vm1, %v347_v33, %v359_v60  ;;  %612 = vst [vmem:[%s826_s10 + $0x48] sm:$0xff] %v363_v61  ;;  %v405_v0 = vmul.f32 0.2, %v393_v35  ;;  %v406_v1 = vmul.f32 0.2, %v394_v22 }
  0xae   : > { %613 = vst [vmem:[%s826_s10 + $0x50] sm:$0xff] %v364_v38  ;;  %614 = vst [vmem:[%s826_s10 + $0x58] sm:$0xff] %v365_v63  ;;  %vm401_vm4 = vcmp.ge.f32.partialorder %v395_v62, 0.0  ;;  %v407_v2 = vmul.f32 0.2, %v395_v62  ;;  %v435_v3 = vsub.f32 %v429_v39, %v831_v8  ;;  %v436_v4 = vsub.f32 %v430_v40, %v831_v8 }
  0xaf   : > { %v411_v5 = vsel %vm399_vm2, %v393_v35, %v405_v0  ;;  %v412_v6 = vsel %vm400_vm3, %v394_v22, %v406_v1  ;;  %v437_v7 = vsub.f32 %v431_v41, %v831_v8 }
  0xb0   : > { %v413_v11 = vsel %vm401_vm4, %v395_v62, %v407_v2  ;;  %622 = vst [vmem:[%s826_s10 + $0x78] sm:$0xff] %v411_v5  ;;  %623 = vst [vmem:[%s826_s10 + $0x80] sm:$0xff] %v412_v6  ;;  %v441_v12 = vmul.f32 %v435_v3, %v847_v47  ;;  %v442_v39 = vmul.f32 %v436_v4, %v847_v47 }
  0xb1   : > { %624 = vst [vmem:[%s826_s10 + $0x88] sm:$0xff] %v413_v11  ;;  %v443_v28 = vmul.f32 %v437_v7, %v847_v47 }
  0xb2   : > { %vm447_vm5 = vcmp.ge.f32.partialorder %v441_v12, 0.0  ;;  %vm448_vm6 = vcmp.ge.f32.partialorder %v442_v39, 0.0  ;;  %v453_v40 = vmul.f32 0.2, %v441_v12  ;;  %v454_v13 = vmul.f32 0.2, %v442_v39 }
  0xb3   : > { %vm449_vm7 = vcmp.ge.f32.partialorder %v443_v28, 0.0  ;;  %v455_v27 = vmul.f32 0.2, %v443_v28 }
  0xb4   : > { %v459_v41 = vsel %vm447_vm5, %v441_v12, %v453_v40  ;;  %v460_v8 = vsel %vm448_vm6, %v442_v39, %v454_v13 }
  0xb5   : > { %v461_v14 = vsel %vm449_vm7, %v443_v28, %v455_v27  ;;  %632 = vst [vmem:[%s826_s10 + $0xa8] sm:$0xff] %v459_v41  ;;  %633 = vst [vmem:[%s826_s10 + $0xb0] sm:$0xff] %v460_v8 }
  0xb6   : > { %634 = vst [vmem:[%s826_s10 + $0xb8] sm:$0xff] %v461_v14 }
  0xb7 PF: > { %s13_s16 = sadd.s32 1, %s722_s16   ;;  %s929_s12 = smov %s714_s14 }
  0xb8   : > { %p10_p7 = scmp.ge.s32.totalorder %s13_s16, 10   ;;  %s930_s13 = smov %s718_s15 }
  0xb9   : > { %s931_s14 = smov %s934_s17  ;;  %s932_s15 = smov %s938_s18 }
  0xba   :  { %12 = sbr.rel (!%p10_p7) target bundleno = 3 (0x3), region = 74 }

// kernel: conv3d_block.2
= control target key start
LH: loop header
LB: loop body
LE: loop exit
PB: predicated region body
PF: predicated region fallthrough
CT: control target
= control target key end

     0   :  { %s4908_s21 = smov 0   ;;  %s4910_s22 = smov 0   ;;  %s6703_s0 = inlined_call_operand.vmem [shape: bf16[2,18,16,512], index: 0, kind: input, shape index: {}]   ;;  %s6704_s1 = inlined_call_operand.vmem [shape: bf16[3,16,144], index: 1, kind: input, shape index: {}]   ;;  %s6705_s2 = inlined_call_operand.vmem [shape: f32[16,1], index: 2, kind: input, shape index: {}]   ;;  %s6706_s3 = inlined_call_operand.vmem [shape: f32[1,384], index: 3, kind: input, shape index: {}]   ;;  %s6707_s4 = inlined_call_operand.vmem [shape: bf16[2,16,16,384], index: 4, kind: output, shape index: {0}]   ;;  %s6708_s5 = inlined_call_operand.vmem [shape: f32[2,16,1], index: 5, kind: output, shape index: {1}]   ;;  %s6709_s6 = inlined_call_operand.vmem [shape: f32[2,16,1], index: 6, kind: output, shape index: {2}]  }
   0x1   :  { %s4912_s23 = smov 0   ;;  %s4914_s24 = smov 0  }
   0x2   :  { %s4916_s25 = smov 0  }
   0x3 LB: > { %s26_s26 = sadd.s32 1, %s4853_s23  ;;  %s29_s27 = sadd.s32 1, %s4857_s24  ;;  %s4861_s25 = sphi %s4916_s25, %s17_s25   ;;  %s4857_s24 = sphi %s4914_s24, %s6715_s24   ;;  %s4853_s23 = sphi %s4912_s23, %s6714_s23   ;;  %s4849_s22 = sphi %s4910_s22, %s6713_s22   ;;  %s4845_s21 = sphi %s4908_s21, %s6712_s21  }
   0x4   : > { %p27_p0 = scmp.ge.s32.totalorder %s26_s26, 4  ;;  %p4425_p1 = scmp.ge.s32.totalorder %s4861_s25, 1 }
   0x5   : > { %p197_p2 = scmp.lt.s32.totalorder %s4861_s25, 9 }
   0x6   : > { %s6717_s26 = smov (%p27_p0, %s26_s26), 0  ;;  %s6719_s27 = smov (!%p27_p0, %s29_s27), %s4857_s24 }
   0x7   : > { %p198_p3 = pnand %p4425_p1, %p197_p2  ;;  %p31_p4 = scmp.ge.s32.totalorder %s6719_s27, 2 }
   0x8   : > { %s4426_s28 = sshll.u32 (!%p198_p3), %s4845_s21, 2  ;;  %p236_p5 = scmp.lt.s32.totalorder (!%p198_p3), %s4849_s22, 1 }
   0x9   : > { %s6721_s27 = smov (%p31_p4, %s6719_s27), 0  ;;  %201 = sbr.rel (%p198_p3) target bundleno = 1395 (0x573), region = 32 }
   0xa   : > { %6710 = sst [smem:[#allocation11_spill]] %s6721_s27  ;;  %p238_p6 = scmp.lt.s32.totalorder (!%p198_p3), %s4426_s28, 15 }
   0xb   : > { %p257_p7 = scmp.lt.s32.totalorder (!%p198_p3), %s4845_s21, 0  ;;  %s258_s15 = ssub.s32 (!%p198_p3), 0, %s4845_s21 }
   0xc   : > { %s4432_s17 = smin.u32 (!%p198_p3), %s4845_s21, %s258_s15  ;;  %p4435_p9 = scmp.ne.s32.totalorder (!%p198_p3), %s4845_s21, 0 }
   0xd   : > { %s260_s19 = sand.u32 (!%p198_p3), 1, %s4432_s17  }
  0x10   : > { %s237_s29 = scalar_select %p236_p5, %s4849_s22, 1 }
  0x11   : > { %s6723_s28 = smov (!%p238_p6, %s4426_s28), 15 }
  0x12   : > { %s4742_s30 = smul.u32 96, %s237_s29  ;;  %s4648_s7 = sshll.u32 %s237_s29, 4 }
  0x13   : > { %s4741_s8 = smul.u32 6, %s6723_s28  ;;  %s4949_s11 = scalar_lea.vmem %s6708_s5, %s4648_s7 }
  0x14   : > { %s4954_s14 = scalar_lea.vmem %s6709_s6, %s4648_s7  ;;  %s261_s28 = ssub.s32 0, %s260_s19 }
  0x15   : > { %s242_s16 = sadd.s32 %s4742_s30, %s4741_s8  ;;  %s6725_s28 = smov (!%p257_p7, %s261_s28), %s260_s19 }
  0x16   : > { %s4427_s18 = sshll.u32 %s242_s16, 2  ;;  %p4434_p8 = scmp.lt.s32.totalorder %s6725_s28, 0 }
  0x17   : > { %s4961_s29 = scalar_lea.vmem %s6707_s4, %s4427_s18  ;;  %s267_s9 = sadd.s32 2, %s6725_s28 }
  0x18   : > { %s6727_s9 = smov (!%p4434_p8, %s267_s9), %s6725_s28  ;;  %272 = sbr.rel (%p4435_p9) target bundleno = 59 (0x3b), region = 36 }
  0x19   : > { %s4650_s30 = smul.u32 (!%p4435_p9), 576, %s4849_s22 }
  0x1b   : > { %s4972_s10 = scalar_lea.vmem (!%p4435_p9), %s6703_s0, %s4650_s30 }
  0x1c   : > { %v293_v0 = vld [vmem:[%s4972_s10] sm:$0xf] (!%p4435_p9)  ;;  %v295_v1 = vld [vmem:[%s4972_s10 + $0x10] sm:$0xf] (!%p4435_p9)  ;;  %v297_v2 = vld [vmem:[%s4972_s10 + $0x4] sm:$0xf] (!%p4435_p9) }
  0x1d   : > { %294 = vst [vmem:[#allocation2] sm:$0xf] (!%p4435_p9), %v293_v0  ;;  %296 = vst [vmem:[#allocation2 + $0x4] sm:$0xf] (!%p4435_p9), %v295_v1  ;;  %v299_v3 = vld [vmem:[%s4972_s10 + $0x14] sm:$0xf] (!%p4435_p9) }
  0x1e   : > { %298 = vst [vmem:[#allocation2 + $0x8] sm:$0xf] (!%p4435_p9), %v297_v2  ;;  %v301_v4 = vld [vmem:[%s4972_s10 + $0x8] sm:$0xf] (!%p4435_p9)  ;;  %v303_v5 = vld [vmem:[%s4972_s10 + $0x18] sm:$0xf] (!%p4435_p9) }
  0x1f   : > { %300 = vst [vmem:[#allocation2 + $0xc] sm:$0xf] %v299_v3  ;;  %302 = vst [vmem:[#allocation2 + $0x10] sm:$0xf] %v301_v4  ;;  %v305_v6 = vld [vmem:[%s4972_s10 + $0xc] sm:$0xf] }
  0x20   : > { %304 = vst [vmem:[#allocation2 + $0x14] sm:$0xf] %v303_v5  ;;  %v307_v7 = vld [vmem:[%s4972_s10 + $0x1c] sm:$0xff]   ;;  %v311_v8 = vld [vmem:[%s4972_s10 + $0x30] sm:$0xf] }
  0x21   : > { %306 = vst [vmem:[#allocation2 + $0x18] sm:$0xf] %v305_v6  ;;  %308 = vst [vmem:[#allocation2 + $0x1c] sm:$0xff] %v307_v7   ;;  %v313_v9 = vld [vmem:[%s4972_s10 + $0x24] sm:$0xf]  ;;  %v323_v14 = vld [vmem:[%s4972_s10 + $0x3c] sm:$0xff]  }
  0x22   : > { %312 = vst [vmem:[#allocation2 + $0x24] sm:$0xf] %v311_v8  ;;  %v315_v10 = vld [vmem:[%s4972_s10 + $0x34] sm:$0xf]  ;;  %v317_v11 = vld [vmem:[%s4972_s10 + $0x28] sm:$0xf] }
  0x23   : > { %314 = vst [vmem:[#allocation2 + $0x28] sm:$0xf] %v313_v9  ;;  %316 = vst [vmem:[#allocation2 + $0x2c] sm:$0xf] %v315_v10  ;;  %v319_v12 = vld [vmem:[%s4972_s10 + $0x38] sm:$0xf] }
  0x24   : > { %318 = vst [vmem:[#allocation2 + $0x30] sm:$0xf] %v317_v11  ;;  %v321_v13 = vld [vmem:[%s4972_s10 + $0x2c] sm:$0xf]  ;;  %320 = vst [vmem:[#allocation2 + $0x34] sm:$0xf] %v319_v12 }
  0x25   : > { %322 = vst [vmem:[#allocation2 + $0x38] sm:$0xf] %v321_v13  ;;  %324 = vst [vmem:[#allocation2 + $0x3c] sm:$0xff] %v323_v14   ;;  %v327_v15 = vld [vmem:[%s4972_s10 + $0x50] sm:$0xf]  ;;  %v339_v21 = vld [vmem:[%s4972_s10 + $0x5c] sm:$0xff]  }
  0x26   : > { %v329_v16 = vld [vmem:[%s4972_s10 + $0x44] sm:$0xf]  ;;  %v331_v17 = vld [vmem:[%s4972_s10 + $0x54] sm:$0xf]  ;;  %328 = vst [vmem:[#allocation2 + $0x44] sm:$0xf] %v327_v15 }
  0x27   : > { %330 = vst [vmem:[#allocation2 + $0x48] sm:$0xf] %v329_v16  ;;  %332 = vst [vmem:[#allocation2 + $0x4c] sm:$0xf] %v331_v17  ;;  %v333_v18 = vld [vmem:[%s4972_s10 + $0x48] sm:$0xf] }
  0x28   : > { %v335_v19 = vld [vmem:[%s4972_s10 + $0x58] sm:$0xf]  ;;  %v337_v20 = vld [vmem:[%s4972_s10 + $0x4c] sm:$0xf]  ;;  %334 = vst [vmem:[#allocation2 + $0x50] sm:$0xf] %v333_v18 }
  0x29   : > { %336 = vst [vmem:[#allocation2 + $0x54] sm:$0xf] %v335_v19  ;;  %338 = vst [vmem:[#allocation2 + $0x58] sm:$0xf] %v337_v20  ;;  %v343_v22 = vld [vmem:[%s4972_s10 + $0x70] sm:$0xf] }
  0x2a   : > { %v345_v23 = vld [vmem:[%s4972_s10 + $0x64] sm:$0xf]  ;;  %340 = vst [vmem:[#allocation2 + $0x5c] sm:$0xff] %v339_v21   ;;  %344 = vst [vmem:[#allocation2 + $0x64] sm:$0xf] %v343_v22  ;;  %v355_v28 = vld [vmem:[%s4972_s10 + $0x7c] sm:$0xff]  }
  0x2b   : > { %346 = vst [vmem:[#allocation2 + $0x68] sm:$0xf] %v345_v23  ;;  %v347_v24 = vld [vmem:[%s4972_s10 + $0x74] sm:$0xf]  ;;  %v349_v25 = vld [vmem:[%s4972_s10 + $0x68] sm:$0xf] }
  0x2c   : > { %v351_v26 = vld [vmem:[%s4972_s10 + $0x78] sm:$0xf]  ;;  %348 = vst [vmem:[#allocation2 + $0x6c] sm:$0xf] %v347_v24  ;;  %350 = vst [vmem:[#allocation2 + $0x70] sm:$0xf] %v349_v25 }
  0x2d   : > { %352 = vst [vmem:[#allocation2 + $0x74] sm:$0xf] %v351_v26  ;;  %v353_v27 = vld [vmem:[%s4972_s10 + $0x6c] sm:$0xf]  ;;  %v359_v29 = vld [vmem:[%s4972_s10 + $0x90] sm:$0xf] }
  0x2e   : > { %354 = vst [vmem:[#allocation2 + $0x78] sm:$0xf] %v353_v27  ;;  %356 = vst [vmem:[#allocation2 + $0x7c] sm:$0xff] %v355_v28   ;;  %v361_v30 = vld [vmem:[%s4972_s10 + $0x84] sm:$0xf]  ;;  %v371_v35 = vld [vmem:[%s4972_s10 + $0x9c] sm:$0xff]  }
  0x2f   : > { %360 = vst [vmem:[#allocation2 + $0x84] sm:$0xf] %v359_v29  ;;  %v363_v31 = vld [vmem:[%s4972_s10 + $0x94] sm:$0xf]  ;;  %v365_v32 = vld [vmem:[%s4972_s10 + $0x88] sm:$0xf] }
  0x30   : > { %362 = vst [vmem:[#allocation2 + $0x88] sm:$0xf] %v361_v30  ;;  %364 = vst [vmem:[#allocation2 + $0x8c] sm:$0xf] %v363_v31  ;;  %v367_v33 = vld [vmem:[%s4972_s10 + $0x98] sm:$0xf] }
  0x31   : > { %366 = vst [vmem:[#allocation2 + $0x90] sm:$0xf] %v365_v32  ;;  %v369_v34 = vld [vmem:[%s4972_s10 + $0x8c] sm:$0xf]  ;;  %368 = vst [vmem:[#allocation2 + $0x94] sm:$0xf] %v367_v33 }
  0x32   : > { %370 = vst [vmem:[#allocation2 + $0x98] sm:$0xf] %v369_v34  ;;  %372 = vst [vmem:[#allocation2 + $0x9c] sm:$0xff] %v371_v35   ;;  %v375_v36 = vld [vmem:[%s4972_s10 + $0xb0] sm:$0xf] }
  0x33   : > { %v377_v37 = vld [vmem:[%s4972_s10 + $0xa4] sm:$0xf]  ;;  %v379_v38 = vld [vmem:[%s4972_s10 + $0xb4] sm:$0xf]  ;;  %376 = vst [vmem:[#allocation2 + $0xa4] sm:$0xf] %v375_v36 }
  0x34   : > { %378 = vst [vmem:[#allocation2 + $0xa8] sm:$0xf] %v377_v37  ;;  %380 = vst [vmem:[#allocation2 + $0xac] sm:$0xf] %v379_v38  ;;  %v381_v39 = vld [vmem:[%s4972_s10 + $0xa8] sm:$0xf] }
  0x35   : > { %v383_v40 = vld [vmem:[%s4972_s10 + $0xb8] sm:$0xf]  ;;  %v385_v41 = vld [vmem:[%s4972_s10 + $0xac] sm:$0xf]  ;;  %382 = vst [vmem:[#allocation2 + $0xb0] sm:$0xf] %v381_v39 }
  0x36   : > { %384 = vst [vmem:[#allocation2 + $0xb4] sm:$0xf] %v383_v40  ;;  %386 = vst [vmem:[#allocation2 + $0xb8] sm:$0xf] %v385_v41  ;;  %v387_v42 = vld [vmem:[%s4972_s10 + $0xbc] sm:$0xf] }
  0x37   : > { %388 = vst [vmem:[#allocation2 + $0xbc] sm:$0xf] %v387_v42 }
  0x38   : > { %515 = vsyncadd [#allocation7], 3072  ;;  %vm516_vm0 = vcmask 7168   ;;  %v4863_v43 = vmov 0.0  }
  0x39   : > { %517 = vst.msk [vmem:[#allocation5] sm:$0xff] %vm516_vm0, %v4863_v43  ;;  %518 = vst.msk [vmem:[#allocation5 + $0x8] sm:$0xff] %vm516_vm0, %v4863_v43 }
  0x3a   : > { %519 = vst.msk [vmem:[#allocation6] sm:$0xff] %vm516_vm0, %v4863_v43  ;;  %520 = vst.msk [vmem:[#allocation6 + $0x8] sm:$0xff] %vm516_vm0, %v4863_v43 }
  0x3b PF: > { %s521_s27 = scalar_lea.sflag [#allocation7], %s6727_s9 }
  0x3c   : > { %4841 = dma.done.wait %s521_s27, 3072 }
  0x3d   : > { %4842 = vsyncadd %s521_s27, 4294964224  ;;  %s527_s12 = sadd.s32 1, %s4845_s21 }
  0x3e   : > { %p4437_p10 = scmp.ge.s32.totalorder %s527_s12, 4 }
  0x3f   : > { %s532_s13 = ssub.s32 (!%p4437_p10), 1, %s6727_s9  ;;  %s4438_s15 = sshll.u32 (!%p4437_p10), %s4845_s21, 5 }
  0x40   : > { %531 = sbr.rel (%p4437_p10) target bundleno = 99 (0x63), region = 77  ;;  %s542_s7 = scalar_lea.sflag (!%p4437_p10), [#allocation7], %s532_s13 }
  0x41   : > { %s4303_s16 = smul.u32 (!%p4437_p10), 144, %s4849_s22 }
  0x42   : > { %s4651_s17 = smul.u32 (!%p4437_p10), 192, %s532_s13 }
  0x43   : > { %s4304_s18 = sadd.s32 (!%p4437_p10), %s4438_s15, %s4303_s16 }
  0x44   : > { %s4439_s19 = sshll.u32 (!%p4437_p10), %s4304_s18, 2  ;;  %s5032_s22 = scalar_lea.vmem (!%p4437_p10), [#allocation2], %s4651_s17 }
  0x45   : > { %s5027_s30 = scalar_lea.vmem (!%p4437_p10), %s6703_s0, %s4439_s19 }
  0x46   : > { %v4489_v44 = vld [vmem:[%s5027_s30 + $0x80] sm:$0xf] (!%p4437_p10)  ;;  %v4490_v45 = vld [vmem:[%s5027_s30 + $0x90] sm:$0xf] (!%p4437_p10)  ;;  %v4491_v46 = vld [vmem:[%s5027_s30 + $0x84] sm:$0xf] (!%p4437_p10) }
  0x47   : > { %561 = vst [vmem:[%s5032_s22] sm:$0xf] %v4489_v44  ;;  %563 = vst [vmem:[%s5032_s22 + $0x4] sm:$0xf] %v4490_v45  ;;  %v4492_v47 = vld [vmem:[%s5027_s30 + $0x94] sm:$0xf]  ;;  %v4496_v51 = vld [vmem:[%s5027_s30 + $0x9c] sm:$0xff]  }
  0x48   : > { %565 = vst [vmem:[%s5032_s22 + $0x8] sm:$0xf] %v4491_v46  ;;  %v4493_v48 = vld [vmem:[%s5027_s30 + $0x88] sm:$0xf]  ;;  %v4494_v49 = vld [vmem:[%s5027_s30 + $0x98] sm:$0xf] }
  0x49   : > { %567 = vst [vmem:[%s5032_s22 + $0xc] sm:$0xf] %v4492_v47  ;;  %569 = vst [vmem:[%s5032_s22 + $0x10] sm:$0xf] %v4493_v48  ;;  %v4495_v50 = vld [vmem:[%s5027_s30 + $0x8c] sm:$0xf] }
  0x4a   : > { %571 = vst [vmem:[%s5032_s22 + $0x14] sm:$0xf] %v4494_v49  ;;  %v4498_v52 = vld [vmem:[%s5027_s30 + $0xb0] sm:$0xf]  ;;  %573 = vst [vmem:[%s5032_s22 + $0x18] sm:$0xf] %v4495_v50 }
  0x4b   : > { %575 = vst [vmem:[%s5032_s22 + $0x1c] sm:$0xff] %v4496_v51   ;;  %579 = vst [vmem:[%s5032_s22 + $0x24] sm:$0xf] %v4498_v52  ;;  %v4499_v53 = vld [vmem:[%s5027_s30 + $0xa4] sm:$0xf]  ;;  %v4504_v58 = vld [vmem:[%s5027_s30 + $0xbc] sm:$0xff]  }
  0x4c   : > { %v4500_v54 = vld [vmem:[%s5027_s30 + $0xb4] sm:$0xf]  ;;  %v4501_v55 = vld [vmem:[%s5027_s30 + $0xa8] sm:$0xf]  ;;  %581 = vst [vmem:[%s5032_s22 + $0x28] sm:$0xf] %v4499_v53 }
  0x4d   : > { %583 = vst [vmem:[%s5032_s22 + $0x2c] sm:$0xf] %v4500_v54  ;;  %585 = vst [vmem:[%s5032_s22 + $0x30] sm:$0xf] %v4501_v55  ;;  %v4502_v56 = vld [vmem:[%s5027_s30 + $0xb8] sm:$0xf] }
  0x4e   : > { %v4503_v57 = vld [vmem:[%s5027_s30 + $0xac] sm:$0xf]  ;;  %587 = vst [vmem:[%s5032_s22 + $0x34] sm:$0xf] %v4502_v56  ;;  %591 = vst [vmem:[%s5032_s22 + $0x3c] sm:$0xff] %v4504_v58   ;;  %v4512_v1 = vld [vmem:[%s5027_s30 + $0xdc] sm:$0xff]  }
  0x4f   : > { %589 = vst [vmem:[%s5032_s22 + $0x38] sm:$0xf] %v4503_v57  ;;  %v4506_v59 = vld [vmem:[%s5027_s30 + $0xd0] sm:$0xf]  ;;  %v4507_v60 = vld [vmem:[%s5027_s30 + $0xc4] sm:$0xf] }
  0x50   : > { %v4508_v61 = vld [vmem:[%s5027_s30 + $0xd4] sm:$0xf]  ;;  %595 = vst [vmem:[%s5032_s22 + $0x44] sm:$0xf] %v4506_v59  ;;  %597 = vst [vmem:[%s5032_s22 + $0x48] sm:$0xf] %v4507_v60 }
  0x51   : > { %599 = vst [vmem:[%s5032_s22 + $0x4c] sm:$0xf] %v4508_v61  ;;  %v4509_v62 = vld [vmem:[%s5027_s30 + $0xc8] sm:$0xf]  ;;  %v4510_v63 = vld [vmem:[%s5027_s30 + $0xd8] sm:$0xf] }
  0x52   : > { %v4511_v0 = vld [vmem:[%s5027_s30 + $0xcc] sm:$0xf]  ;;  %601 = vst [vmem:[%s5032_s22 + $0x50] sm:$0xf] %v4509_v62  ;;  %603 = vst [vmem:[%s5032_s22 + $0x54] sm:$0xf] %v4510_v63 }
  0x53   : > { %605 = vst [vmem:[%s5032_s22 + $0x58] sm:$0xf] %v4511_v0  ;;  %v4514_v2 = vld [vmem:[%s5027_s30 + $0xf0] sm:$0xf]  ;;  %v4515_v3 = vld [vmem:[%s5027_s30 + $0xe4] sm:$0xf] }
  0x54   : > { %607 = vst [vmem:[%s5032_s22 + $0x5c] sm:$0xff] %v4512_v1   ;;  %611 = vst [vmem:[%s5032_s22 + $0x64] sm:$0xf] %v4514_v2  ;;  %v4516_v4 = vld [vmem:[%s5027_s30 + $0xf4] sm:$0xf]  ;;  %v4520_v8 = vld [vmem:[%s5027_s30 + $0xfc] sm:$0xff]  }
  0x55   : > { %613 = vst [vmem:[%s5032_s22 + $0x68] sm:$0xf] %v4515_v3  ;;  %v4517_v5 = vld [vmem:[%s5027_s30 + $0xe8] sm:$0xf]  ;;  %v4518_v6 = vld [vmem:[%s5027_s30 + $0xf8] sm:$0xf] }
  0x56   : > { %615 = vst [vmem:[%s5032_s22 + $0x6c] sm:$0xf] %v4516_v4  ;;  %617 = vst [vmem:[%s5032_s22 + $0x70] sm:$0xf] %v4517_v5  ;;  %v4519_v7 = vld [vmem:[%s5027_s30 + $0xec] sm:$0xf] }
  0x57   : > { %619 = vst [vmem:[%s5032_s22 + $0x74] sm:$0xf] %v4518_v6  ;;  %v4522_v9 = vld [vmem:[%s5027_s30 + $0x110] sm:$0xf]  ;;  %621 = vst [vmem:[%s5032_s22 + $0x78] sm:$0xf] %v4519_v7 }
  0x58   : > { %623 = vst [vmem:[%s5032_s22 + $0x7c] sm:$0xff] %v4520_v8   ;;  %627 = vst [vmem:[%s5032_s22 + $0x84] sm:$0xf] %v4522_v9  ;;  %v4523_v10 = vld [vmem:[%s5027_s30 + $0x104] sm:$0xf]  ;;  %v4528_v15 = vld [vmem:[%s5027_s30 + $0x11c] sm:$0xff]  }
  0x59   : > { %v4524_v11 = vld [vmem:[%s5027_s30 + $0x114] sm:$0xf]  ;;  %v4525_v12 = vld [vmem:[%s5027_s30 + $0x108] sm:$0xf]  ;;  %629 = vst [vmem:[%s5032_s22 + $0x88] sm:$0xf] %v4523_v10 }
  0x5a   : > { %631 = vst [vmem:[%s5032_s22 + $0x8c] sm:$0xf] %v4524_v11  ;;  %633 = vst [vmem:[%s5032_s22 + $0x90] sm:$0xf] %v4525_v12  ;;  %v4526_v13 = vld [vmem:[%s5027_s30 + $0x118] sm:$0xf] }
  0x5b   : > { %v4527_v14 = vld [vmem:[%s5027_s30 + $0x10c] sm:$0xf]  ;;  %635 = vst [vmem:[%s5032_s22 + $0x94] sm:$0xf] %v4526_v13  ;;  %639 = vst [vmem:[%s5032_s22 + $0x9c] sm:$0xff] %v4528_v15  }
  0x5c   : > { %637 = vst [vmem:[%s5032_s22 + $0x98] sm:$0xf] %v4527_v14  ;;  %v4530_v16 = vld [vmem:[%s5027_s30 + $0x130] sm:$0xf]  ;;  %v4531_v17 = vld [vmem:[%s5027_s30 + $0x124] sm:$0xf] }
  0x5d   : > { %v4532_v18 = vld [vmem:[%s5027_s30 + $0x134] sm:$0xf]  ;;  %643 = vst [vmem:[%s5032_s22 + $0xa4] sm:$0xf] %v4530_v16  ;;  %645 = vst [vmem:[%s5032_s22 + $0xa8] sm:$0xf] %v4531_v17 }
  0x5e   : > { %647 = vst [vmem:[%s5032_s22 + $0xac] sm:$0xf] %v4532_v18  ;;  %v4533_v19 = vld [vmem:[%s5027_s30 + $0x128] sm:$0xf]  ;;  %v4534_v20 = vld [vmem:[%s5027_s30 + $0x138] sm:$0xf] }
  0x5f   : > { %v4535_v21 = vld [vmem:[%s5027_s30 + $0x12c] sm:$0xf]  ;;  %649 = vst [vmem:[%s5032_s22 + $0xb0] sm:$0xf] %v4533_v19  ;;  %651 = vst [vmem:[%s5032_s22 + $0xb4] sm:$0xf] %v4534_v20 }
  0x60   : > { %653 = vst [vmem:[%s5032_s22 + $0xb8] sm:$0xf] %v4535_v21  ;;  %v4536_v22 = vld [vmem:[%s5027_s30 + $0x13c] sm:$0xf] }
  0x61   : > { %655 = vst [vmem:[%s5032_s22 + $0xbc] sm:$0xf] %v4536_v22 }
  0x62   : > { %782 = vsyncadd %s542_s7, 3072 }
  0x63 PF: > { %s4652_s8 = smul.u32 192, %s6727_s9  ;;  %s4864_s27 = smov 127   ;;  %v5159_v28 = vld [vmem:[%s6704_s1 + $0x4] ss:$8 sps:$4 sm:$0xff]   ;;  %vm1522_vm1 = vcmask 130048   ;;  %vm805_vm2 = vcmask 1039360  }
  0x64   : > { %s4865_s9 = smov 126   ;;  %s4866_s12 = smov 110   ;;  %4555 = vmatprep.mubr.msk.bf16.mxu0 %vm1522_vm1, %v5159_v28  ;;  %4556 = vmatprep.mubr.msk.bf16.mxu1 %vm1522_vm1, %v5159_v28  ;;  %vm823_vm3 = vcmask 1031168   ;;  %vm841_vm4 = vcmask 900096   ;;  %vm859_vm5 = vcmask 891904   ;;  %vm877_vm6 = vcmask 883712  }
  0x65   : > { %s5120_s10 = scalar_lea.vmem [#allocation2], %s4652_s8  ;;  %s4867_s13 = smov 109   ;;  %vm895_vm7 = vcmask 752640   ;;  %vm913_vm8 = vcmask 744448   ;;  %vm931_vm9 = vcmask 736256   ;;  %vm4169_vm10 = vcmask 7168  }
  0x66   : > { %s4868_s15 = smov 108   ;;  %s4869_s16 = smov 92   ;;  %v5367_v20 = vld [vmem:[%s6704_s1] ss:$8 sps:$4 sm:$0xff]  }
  0x67   : > { %s4870_s17 = smov 91   ;;  %s4871_s20 = smov 90  }
  0x68   : > { %p4643_p11 = scmp.ne.s32.totalorder %s4845_s21, 3 }
  0x6a   : > { %v788_v23 = vld [vmem:[%s5120_s10 + $0x10] sm:$0xff]  ;;  %v786_v24 = vld [vmem:[%s5120_s10] sm:$0xff]  ;;  %v787_v25 = vld [vmem:[%s5120_s10 + $0x8] sm:$0xff] }
  0x6b   : > { %801 = vrot.lane.b32.xlu1 %v788_v23, %s4864_s27  ;;  %797 = vrot.lane.b32.xlu0 %v786_v24, %s4864_s27  ;;  %v789_v26 = vld [vmem:[%s5120_s10 + $0x18] sm:$0xff]  ;;  %v5129_v27 = vld [vmem:[%s5120_s10 + $0x20] sm:$0xff] }
  0x6c   : > { %1526 = vmatprep.subr.bf16.mxu0 %v787_v25  ;;  %1569 = vmatprep.subr.bf16.mxu1 %v5129_v27  ;;  %v5172_v29 = vld [vmem:[%s5120_s10 + $0x28] sm:$0xff]  ;;  %v5179_v30 = vld [vmem:[%s5120_s10 + $0x38] sm:$0xff]  ;;  %v5182_v31 = vld [vmem:[%s5120_s10 + $0x30] sm:$0xff] }
  0x6d   : > { %1527 = vmatpush1.bf16.msra.mxu0 %v786_v24  ;;  %1570 = vmatpush1.bf16.msra.mxu1 %v788_v23  ;;  %v5252_v40 = vld [vmem:[%s5120_s10 + $0x48] sm:$0xff]  ;;  %v5255_v41 = vld [vmem:[%s5120_s10 + $0x40] sm:$0xff]  ;;  %v5269_v46 = vld [vmem:[%s5120_s10 + $0x58] sm:$0xff] }
  0x6e   : > { %v5272_v47 = vld [vmem:[%s5120_s10 + $0x50] sm:$0xff] }
  0x6f   : > { %803 = vrot.lane.b32.xlu1 %v789_v26, %s4864_s27  ;;  %799 = vrot.lane.b32.xlu0 %v787_v25, %s4864_s27 }
  0x73   : > { %817 = vrot.lane.b32.xlu1 %v787_v25, %s4865_s9  ;;  %815 = vrot.lane.b32.xlu0 %v786_v24, %s4865_s9 }
  0x77   : > { %821 = vrot.lane.b32.xlu1 %v789_v26, %s4865_s9  ;;  %819 = vrot.lane.b32.xlu0 %v788_v23, %s4865_s9 }
  0x7b   : > { %835 = vrot.lane.b32.xlu1 %v787_v25, %s4866_s12  ;;  %833 = vrot.lane.b32.xlu0 %v786_v24, %s4866_s12 }
  0x7f   : > { %839 = vrot.lane.b32.xlu1 %v789_v26, %s4866_s12  ;;  %837 = vrot.lane.b32.xlu0 %v788_v23, %s4866_s12 }
  0x83   : > { %853 = vrot.lane.b32.xlu1 %v787_v25, %s4867_s13  ;;  %851 = vrot.lane.b32.xlu0 %v786_v24, %s4867_s13 }
  0x87   : > { %857 = vrot.lane.b32.xlu1 %v789_v26, %s4867_s13  ;;  %855 = vrot.lane.b32.xlu0 %v788_v23, %s4867_s13 }
  0x8b   : > { %871 = vrot.lane.b32.xlu1 %v787_v25, %s4868_s15  ;;  %869 = vrot.lane.b32.xlu0 %v786_v24, %s4868_s15 }
  0x8f   : > { %875 = vrot.lane.b32.xlu1 %v789_v26, %s4868_s15  ;;  %873 = vrot.lane.b32.xlu0 %v788_v23, %s4868_s15 }
  0x93   : > { %889 = vrot.lane.b32.xlu1 %v787_v25, %s4869_s16  ;;  %887 = vrot.lane.b32.xlu0 %v786_v24, %s4869_s16 }
  0x97   : > { %893 = vrot.lane.b32.xlu1 %v789_v26, %s4869_s16  ;;  %891 = vrot.lane.b32.xlu0 %v788_v23, %s4869_s16 }
  0x9b   : > { %907 = vrot.lane.b32.xlu1 %v787_v25, %s4870_s17  ;;  %905 = vrot.lane.b32.xlu0 %v786_v24, %s4870_s17 }
  0x9f   : > { %911 = vrot.lane.b32.xlu1 %v789_v26, %s4870_s17  ;;  %909 = vrot.lane.b32.xlu0 %v788_v23, %s4870_s17 }
  0xa3   : > { %925 = vrot.lane.b32.xlu1 %v787_v25, %s4871_s20  ;;  %923 = vrot.lane.b32.xlu0 %v786_v24, %s4871_s20 }
  0xa7   : > { %929 = vrot.lane.b32.xlu1 %v789_v26, %s4871_s20  ;;  %927 = vrot.lane.b32.xlu0 %v788_v23, %s4871_s20 }
  0xab   : > { %957 = vrot.lane.b32.xlu1 %v5172_v29, %s4864_s27  ;;  %955 = vrot.lane.b32.xlu0 %v5129_v27, %s4864_s27 }
  0xaf   : > { %961 = vrot.lane.b32.xlu1 %v5179_v30, %s4864_s27  ;;  %959 = vrot.lane.b32.xlu0 %v5182_v31, %s4864_s27 }
  0xb3   : > { %974 = vrot.lane.b32.xlu1 %v5172_v29, %s4865_s9  ;;  %972 = vrot.lane.b32.xlu0 %v5129_v27, %s4865_s9 }
  0xb7   : > { %978 = vrot.lane.b32.xlu1 %v5179_v30, %s4865_s9  ;;  %976 = vrot.lane.b32.xlu0 %v5182_v31, %s4865_s9 }
  0xbb   : > { %991 = vrot.lane.b32.xlu1 %v5172_v29, %s4866_s12  ;;  %989 = vrot.lane.b32.xlu0 %v5129_v27, %s4866_s12 }
  0xbf   : > { %995 = vrot.lane.b32.xlu1 %v5179_v30, %s4866_s12  ;;  %993 = vrot.lane.b32.xlu0 %v5182_v31, %s4866_s12 }
  0xc3   : > { %1008 = vrot.lane.b32.xlu1 %v5172_v29, %s4867_s13  ;;  %1006 = vrot.lane.b32.xlu0 %v5129_v27, %s4867_s13 }
  0xc7   : > { %1012 = vrot.lane.b32.xlu1 %v5179_v30, %s4867_s13  ;;  %1010 = vrot.lane.b32.xlu0 %v5182_v31, %s4867_s13 }
  0xcb   : > { %1025 = vrot.lane.b32.xlu1 %v5172_v29, %s4868_s15  ;;  %1023 = vrot.lane.b32.xlu0 %v5129_v27, %s4868_s15 }
  0xcf   : > { %1029 = vrot.lane.b32.xlu1 %v5179_v30, %s4868_s15  ;;  %1027 = vrot.lane.b32.xlu0 %v5182_v31, %s4868_s15 }
  0xd3   : > { %1042 = vrot.lane.b32.xlu1 %v5172_v29, %s4869_s16  ;;  %1040 = vrot.lane.b32.xlu0 %v5129_v27, %s4869_s16 }
  0xd7   : > { %1046 = vrot.lane.b32.xlu1 %v5179_v30, %s4869_s16  ;;  %1044 = vrot.lane.b32.xlu0 %v5182_v31, %s4869_s16 }
  0xdb   : > { %1059 = vrot.lane.b32.xlu1 %v5172_v29, %s4870_s17  ;;  %1057 = vrot.lane.b32.xlu0 %v5129_v27, %s4870_s17 }
  0xdd   : > { %v5232_v32 = vpop.permute.xlu1 %801  ;;  %v798_v33 = vpop.permute.xlu0 %797 }
  0xdf   : > { %1063 = vrot.lane.b32.xlu1 %v5179_v30, %s4870_s17  ;;  %1061 = vrot.lane.b32.xlu0 %v5182_v31, %s4870_s17 }
  0xe1   : > { %v5238_v34 = vpop.permute.xlu1 %803  ;;  %v800_v35 = vpop.permute.xlu0 %799 }
  0xe2   : > { %v807_v36 = vsel %vm805_vm2, %v800_v35, %v5232_v32  ;;  %v806_v37 = vsel %vm805_vm2, %v798_v33, %v800_v35  ;;  %v808_v24 = vsel %vm805_vm2, %v5232_v32, %v5238_v34 }
  0xe3   : > { %1076 = vrot.lane.b32.xlu1 %v5172_v29, %s4871_s20  ;;  %1074 = vrot.lane.b32.xlu0 %v5129_v27, %s4871_s20 }
  0xe4   : > { %1528 = vmatprep.subr.bf16.mxu0 %v807_v36 }
  0xe5   : > { %1529 = vmatpush1.bf16.msra.mxu0 %v806_v37  ;;  %v818_v38 = vpop.permute.xlu1 %817  ;;  %v816_v39 = vpop.permute.xlu0 %815 }
  0xe6   : > { %v824_v45 = vsel %vm823_vm3, %v816_v39, %v818_v38  ;;  %v5400_v39 = vld [vmem:[%s5120_s10 + $0x60] sm:$0xff] }
  0xe7   : > { %1080 = vrot.lane.b32.xlu1 %v5179_v30, %s4871_s20  ;;  %1078 = vrot.lane.b32.xlu0 %v5182_v31, %s4871_s20 }
  0xe9   : > { %v5257_v42 = vpop.permute.xlu1 %821  ;;  %v5259_v43 = vpop.permute.xlu0 %819 }
  0xea   : > { %v825_v44 = vsel %vm823_vm3, %v818_v38, %v5259_v43  ;;  %v826_v37 = vsel %vm823_vm3, %v5259_v43, %v5257_v42  ;;  %v5397_v38 = vld [vmem:[%s5120_s10 + $0x68] sm:$0xff]  ;;  %v5412_v42 = vld [vmem:[%s5120_s10 + $0x70] sm:$0xff] }
  0xeb   : > { %1107 = vrot.lane.b32.xlu1 %v5252_v40, %s4864_s27  ;;  %1105 = vrot.lane.b32.xlu0 %v5255_v41, %s4864_s27 }
  0xec   : > { %1530 = vmatprep.subr.bf16.mxu0 %v825_v44 }
  0xed   : > { %1531 = vmatpush1.bf16.msra.mxu0 %v824_v45  ;;  %v836_v48 = vpop.permute.xlu1 %835  ;;  %v834_v49 = vpop.permute.xlu0 %833 }
  0xee   : > { %v842_v53 = vsel %vm841_vm4, %v834_v49, %v836_v48 }
  0xef   : > { %1111 = vrot.lane.b32.xlu1 %v5269_v46, %s4864_s27  ;;  %1109 = vrot.lane.b32.xlu0 %v5272_v47, %s4864_s27 }
  0xf1   : > { %v5278_v50 = vpop.permute.xlu1 %839  ;;  %v5280_v51 = vpop.permute.xlu0 %837 }
  0xf2   : > { %v843_v52 = vsel %vm841_vm4, %v836_v48, %v5280_v51 }
  0xf3   : > { %1124 = vrot.lane.b32.xlu1 %v5252_v40, %s4865_s9  ;;  %1122 = vrot.lane.b32.xlu0 %v5255_v41, %s4865_s9 }
  0xf4   : > { %1532 = vmatprep.subr.bf16.mxu0 %v843_v52  ;;  %v5409_v52 = vld [vmem:[%s5120_s10 + $0x78] sm:$0xff] }
  0xf5   : > { %1533 = vmatpush1.bf16.msra.mxu0 %v842_v53  ;;  %v854_v54 = vpop.permute.xlu1 %853  ;;  %v852_v55 = vpop.permute.xlu0 %851 }
  0xf6   : > { %v860_v59 = vsel %vm859_vm5, %v852_v55, %v854_v54  ;;  %v844_v55 = vsel %vm841_vm4, %v5280_v51, %v5278_v50 }
  0xf7   : > { %1128 = vrot.lane.b32.xlu1 %v5269_v46, %s4865_s9  ;;  %1126 = vrot.lane.b32.xlu0 %v5272_v47, %s4865_s9 }
  0xf9   : > { %v5293_v56 = vpop.permute.xlu1 %857  ;;  %v5295_v57 = vpop.permute.xlu0 %855 }
  0xfa   : > { %v861_v58 = vsel %vm859_vm5, %v854_v54, %v5295_v57  ;;  %v862_v50 = vsel %vm859_vm5, %v5295_v57, %v5293_v56 }
  0xfb   : > { %1141 = vrot.lane.b32.xlu1 %v5252_v40, %s4866_s12  ;;  %1139 = vrot.lane.b32.xlu0 %v5255_v41, %s4866_s12 }
  0xfc   : > { %1534 = vmatprep.subr.bf16.mxu0 %v861_v58 }
  0xfd   : > { %1535 = vmatpush1.bf16.msra.mxu0 %v860_v59  ;;  %v872_v60 = vpop.permute.xlu1 %871  ;;  %v870_v61 = vpop.permute.xlu0 %869 }
  0xfe   : > { %v878_v1 = vsel %vm877_vm6, %v870_v61, %v872_v60 }
  0xff   : > { %1145 = vrot.lane.b32.xlu1 %v5269_v46, %s4866_s12  ;;  %1143 = vrot.lane.b32.xlu0 %v5272_v47, %s4866_s12 }
 0x101   : > { %v5308_v62 = vpop.permute.xlu1 %875  ;;  %v5310_v63 = vpop.permute.xlu0 %873 }
 0x102   : > { %v879_v0 = vsel %vm877_vm6, %v872_v60, %v5310_v63  ;;  %v880_v56 = vsel %vm877_vm6, %v5310_v63, %v5308_v62 }
 0x103   : > { %1158 = vrot.lane.b32.xlu1 %v5252_v40, %s4867_s13  ;;  %1156 = vrot.lane.b32.xlu0 %v5255_v41, %s4867_s13 }
 0x104   : > { %1536 = vmatprep.subr.bf16.mxu0 %v879_v0 }
 0x105   : > { %1537 = vmatpush1.bf16.msra.mxu0 %v878_v1  ;;  %v890_v2 = vpop.permute.xlu1 %889  ;;  %v888_v3 = vpop.permute.xlu0 %887 }
 0x106   : > { %v896_v7 = vsel %vm895_vm7, %v888_v3, %v890_v2 }
 0x107   : > { %1162 = vrot.lane.b32.xlu1 %v5269_v46, %s4867_s13  ;;  %1160 = vrot.lane.b32.xlu0 %v5272_v47, %s4867_s13 }
 0x109   : > { %v5323_v4 = vpop.permute.xlu1 %893  ;;  %v5325_v5 = vpop.permute.xlu0 %891 }
 0x10a   : > { %v897_v6 = vsel %vm895_vm7, %v890_v2, %v5325_v5  ;;  %v898_v62 = vsel %vm895_vm7, %v5325_v5, %v5323_v4 }
 0x10b   : > { %1175 = vrot.lane.b32.xlu1 %v5252_v40, %s4868_s15  ;;  %1173 = vrot.lane.b32.xlu0 %v5255_v41, %s4868_s15 }
 0x10c   : > { %1538 = vmatprep.subr.bf16.mxu0 %v897_v6 }
 0x10d   : > { %1539 = vmatpush1.bf16.msra.mxu0 %v896_v7  ;;  %v908_v8 = vpop.permute.xlu1 %907  ;;  %v906_v9 = vpop.permute.xlu0 %905 }
 0x10e   : > { %v914_v13 = vsel %vm913_vm8, %v906_v9, %v908_v8 }
 0x10f   : > { %1179 = vrot.lane.b32.xlu1 %v5269_v46, %s4868_s15  ;;  %1177 = vrot.lane.b32.xlu0 %v5272_v47, %s4868_s15 }
 0x111   : > { %v5338_v10 = vpop.permute.xlu1 %911  ;;  %v5340_v11 = vpop.permute.xlu0 %909 }
 0x112   : > { %v915_v12 = vsel %vm913_vm8, %v908_v8, %v5340_v11  ;;  %v916_v4 = vsel %vm913_vm8, %v5340_v11, %v5338_v10 }
 0x113   : > { %1192 = vrot.lane.b32.xlu1 %v5252_v40, %s4869_s16  ;;  %1190 = vrot.lane.b32.xlu0 %v5255_v41, %s4869_s16 }
 0x114   : > { %1540 = vmatprep.subr.bf16.mxu0 %v915_v12 }
 0x115   : > { %1541 = vmatpush1.bf16.msra.mxu0 %v914_v13  ;;  %v926_v14 = vpop.permute.xlu1 %925  ;;  %v924_v15 = vpop.permute.xlu0 %923 }
 0x116   : > { %v932_v19 = vsel %vm931_vm9, %v924_v15, %v926_v14 }
 0x117   : > { %1196 = vrot.lane.b32.xlu1 %v5269_v46, %s4869_s16  ;;  %1194 = vrot.lane.b32.xlu0 %v5272_v47, %s4869_s16 }
 0x119   : > { %v5353_v16 = vpop.permute.xlu1 %929  ;;  %v5355_v17 = vpop.permute.xlu0 %927 }
 0x11a   : > { %v933_v18 = vsel %vm931_vm9, %v926_v14, %v5355_v17  ;;  %v934_v10 = vsel %vm931_vm9, %v5355_v17, %v5353_v16 }
 0x11b   : > { %1209 = vrot.lane.b32.xlu1 %v5252_v40, %s4870_s17  ;;  %1207 = vrot.lane.b32.xlu0 %v5255_v41, %s4870_s17 }
 0x11c   : > { %1542 = vmatprep.subr.bf16.mxu0 %v933_v18 }
 0x11d   : > { %1543 = vmatpush1.bf16.msra.mxu0 %v932_v19  ;;  %v958_v21 = vpop.permute.xlu1 %957  ;;  %v956_v22 = vpop.permute.xlu0 %955 }
 0x11e   : > { %v963_v23 = vsel %vm805_vm2, %v956_v22, %v958_v21  ;;  %1612 = vmatprep.subr.bf16.mxu0 %v5182_v31 }
 0x11f   : > { %1213 = vrot.lane.b32.xlu1 %v5269_v46, %s4870_s17  ;;  %1211 = vrot.lane.b32.xlu0 %v5272_v47, %s4870_s17 }
 0x120   : > { %1571 = vmatprep.subr.bf16.mxu1 %v963_v23  ;;  %1559 = vmatmul.mubr.bf16.vlgmr.msra.gmra.mrb[0].mxu0 %v5367_v20 }
 0x121   : > { %1572 = vmatpush1.bf16.msra.mxu1 %v808_v24  ;;  %1613 = vmatpush1.bf16.msra.mxu0 %v5172_v29  ;;  %v962_v25 = vpop.permute.xlu1 %961  ;;  %v960_v26 = vpop.permute.xlu0 %959 }
 0x122   : > { %v965_v33 = vsel %vm805_vm2, %v960_v26, %v962_v25  ;;  %v964_v35 = vsel %vm805_vm2, %v958_v21, %v960_v26  ;;  %4557 = vmatprep.mubr.msk.bf16.mxu0 %vm1522_vm1, %v5159_v28 }
 0x123   : > { %1226 = vrot.lane.b32.xlu1 %v5252_v40, %s4871_s20  ;;  %1224 = vrot.lane.b32.xlu0 %v5255_v41, %s4871_s20 }
 0x124   : > { %1614 = vmatprep.subr.bf16.mxu0 %v965_v33 }
 0x125   : > { %1615 = vmatpush1.bf16.msra.mxu0 %v964_v35  ;;  %v975_v32 = vpop.permute.xlu1 %974  ;;  %v973_v34 = vpop.permute.xlu0 %972 }
 0x126   : > { %v980_v36 = vsel %vm823_vm3, %v973_v34, %v975_v32 }
 0x127   : > { %1230 = vrot.lane.b32.xlu1 %v5269_v46, %s4871_s20  ;;  %1228 = vrot.lane.b32.xlu0 %v5272_v47, %s4871_s20 }
 0x128   : > { %1573 = vmatprep.subr.bf16.mxu1 %v980_v36 }
 0x129   : > { %1574 = vmatpush1.bf16.msra.mxu1 %v826_v37  ;;  %v979_v44 = vpop.permute.xlu1 %978  ;;  %v977_v45 = vpop.permute.xlu0 %976 }
 0x12a   : > { %v982_v48 = vsel %vm823_vm3, %v977_v45, %v979_v44  ;;  %v981_v49 = vsel %vm823_vm3, %v975_v32, %v977_v45 }
 0x12b   : > { %1257 = vrot.lane.b32.xlu1 %v5397_v38, %s4864_s27  ;;  %1255 = vrot.lane.b32.xlu0 %v5400_v39, %s4864_s27 }
 0x12c   : > { %1616 = vmatprep.subr.bf16.mxu0 %v982_v48 }
 0x12d   : > { %1617 = vmatpush1.bf16.msra.mxu0 %v981_v49  ;;  %v992_v43 = vpop.permute.xlu1 %991  ;;  %v990_v53 = vpop.permute.xlu0 %989 }
 0x12e   : > { %v997_v54 = vsel %vm841_vm4, %v990_v53, %v992_v43 }
 0x12f   : > { %1261 = vrot.lane.b32.xlu1 %v5409_v52, %s4864_s27  ;;  %1259 = vrot.lane.b32.xlu0 %v5412_v42, %s4864_s27 }
 0x130   : > { %1575 = vmatprep.subr.bf16.mxu1 %v997_v54 }
 0x131   : > { %1576 = vmatpush1.bf16.msra.mxu1 %v844_v55  ;;  %v996_v58 = vpop.permute.xlu1 %995  ;;  %v994_v59 = vpop.permute.xlu0 %993 }
 0x132   : > { %v999_v60 = vsel %vm841_vm4, %v994_v59, %v996_v58  ;;  %v998_v61 = vsel %vm841_vm4, %v992_v43, %v994_v59 }
 0x133   : > { %1274 = vrot.lane.b32.xlu1 %v5397_v38, %s4865_s9  ;;  %1272 = vrot.lane.b32.xlu0 %v5400_v39, %s4865_s9 }
 0x134   : > { %1618 = vmatprep.subr.bf16.mxu0 %v999_v60 }
 0x135   : > { %1619 = vmatpush1.bf16.msra.mxu0 %v998_v61  ;;  %v1009_v0 = vpop.permute.xlu1 %1008  ;;  %v1007_v1 = vpop.permute.xlu0 %1006 }
 0x136   : > { %v1014_v2 = vsel %vm859_vm5, %v1007_v1, %v1009_v0 }
 0x137   : > { %1278 = vrot.lane.b32.xlu1 %v5409_v52, %s4865_s9  ;;  %1276 = vrot.lane.b32.xlu0 %v5412_v42, %s4865_s9 }
 0x138   : > { %1577 = vmatprep.subr.bf16.mxu1 %v1014_v2 }
 0x139   : > { %1578 = vmatpush1.bf16.msra.mxu1 %v862_v50  ;;  %v1013_v51 = vpop.permute.xlu1 %1012  ;;  %v1011_v3 = vpop.permute.xlu0 %1010 }
 0x13a   : > { %v1016_v6 = vsel %vm859_vm5, %v1011_v3, %v1013_v51  ;;  %v1015_v7 = vsel %vm859_vm5, %v1009_v0, %v1011_v3 }
 0x13b   : > { %1291 = vrot.lane.b32.xlu1 %v5397_v38, %s4866_s12  ;;  %1289 = vrot.lane.b32.xlu0 %v5400_v39, %s4866_s12 }
 0x13c   : > { %1620 = vmatprep.subr.bf16.mxu0 %v1016_v6 }
 0x13d   : > { %1621 = vmatpush1.bf16.msra.mxu0 %v1015_v7  ;;  %v1026_v8 = vpop.permute.xlu1 %1025  ;;  %v1024_v9 = vpop.permute.xlu0 %1023 }
 0x13e   : > { %v1031_v12 = vsel %vm877_vm6, %v1024_v9, %v1026_v8 }
 0x13f   : > { %1295 = vrot.lane.b32.xlu1 %v5409_v52, %s4866_s12  ;;  %1293 = vrot.lane.b32.xlu0 %v5412_v42, %s4866_s12 }
 0x140   : > { %1579 = vmatprep.subr.bf16.mxu1 %v1031_v12 }
 0x141   : > { %1580 = vmatpush1.bf16.msra.mxu1 %v880_v56  ;;  %v1030_v57 = vpop.permute.xlu1 %1029  ;;  %v1028_v13 = vpop.permute.xlu0 %1027 }
 0x142   : > { %v1033_v14 = vsel %vm877_vm6, %v1028_v13, %v1030_v57  ;;  %v1032_v15 = vsel %vm877_vm6, %v1026_v8, %v1028_v13 }
 0x143   : > { %1308 = vrot.lane.b32.xlu1 %v5397_v38, %s4867_s13  ;;  %1306 = vrot.lane.b32.xlu0 %v5400_v39, %s4867_s13 }
 0x144   : > { %1622 = vmatprep.subr.bf16.mxu0 %v1033_v14 }
 0x145   : > { %1623 = vmatpush1.bf16.msra.mxu0 %v1032_v15  ;;  %v1043_v18 = vpop.permute.xlu1 %1042  ;;  %v1041_v19 = vpop.permute.xlu0 %1040 }
 0x146   : > { %v1048_v21 = vsel %vm895_vm7, %v1041_v19, %v1043_v18 }
 0x147   : > { %1312 = vrot.lane.b32.xlu1 %v5409_v52, %s4867_s13  ;;  %1310 = vrot.lane.b32.xlu0 %v5412_v42, %s4867_s13 }
 0x148   : > { %1581 = vmatprep.subr.bf16.mxu1 %v1048_v21 }
 0x149   : > { %1582 = vmatpush1.bf16.msra.mxu1 %v898_v62  ;;  %v1047_v63 = vpop.permute.xlu1 %1046  ;;  %v1045_v22 = vpop.permute.xlu0 %1044 }
 0x14a   : > { %v1050_v23 = vsel %vm895_vm7, %v1045_v22, %v1047_v63  ;;  %v1049_v24 = vsel %vm895_vm7, %v1043_v18, %v1045_v22 }
 0x14b   : > { %1325 = vrot.lane.b32.xlu1 %v5397_v38, %s4868_s15  ;;  %1323 = vrot.lane.b32.xlu0 %v5400_v39, %s4868_s15 }
 0x14c   : > { %1624 = vmatprep.subr.bf16.mxu0 %v1050_v23 }
 0x14d   : > { %1625 = vmatpush1.bf16.msra.mxu0 %v1049_v24  ;;  %v1060_v25 = vpop.permute.xlu1 %1059  ;;  %v1058_v26 = vpop.permute.xlu0 %1057 }
 0x14e   : > { %v1065_v33 = vsel %vm913_vm8, %v1058_v26, %v1060_v25 }
 0x14f   : > { %1329 = vrot.lane.b32.xlu1 %v5409_v52, %s4868_s15  ;;  %1327 = vrot.lane.b32.xlu0 %v5412_v42, %s4868_s15 }
 0x150   : > { %1583 = vmatprep.subr.bf16.mxu1 %v1065_v33 }
 0x151   : > { %1584 = vmatpush1.bf16.msra.mxu1 %v916_v4  ;;  %v1064_v5 = vpop.permute.xlu1 %1063  ;;  %v1062_v35 = vpop.permute.xlu0 %1061 }
 0x152   : > { %v1067_v32 = vsel %vm913_vm8, %v1062_v35, %v1064_v5  ;;  %v1066_v34 = vsel %vm913_vm8, %v1060_v25, %v1062_v35 }
 0x153   : > { %1342 = vrot.lane.b32.xlu1 %v5397_v38, %s4869_s16  ;;  %1340 = vrot.lane.b32.xlu0 %v5400_v39, %s4869_s16 }
 0x154   : > { %1626 = vmatprep.subr.bf16.mxu0 %v1067_v32 }
 0x155   : > { %1627 = vmatpush1.bf16.msra.mxu0 %v1066_v34  ;;  %v1077_v36 = vpop.permute.xlu1 %1076  ;;  %v1075_v37 = vpop.permute.xlu0 %1074 }
 0x156   : > { %v1082_v44 = vsel %vm931_vm9, %v1075_v37, %v1077_v36 }
 0x157   : > { %1346 = vrot.lane.b32.xlu1 %v5409_v52, %s4869_s16  ;;  %1344 = vrot.lane.b32.xlu0 %v5412_v42, %s4869_s16 }
 0x158   : > { %1585 = vmatprep.subr.bf16.mxu1 %v1082_v44 }
 0x159   : > { %1586 = vmatpush1.bf16.msra.mxu1 %v934_v10  ;;  %v1081_v11 = vpop.permute.xlu1 %1080  ;;  %v1079_v45 = vpop.permute.xlu0 %1078 }
 0x15a   : > { %v1084_v48 = vsel %vm931_vm9, %v1079_v45, %v1081_v11  ;;  %v1083_v49 = vsel %vm931_vm9, %v1077_v36, %v1079_v45  ;;  %1655 = vmatprep.subr.bf16.mxu1 %v5252_v40 }
 0x15b   : > { %1359 = vrot.lane.b32.xlu1 %v5397_v38, %s4870_s17  ;;  %1357 = vrot.lane.b32.xlu0 %v5400_v39, %s4870_s17 }
 0x15c   : > { %1628 = vmatprep.subr.bf16.mxu0 %v1084_v48  ;;  %1602 = vmatmul.mubr.bf16.vlgmr.msra.gmra.mrb[0].mxu1 %v5367_v20 }
 0x15d   : > { %1629 = vmatpush1.bf16.msra.mxu0 %v1083_v49  ;;  %v1108_v16 = vpop.permute.xlu1 %1107  ;;  %v1106_v17 = vpop.permute.xlu0 %1105  ;;  %1656 = vmatpush1.bf16.msra.mxu1 %v5255_v41 }
 0x15e   : > { %1698 = vmatprep.subr.bf16.mxu0 %v5400_v39  ;;  %4558 = vmatprep.mubr.msk.bf16.mxu1 %vm1522_vm1, %v5159_v28  ;;  %v1113_v55 = vsel %vm805_vm2, %v1106_v17, %v1108_v16 }
 0x15f   : > { %1363 = vrot.lane.b32.xlu1 %v5409_v52, %s4870_s17  ;;  %1361 = vrot.lane.b32.xlu0 %v5412_v42, %s4870_s17 }
 0x160   : > { %1645 = vmatmul.mubr.bf16.vlgmr.msra.gmra.mrb[4].mxu0 %v5367_v20 }
 0x161   : > { %v5509_v43 = vpop.permute.xlu1 %1111  ;;  %v5511_v53 = vpop.permute.xlu0 %1109  ;;  %1699 = vmatpush1.bf16.msra.mxu0 %v5272_v47  ;;  %4559 = vmatprep.mubr.msk.bf16.mxu0 %vm1522_vm1, %v5159_v28 }
 0x162   : > { %v1114_v54 = vsel %vm805_vm2, %v1108_v16, %v5511_v53  ;;  %v1115_v17 = vsel %vm805_vm2, %v5511_v53, %v5509_v43 }
 0x163   : > { %1376 = vrot.lane.b32.xlu1 %v5397_v38, %s4871_s20  ;;  %1374 = vrot.lane.b32.xlu0 %v5400_v39, %s4871_s20 }
 0x164   : > { %1657 = vmatprep.subr.bf16.mxu1 %v1114_v54 }
 0x165   : > { %1658 = vmatpush1.bf16.msra.mxu1 %v1113_v55  ;;  %v1125_v58 = vpop.permute.xlu1 %1124  ;;  %v1123_v59 = vpop.permute.xlu0 %1122 }
 0x166   : > { %v1130_v1 = vsel %vm823_vm3, %v1123_v59, %v1125_v58 }
 0x167   : > { %1380 = vrot.lane.b32.xlu1 %v5409_v52, %s4871_s20  ;;  %1378 = vrot.lane.b32.xlu0 %v5412_v42, %s4871_s20 }
 0x169   : > { %v5527_v60 = vpop.permute.xlu1 %1128  ;;  %v5529_v61 = vpop.permute.xlu0 %1126 }
 0x16a   : > { %v1131_v0 = vsel %vm823_vm3, %v1125_v58, %v5529_v61 }
 0x16b   : > { %1824 = vrot.lane.b32.xlu1 %v5182_v31, %s4864_s27  ;;  %1822 = vrot.lane.b32.xlu0 %v5172_v29, %s4864_s27 }
 0x16c   : > { %1659 = vmatprep.subr.bf16.mxu1 %v1131_v0 }
 0x16d   : > { %1660 = vmatpush1.bf16.msra.mxu1 %v1130_v1  ;;  %v1142_v2 = vpop.permute.xlu1 %1141  ;;  %v1140_v50 = vpop.permute.xlu0 %1139 }
 0x16e   : > { %v1147_v7 = vsel %vm841_vm4, %v1140_v50, %v1142_v2 }
 0x16f   : > { %1967 = vrot.lane.b32.xlu1 %v5255_v41, %s4864_s27  ;;  %1820 = vrot.lane.b32.xlu0 %v5129_v27, %s4864_s27 }
 0x171   : > { %v5542_v51 = vpop.permute.xlu1 %1145  ;;  %v5544_v3 = vpop.permute.xlu0 %1143 }
 0x172   : > { %v1148_v6 = vsel %vm841_vm4, %v1142_v2, %v5544_v3 }
 0x173   : > { %1826 = vrot.lane.b32.xlu1 %v5179_v30, %s4864_s27  ;;  %1969 = vrot.lane.b32.xlu0 %v5252_v40, %s4864_s27 }
 0x174   : > { %1661 = vmatprep.subr.bf16.mxu1 %v1148_v6 }
 0x175   : > { %1662 = vmatpush1.bf16.msra.mxu1 %v1147_v7  ;;  %v1159_v8 = vpop.permute.xlu1 %1158  ;;  %v1157_v9 = vpop.permute.xlu0 %1156 }
 0x176   : > { %v1164_v13 = vsel %vm859_vm5, %v1157_v9, %v1159_v8 }
 0x177   : > { %1841 = vrot.lane.b32.xlu1 %v5182_v31, %s4865_s9  ;;  %1839 = vrot.lane.b32.xlu0 %v5172_v29, %s4865_s9 }
 0x179   : > { %v5557_v12 = vpop.permute.xlu1 %1162  ;;  %v5559_v56 = vpop.permute.xlu0 %1160 }
 0x17a   : > { %v1165_v57 = vsel %vm859_vm5, %v1159_v8, %v5559_v56 }
 0x17b   : > { %1984 = vrot.lane.b32.xlu1 %v5255_v41, %s4865_s9  ;;  %1837 = vrot.lane.b32.xlu0 %v5129_v27, %s4865_s9 }
 0x17c   : > { %1663 = vmatprep.subr.bf16.mxu1 %v1165_v57 }
 0x17d   : > { %1664 = vmatpush1.bf16.msra.mxu1 %v1164_v13  ;;  %v1176_v14 = vpop.permute.xlu1 %1175  ;;  %v1174_v15 = vpop.permute.xlu0 %1173 }
 0x17e   : > { %v1181_v62 = vsel %vm877_vm6, %v1174_v15, %v1176_v14 }
 0x17f   : > { %1843 = vrot.lane.b32.xlu1 %v5179_v30, %s4865_s9  ;;  %1986 = vrot.lane.b32.xlu0 %v5252_v40, %s4865_s9 }
 0x181   : > { %v5572_v18 = vpop.permute.xlu1 %1179  ;;  %v5574_v19 = vpop.permute.xlu0 %1177 }
 0x182   : > { %v1182_v21 = vsel %vm877_vm6, %v1176_v14, %v5574_v19 }
 0x183   : > { %1858 = vrot.lane.b32.xlu1 %v5182_v31, %s4866_s12  ;;  %1856 = vrot.lane.b32.xlu0 %v5172_v29, %s4866_s12 }
 0x184   : > { %1665 = vmatprep.subr.bf16.mxu1 %v1182_v21 }
 0x185   : > { %1666 = vmatpush1.bf16.msra.mxu1 %v1181_v62  ;;  %v1193_v63 = vpop.permute.xlu1 %1192  ;;  %v1191_v22 = vpop.permute.xlu0 %1190 }
 0x186   : > { %v1198_v26 = vsel %vm895_vm7, %v1191_v22, %v1193_v63 }
 0x187   : > { %2001 = vrot.lane.b32.xlu1 %v5255_v41, %s4866_s12  ;;  %1854 = vrot.lane.b32.xlu0 %v5129_v27, %s4866_s12 }
 0x189   : > { %v5587_v23 = vpop.permute.xlu1 %1196  ;;  %v5589_v24 = vpop.permute.xlu0 %1194 }
 0x18a   : > { %v1199_v25 = vsel %vm895_vm7, %v1193_v63, %v5589_v24 }
 0x18b   : > { %1860 = vrot.lane.b32.xlu1 %v5179_v30, %s4866_s12  ;;  %2003 = vrot.lane.b32.xlu0 %v5252_v40, %s4866_s12 }
 0x18c   : > { %1667 = vmatprep.subr.bf16.mxu1 %v1199_v25 }
 0x18d   : > { %1668 = vmatpush1.bf16.msra.mxu1 %v1198_v26  ;;  %v1210_v33 = vpop.permute.xlu1 %1209  ;;  %v1208_v4 = vpop.permute.xlu0 %1207 }
 0x18e   : > { %v1215_v34 = vsel %vm913_vm8, %v1208_v4, %v1210_v33 }
 0x18f   : > { %1875 = vrot.lane.b32.xlu1 %v5182_v31, %s4867_s13  ;;  %1873 = vrot.lane.b32.xlu0 %v5172_v29, %s4867_s13 }
 0x191   : > { %v5602_v5 = vpop.permute.xlu1 %1213  ;;  %v5604_v35 = vpop.permute.xlu0 %1211 }
 0x192   : > { %v1216_v32 = vsel %vm913_vm8, %v1210_v33, %v5604_v35 }
 0x193   : > { %2018 = vrot.lane.b32.xlu1 %v5255_v41, %s4867_s13  ;;  %1871 = vrot.lane.b32.xlu0 %v5129_v27, %s4867_s13 }
 0x194   : > { %1669 = vmatprep.subr.bf16.mxu1 %v1216_v32 }
 0x195   : > { %1670 = vmatpush1.bf16.msra.mxu1 %v1215_v34  ;;  %v1227_v36 = vpop.permute.xlu1 %1226  ;;  %v1225_v37 = vpop.permute.xlu0 %1224 }
 0x196   : > { %v1232_v45 = vsel %vm931_vm9, %v1225_v37, %v1227_v36 }
 0x197   : > { %1877 = vrot.lane.b32.xlu1 %v5179_v30, %s4867_s13  ;;  %2020 = vrot.lane.b32.xlu0 %v5252_v40, %s4867_s13 }
 0x199   : > { %v5617_v44 = vpop.permute.xlu1 %1230  ;;  %v5619_v10 = vpop.permute.xlu0 %1228 }
 0x19a   : > { %v1233_v11 = vsel %vm931_vm9, %v1227_v36, %v5619_v10 }
 0x19b   : > { %1892 = vrot.lane.b32.xlu1 %v5182_v31, %s4868_s15  ;;  %1890 = vrot.lane.b32.xlu0 %v5172_v29, %s4868_s15 }
 0x19c   : > { %1671 = vmatprep.subr.bf16.mxu1 %v1233_v11 }
 0x19d   : > { %1672 = vmatpush1.bf16.msra.mxu1 %v1232_v45  ;;  %v1258_v48 = vpop.permute.xlu1 %1257  ;;  %v1256_v49 = vpop.permute.xlu0 %1255 }
 0x19e   : > { %v1263_v16 = vsel %vm805_vm2, %v1256_v49, %v1258_v48  ;;  %1741 = vmatprep.subr.bf16.mxu1 %v5412_v42 }
 0x19f   : > { %2035 = vrot.lane.b32.xlu1 %v5255_v41, %s4868_s15  ;;  %1888 = vrot.lane.b32.xlu0 %v5129_v27, %s4868_s15 }
 0x1a0   : > { %1700 = vmatprep.subr.bf16.mxu0 %v1263_v16  ;;  %1688 = vmatmul.mubr.bf16.vlgmr.msra.gmra.mrb[4].mxu1 %v5367_v20 }
 0x1a1   : > { %1701 = vmatpush1.bf16.msra.mxu0 %v1115_v17  ;;  %1742 = vmatpush1.bf16.msra.mxu1 %v5397_v38  ;;  %v1262_v54 = vpop.permute.xlu1 %1261  ;;  %v1260_v55 = vpop.permute.xlu0 %1259 }
 0x1a2   : > { %v1265_v58 = vsel %vm805_vm2, %v1260_v55, %v1262_v54  ;;  %v1264_v59 = vsel %vm805_vm2, %v1258_v48, %v1260_v55  ;;  %4560 = vmatprep.mubr.msk.bf16.mxu1 %vm1522_vm1, %v5159_v28  ;;  %v1132_v28 = vsel %vm823_vm3, %v5529_v61, %v5527_v60  ;;  %v1149_v60 = vsel %vm841_vm4, %v5544_v3, %v5542_v51 }
 0x1a3   : > { %1894 = vrot.lane.b32.xlu1 %v5179_v30, %s4868_s15  ;;  %2037 = vrot.lane.b32.xlu0 %v5252_v40, %s4868_s15  ;;  %v1166_v51 = vsel %vm859_vm5, %v5559_v56, %v5557_v12  ;;  %v1183_v12 = vsel %vm877_vm6, %v5574_v19, %v5572_v18  ;;  %v1200_v18 = vsel %vm895_vm7, %v5589_v24, %v5587_v23 }
 0x1a4   : > { %1743 = vmatprep.subr.bf16.mxu1 %v1265_v58  ;;  %v1217_v23 = vsel %vm913_vm8, %v5604_v35, %v5602_v5  ;;  %v1234_v5 = vsel %vm931_vm9, %v5619_v10, %v5617_v44 }
 0x1a5   : > { %1744 = vmatpush1.bf16.msra.mxu1 %v1264_v59  ;;  %v1275_v43 = vpop.permute.xlu1 %1274  ;;  %v1273_v53 = vpop.permute.xlu0 %1272 }
 0x1a6   : > { %v1280_v0 = vsel %vm823_vm3, %v1273_v53, %v1275_v43 }
 0x1a7   : > { %1909 = vrot.lane.b32.xlu1 %v5182_v31, %s4869_s16  ;;  %1907 = vrot.lane.b32.xlu0 %v5172_v29, %s4869_s16 }
 0x1a8   : > { %1702 = vmatprep.subr.bf16.mxu0 %v1280_v0 }
 0x1a9   : > { %1703 = vmatpush1.bf16.msra.mxu0 %v1132_v28  ;;  %v1279_v1 = vpop.permute.xlu1 %1278  ;;  %v1277_v2 = vpop.permute.xlu0 %1276  ;;  %v5745_v28 = vld [vmem:[%s6704_s1 + $0x14] ss:$8 sps:$4 sm:$0xff]  }
 0x1aa   : > { %v1282_v50 = vsel %vm823_vm3, %v1277_v2, %v1279_v1  ;;  %v1281_v6 = vsel %vm823_vm3, %v1275_v43, %v1277_v2  ;;  %v4804_v1 = vld [vmem:[%s5120_s10 + $0x20] sm:$0xff] }
 0x1ab   : > { %2052 = vrot.lane.b32.xlu1 %v5255_v41, %s4869_s16  ;;  %1905 = vrot.lane.b32.xlu0 %v5129_v27, %s4869_s16 }
 0x1ac   : > { %1745 = vmatprep.subr.bf16.mxu1 %v1282_v50 }
 0x1ad   : > { %1746 = vmatpush1.bf16.msra.mxu1 %v1281_v6  ;;  %v1292_v7 = vpop.permute.xlu1 %1291  ;;  %v1290_v8 = vpop.permute.xlu0 %1289  ;;  %v4805_v6 = vld [vmem:[%s5120_s10 + $0x30] sm:$0xff] }
 0x1ae   : > { %v1297_v9 = vsel %vm841_vm4, %v1290_v8, %v1292_v7 }
 0x1af   : > { %1911 = vrot.lane.b32.xlu1 %v5179_v30, %s4869_s16  ;;  %2054 = vrot.lane.b32.xlu0 %v5252_v40, %s4869_s16 }
 0x1b0   : > { %1704 = vmatprep.subr.bf16.mxu0 %v1297_v9 }
 0x1b1   : > { %1705 = vmatpush1.bf16.msra.mxu0 %v1149_v60  ;;  %v1296_v61 = vpop.permute.xlu1 %1295  ;;  %v1294_v57 = vpop.permute.xlu0 %1293 }
 0x1b2   : > { %v1299_v13 = vsel %vm841_vm4, %v1294_v57, %v1296_v61  ;;  %v1298_v14 = vsel %vm841_vm4, %v1292_v7, %v1294_v57 }
 0x1b3   : > { %1926 = vrot.lane.b32.xlu1 %v5182_v31, %s4870_s17  ;;  %1924 = vrot.lane.b32.xlu0 %v5172_v29, %s4870_s17 }
 0x1b4   : > { %1747 = vmatprep.subr.bf16.mxu1 %v1299_v13 }
 0x1b5   : > { %1748 = vmatpush1.bf16.msra.mxu1 %v1298_v14  ;;  %v1309_v15 = vpop.permute.xlu1 %1308  ;;  %v1307_v21 = vpop.permute.xlu0 %1306 }
 0x1b6   : > { %v1314_v62 = vsel %vm859_vm5, %v1307_v21, %v1309_v15 }
 0x1b7   : > { %2069 = vrot.lane.b32.xlu1 %v5255_v41, %s4870_s17  ;;  %1922 = vrot.lane.b32.xlu0 %v5129_v27, %s4870_s17 }
 0x1b8   : > { %1706 = vmatprep.subr.bf16.mxu0 %v1314_v62 }
 0x1b9   : > { %1707 = vmatpush1.bf16.msra.mxu0 %v1166_v51  ;;  %v1313_v3 = vpop.permute.xlu1 %1312  ;;  %v1311_v63 = vpop.permute.xlu0 %1310 }
 0x1ba   : > { %v1316_v22 = vsel %vm859_vm5, %v1311_v63, %v1313_v3  ;;  %v1315_v25 = vsel %vm859_vm5, %v1309_v15, %v1311_v63 }
 0x1bb   : > { %1928 = vrot.lane.b32.xlu1 %v5179_v30, %s4870_s17  ;;  %2071 = vrot.lane.b32.xlu0 %v5252_v40, %s4870_s17 }
 0x1bc   : > { %1749 = vmatprep.subr.bf16.mxu1 %v1316_v22 }
 0x1bd   : > { %1750 = vmatpush1.bf16.msra.mxu1 %v1315_v25  ;;  %v1326_v26 = vpop.permute.xlu1 %1325  ;;  %v1324_v33 = vpop.permute.xlu0 %1323 }
 0x1be   : > { %v1331_v4 = vsel %vm877_vm6, %v1324_v33, %v1326_v26 }
 0x1bf   : > { %1943 = vrot.lane.b32.xlu1 %v5182_v31, %s4871_s20  ;;  %1941 = vrot.lane.b32.xlu0 %v5172_v29, %s4871_s20 }
 0x1c0   : > { %1708 = vmatprep.subr.bf16.mxu0 %v1331_v4 }
 0x1c1   : > { %1709 = vmatpush1.bf16.msra.mxu0 %v1183_v12  ;;  %v1330_v56 = vpop.permute.xlu1 %1329  ;;  %v1328_v32 = vpop.permute.xlu0 %1327 }
 0x1c2   : > { %v1333_v34 = vsel %vm877_vm6, %v1328_v32, %v1330_v56  ;;  %v1332_v36 = vsel %vm877_vm6, %v1326_v26, %v1328_v32 }
 0x1c3   : > { %2086 = vrot.lane.b32.xlu1 %v5255_v41, %s4871_s20  ;;  %1939 = vrot.lane.b32.xlu0 %v5129_v27, %s4871_s20 }
 0x1c4   : > { %1751 = vmatprep.subr.bf16.mxu1 %v1333_v34  ;;  %v4806_v34 = vld [vmem:[%s5120_s10 + $0x58] sm:$0xff] }
 0x1c5   : > { %1752 = vmatpush1.bf16.msra.mxu1 %v1332_v36  ;;  %v1343_v31 = vpop.permute.xlu1 %1342  ;;  %v1341_v37 = vpop.permute.xlu0 %1340 }
 0x1c6   : > { %v1348_v11 = vsel %vm895_vm7, %v1341_v37, %v1343_v31 }
 0x1c7   : > { %1945 = vrot.lane.b32.xlu1 %v5179_v30, %s4871_s20  ;;  %2088 = vrot.lane.b32.xlu0 %v5252_v40, %s4871_s20 }
 0x1c8   : > { %1710 = vmatprep.subr.bf16.mxu0 %v1348_v11 }
 0x1c9   : > { %1711 = vmatpush1.bf16.msra.mxu0 %v1200_v18  ;;  %v1347_v19 = vpop.permute.xlu1 %1346  ;;  %v1345_v27 = vpop.permute.xlu0 %1344 }
 0x1ca   : > { %v1350_v45 = vsel %vm895_vm7, %v1345_v27, %v1347_v19  ;;  %v1349_v48 = vsel %vm895_vm7, %v1343_v31, %v1345_v27  ;;  %v5825_v19 = vld [vmem:[%s5120_s10 + $0x50] sm:$0xff] }
 0x1cb   : > { %1973 = vrot.lane.b32.xlu1 %v5269_v46, %s4864_s27  ;;  %1971 = vrot.lane.b32.xlu0 %v5272_v47, %s4864_s27 }
 0x1cc   : > { %1753 = vmatprep.subr.bf16.mxu1 %v1350_v45 }
 0x1cd   : > { %1754 = vmatpush1.bf16.msra.mxu1 %v1349_v48  ;;  %v1360_v30 = vpop.permute.xlu1 %1359  ;;  %v1358_v40 = vpop.permute.xlu0 %1357 }
 0x1ce   : > { %v1365_v49 = vsel %vm913_vm8, %v1358_v40, %v1360_v30 }
 0x1cf   : > { %2118 = vrot.lane.b32.xlu1 %v5412_v42, %s4864_s27  ;;  %2116 = vrot.lane.b32.xlu0 %v5397_v38, %s4864_s27 }
 0x1d0   : > { %1712 = vmatprep.subr.bf16.mxu0 %v1365_v49 }
 0x1d1   : > { %1713 = vmatpush1.bf16.msra.mxu0 %v1217_v23  ;;  %v1364_v24 = vpop.permute.xlu1 %1363  ;;  %v1362_v16 = vpop.permute.xlu0 %1361 }
 0x1d2   : > { %v1367_v17 = vsel %vm913_vm8, %v1362_v16, %v1364_v24  ;;  %v1366_v54 = vsel %vm913_vm8, %v1360_v30, %v1362_v16 }
 0x1d3   : > { %1988 = vrot.lane.b32.xlu1 %v5272_v47, %s4865_s9  ;;  %2114 = vrot.lane.b32.xlu0 %v5400_v39, %s4864_s27 }
 0x1d4   : > { %1755 = vmatprep.subr.bf16.mxu1 %v1367_v17 }
 0x1d5   : > { %1756 = vmatpush1.bf16.msra.mxu1 %v1366_v54  ;;  %v1377_v55 = vpop.permute.xlu1 %1376  ;;  %v1375_v58 = vpop.permute.xlu0 %1374 }
 0x1d6   : > { %v1382_v59 = vsel %vm931_vm9, %v1375_v58, %v1377_v55 }
 0x1d7   : > { %2133 = vrot.lane.b32.xlu1 %v5397_v38, %s4865_s9  ;;  %1990 = vrot.lane.b32.xlu0 %v5269_v46, %s4865_s9 }
 0x1d8   : > { %1714 = vmatprep.subr.bf16.mxu0 %v1382_v59 }
 0x1d9   : > { %1715 = vmatpush1.bf16.msra.mxu0 %v1234_v5  ;;  %v1381_v35 = vpop.permute.xlu1 %1380  ;;  %v1379_v43 = vpop.permute.xlu0 %1378  ;;  %v5860_v5 = vld [vmem:[%s5120_s10 + $0x80] sm:$0xff] }
 0x1da   : > { %v1384_v53 = vsel %vm931_vm9, %v1379_v43, %v1381_v35  ;;  %v1383_v0 = vsel %vm931_vm9, %v1377_v55, %v1379_v43  ;;  %2523 = vmatprep.subr.bf16.mxu0 %v5172_v29 }
 0x1db   : > { %2131 = vrot.lane.b32.xlu1 %v5400_v39, %s4865_s9  ;;  %2135 = vrot.lane.b32.xlu0 %v5412_v42, %s4865_s9 }
 0x1dc   : > { %1757 = vmatprep.subr.bf16.mxu1 %v1384_v53  ;;  %1731 = vmatmul.mubr.bf16.vlgmr.msra.gmra.mrb[8].mxu0 %v5367_v20 }
 0x1dd   : > { %1758 = vmatpush1.bf16.msra.mxu1 %v1383_v0  ;;  %v1825_v44 = vpop.permute.xlu1 %1824  ;;  %v1823_v10 = vpop.permute.xlu0 %1822  ;;  %2524 = vmatpush1.bf16.msra.mxu0 %v4804_v1 }
 0x1de   : > { %v1829_v29 = vsel %vm805_vm2, %v1823_v10, %v1825_v44  ;;  %2566 = vmatprep.subr.bf16.mxu1 %v5255_v41  ;;  %4582 = vmatprep.mubr.msk.bf16.mxu0 %vm1522_vm1, %v5745_v28 }
 0x1df   : > { %2007 = vrot.lane.b32.xlu1 %v5269_v46, %s4866_s12  ;;  %2005 = vrot.lane.b32.xlu0 %v5272_v47, %s4866_s12 }
 0x1e0   : > { %2525 = vmatprep.subr.bf16.mxu0 %v1829_v29  ;;  %1774 = vmatmul.mubr.bf16.vlgmr.msra.gmra.mrb[8].mxu1 %v5367_v20 }
 0x1e1   : > { %v1968_v2 = vpop.permute.xlu1 %1967  ;;  %v1821_v50 = vpop.permute.xlu0 %1820  ;;  %2567 = vmatpush1.bf16.msra.mxu1 %v4805_v6  ;;  %4583 = vmatprep.mubr.msk.bf16.mxu1 %vm1522_vm1, %v5745_v28 }
 0x1e2   : > { %v1828_v41 = vsel %vm805_vm2, %v1821_v50, %v1823_v10  ;;  %v5876_v10 = vld [vmem:[%s5120_s10 + $0x98] sm:$0xff] }
 0x1e3   : > { %2152 = vrot.lane.b32.xlu1 %v5412_v42, %s4866_s12  ;;  %2150 = vrot.lane.b32.xlu0 %v5397_v38, %s4866_s12 }
 0x1e4   : > { %2526 = vmatpush1.bf16.msra.mxu0 %v1828_v41 }
 0x1e5   : > { %v1827_v7 = vpop.permute.xlu1 %1826  ;;  %v5770_v8 = vpop.permute.xlu0 %1969 }
 0x1e6   : > { %v1830_v20 = vsel %vm805_vm2, %v1825_v44, %v1827_v7  ;;  %v1975_v9 = vsel %vm805_vm2, %v1968_v2, %v5770_v8 }
 0x1e7   : > { %2022 = vrot.lane.b32.xlu1 %v5272_v47, %s4867_s13  ;;  %2148 = vrot.lane.b32.xlu0 %v5400_v39, %s4866_s12 }
 0x1e8   : > { %2568 = vmatprep.subr.bf16.mxu1 %v1975_v9 }
 0x1e9   : > { %2569 = vmatpush1.bf16.msra.mxu1 %v1830_v20  ;;  %v1842_v60 = vpop.permute.xlu1 %1841  ;;  %v1840_v61 = vpop.permute.xlu0 %1839 }
 0x1ea   : > { %v1846_v57 = vsel %vm823_vm3, %v1840_v61, %v1842_v60 }
 0x1eb   : > { %2167 = vrot.lane.b32.xlu1 %v5397_v38, %s4867_s13  ;;  %2024 = vrot.lane.b32.xlu0 %v5269_v46, %s4867_s13 }
 0x1ec   : > { %2527 = vmatprep.subr.bf16.mxu0 %v1846_v57 }
 0x1ed   : > { %v1985_v13 = vpop.permute.xlu1 %1984  ;;  %v1838_v14 = vpop.permute.xlu0 %1837 }
 0x1ee   : > { %v1845_v15 = vsel %vm823_vm3, %v1838_v14, %v1840_v61 }
 0x1ef   : > { %2165 = vrot.lane.b32.xlu1 %v5400_v39, %s4867_s13  ;;  %2169 = vrot.lane.b32.xlu0 %v5412_v42, %s4867_s13 }
 0x1f0   : > { %2528 = vmatpush1.bf16.msra.mxu0 %v1845_v15 }
 0x1f1   : > { %v1844_v21 = vpop.permute.xlu1 %1843  ;;  %v5789_v62 = vpop.permute.xlu0 %1986 }
 0x1f2   : > { %v1847_v51 = vsel %vm823_vm3, %v1842_v60, %v1844_v21  ;;  %v1992_v3 = vsel %vm823_vm3, %v1985_v13, %v5789_v62 }
 0x1f3   : > { %2041 = vrot.lane.b32.xlu1 %v5269_v46, %s4868_s15  ;;  %2039 = vrot.lane.b32.xlu0 %v5272_v47, %s4868_s15 }
 0x1f4   : > { %2570 = vmatprep.subr.bf16.mxu1 %v1992_v3 }
 0x1f5   : > { %2571 = vmatpush1.bf16.msra.mxu1 %v1847_v51  ;;  %v1859_v63 = vpop.permute.xlu1 %1858  ;;  %v1857_v22 = vpop.permute.xlu0 %1856 }
 0x1f6   : > { %v1863_v25 = vsel %vm841_vm4, %v1857_v22, %v1859_v63 }
 0x1f7   : > { %2186 = vrot.lane.b32.xlu1 %v5412_v42, %s4868_s15  ;;  %2184 = vrot.lane.b32.xlu0 %v5397_v38, %s4868_s15 }
 0x1f8   : > { %2529 = vmatprep.subr.bf16.mxu0 %v1863_v25  ;;  %v5919_v25 = vld [vmem:[%s6704_s1 + $0x10] ss:$8 sps:$4 sm:$0xff]  }
 0x1f9   : > { %v2002_v26 = vpop.permute.xlu1 %2001  ;;  %v1855_v33 = vpop.permute.xlu0 %1854 }
 0x1fa   : > { %v1862_v46 = vsel %vm841_vm4, %v1855_v33, %v1857_v22 }
 0x1fb   : > { %2056 = vrot.lane.b32.xlu1 %v5272_v47, %s4869_s16  ;;  %2182 = vrot.lane.b32.xlu0 %v5400_v39, %s4868_s15 }
 0x1fc   : > { %2530 = vmatpush1.bf16.msra.mxu0 %v1862_v46 }
 0x1fd   : > { %v1861_v4 = vpop.permute.xlu1 %1860  ;;  %v5808_v12 = vpop.permute.xlu0 %2003 }
 0x1fe   : > { %v1864_v56 = vsel %vm841_vm4, %v1859_v63, %v1861_v4  ;;  %v2009_v32 = vsel %vm841_vm4, %v2002_v26, %v5808_v12 }
 0x1ff   : > { %2201 = vrot.lane.b32.xlu1 %v5397_v38, %s4869_s16  ;;  %2058 = vrot.lane.b32.xlu0 %v4806_v34, %s4869_s16 }
 0x200   : > { %2572 = vmatprep.subr.bf16.mxu1 %v2009_v32 }
 0x201   : > { %2573 = vmatpush1.bf16.msra.mxu1 %v1864_v56  ;;  %v1876_v47 = vpop.permute.xlu1 %1875  ;;  %v1874_v36 = vpop.permute.xlu0 %1873  ;;  %v4808_v56 = vld [vmem:[%s5120_s10 + $0x48] sm:$0xff] }
 0x202   : > { %v1880_v31 = vsel %vm859_vm5, %v1874_v36, %v1876_v47 }
 0x203   : > { %2199 = vrot.lane.b32.xlu1 %v5400_v39, %s4869_s16  ;;  %2203 = vrot.lane.b32.xlu0 %v5412_v42, %s4869_s16 }
 0x204   : > { %2531 = vmatprep.subr.bf16.mxu0 %v1880_v31  ;;  %v4809_v31 = vld [vmem:[%s5120_s10 + $0x68] sm:$0xff] }
 0x205   : > { %v2019_v37 = vpop.permute.xlu1 %2018  ;;  %v1872_v11 = vpop.permute.xlu0 %1871 }
 0x206   : > { %v1879_v18 = vsel %vm859_vm5, %v1872_v11, %v1874_v36 }
 0x207   : > { %2075 = vrot.lane.b32.xlu1 %v4806_v34, %s4870_s17  ;;  %2073 = vrot.lane.b32.xlu0 %v5825_v19, %s4870_s17 }
 0x208   : > { %2532 = vmatpush1.bf16.msra.mxu0 %v1879_v18 }
 0x209   : > { %v1878_v27 = vpop.permute.xlu1 %1877  ;;  %v5829_v45 = vpop.permute.xlu0 %2020 }
 0x20a   : > { %v1881_v48 = vsel %vm859_vm5, %v1876_v47, %v1878_v27  ;;  %v2026_v30 = vsel %vm859_vm5, %v2019_v37, %v5829_v45 }
 0x20b   : > { %2220 = vrot.lane.b32.xlu1 %v5412_v42, %s4870_s17  ;;  %2218 = vrot.lane.b32.xlu0 %v5397_v38, %s4870_s17 }
 0x20c   : > { %2574 = vmatprep.subr.bf16.mxu1 %v2026_v30 }
 0x20d   : > { %2575 = vmatpush1.bf16.msra.mxu1 %v1881_v48  ;;  %v1893_v40 = vpop.permute.xlu1 %1892  ;;  %v1891_v49 = vpop.permute.xlu0 %1890  ;;  %v4811_v48 = vld [vmem:[%s5120_s10 + $0x78] sm:$0xff] }
 0x20e   : > { %v1897_v23 = vsel %vm877_vm6, %v1891_v49, %v1893_v40 }
 0x20f   : > { %2090 = vrot.lane.b32.xlu1 %v5825_v19, %s4871_s20  ;;  %2216 = vrot.lane.b32.xlu0 %v5400_v39, %s4870_s17 }
 0x210   : > { %2533 = vmatprep.subr.bf16.mxu0 %v1897_v23 }
 0x211   : > { %v2036_v24 = vpop.permute.xlu1 %2035  ;;  %v1889_v16 = vpop.permute.xlu0 %1888 }
 0x212   : > { %v1896_v17 = vsel %vm877_vm6, %v1889_v16, %v1891_v49 }
 0x213   : > { %2235 = vrot.lane.b32.xlu1 %v5397_v38, %s4871_s20  ;;  %2092 = vrot.lane.b32.xlu0 %v4806_v34, %s4871_s20  ;;  %v5857_v38 = vld [vmem:[%s5120_s10 + $0x88] sm:$0xff] }
 0x214   : > { %2534 = vmatpush1.bf16.msra.mxu0 %v1896_v17 }
 0x215   : > { %v1895_v54 = vpop.permute.xlu1 %1894  ;;  %v5847_v55 = vpop.permute.xlu0 %2037 }
 0x216   : > { %v1898_v58 = vsel %vm877_vm6, %v1893_v40, %v1895_v54  ;;  %v2043_v59 = vsel %vm877_vm6, %v2036_v24, %v5847_v55 }
 0x217   : > { %2233 = vrot.lane.b32.xlu1 %v5400_v39, %s4871_s20  ;;  %2237 = vrot.lane.b32.xlu0 %v5412_v42, %s4871_s20  ;;  %v5868_v39 = vld [vmem:[%s5120_s10 + $0x90] sm:$0xff] }
 0x218   : > { %2576 = vmatprep.subr.bf16.mxu1 %v2043_v59 }
 0x219   : > { %2577 = vmatpush1.bf16.msra.mxu1 %v1898_v58  ;;  %v1910_v35 = vpop.permute.xlu1 %1909  ;;  %v1908_v43 = vpop.permute.xlu0 %1907 }
 0x21a   : > { %v1914_v53 = vsel %vm895_vm7, %v1908_v43, %v1910_v35 }
 0x21b   : > { %2266 = vrot.lane.b32.xlu1 %v5857_v38, %s4864_s27  ;;  %2264 = vrot.lane.b32.xlu0 %v5860_v5, %s4864_s27 }
 0x21c   : > { %2535 = vmatprep.subr.bf16.mxu0 %v1914_v53 }
 0x21d   : > { %v2053_v42 = vpop.permute.xlu1 %2052  ;;  %v1906_v0 = vpop.permute.xlu0 %1905 }
 0x21e   : > { %v1913_v44 = vsel %vm895_vm7, %v1906_v0, %v1908_v43 }
 0x21f   : > { %2268 = vrot.lane.b32.xlu1 %v5868_v39, %s4864_s27  ;;  %2120 = vrot.lane.b32.xlu0 %v5409_v52, %s4864_s27 }
 0x220   : > { %2536 = vmatpush1.bf16.msra.mxu0 %v1913_v44 }
 0x221   : > { %v1912_v1 = vpop.permute.xlu1 %1911  ;;  %v5878_v29 = vpop.permute.xlu0 %2054 }
 0x222   : > { %v1915_v2 = vsel %vm895_vm7, %v1910_v35, %v1912_v1  ;;  %v2060_v50 = vsel %vm895_vm7, %v2053_v42, %v5878_v29 }
 0x223   : > { %2281 = vrot.lane.b32.xlu1 %v5860_v5, %s4865_s9  ;;  %2270 = vrot.lane.b32.xlu0 %v5876_v10, %s4864_s27 }
 0x224   : > { %2578 = vmatprep.subr.bf16.mxu1 %v2060_v50 }
 0x225   : > { %2579 = vmatpush1.bf16.msra.mxu1 %v1915_v2  ;;  %v1927_v6 = vpop.permute.xlu1 %1926  ;;  %v1925_v41 = vpop.permute.xlu0 %1924 }
 0x226   : > { %v1931_v7 = vsel %vm913_vm8, %v1925_v41, %v1927_v6 }
 0x227   : > { %2137 = vrot.lane.b32.xlu1 %v5409_v52, %s4865_s9  ;;  %2283 = vrot.lane.b32.xlu0 %v5857_v38, %s4865_s9 }
 0x228   : > { %2537 = vmatprep.subr.bf16.mxu0 %v1931_v7 }
 0x229   : > { %v2070_v20 = vpop.permute.xlu1 %2069  ;;  %v1923_v9 = vpop.permute.xlu0 %1922 }
 0x22a   : > { %v1930_v60 = vsel %vm913_vm8, %v1923_v9, %v1925_v41 }
 0x22b   : > { %2287 = vrot.lane.b32.xlu1 %v5876_v10, %s4865_s9  ;;  %2285 = vrot.lane.b32.xlu0 %v5868_v39, %s4865_s9 }
 0x22c   : > { %2538 = vmatpush1.bf16.msra.mxu0 %v1930_v60 }
 0x22d   : > { %v1929_v61 = vpop.permute.xlu1 %1928  ;;  %v5897_v57 = vpop.permute.xlu0 %2071 }
 0x22e   : > { %v1932_v13 = vsel %vm913_vm8, %v1927_v6, %v1929_v61  ;;  %v2077_v14 = vsel %vm913_vm8, %v2070_v20, %v5897_v57 }
 0x22f   : > { %2300 = vrot.lane.b32.xlu1 %v5857_v38, %s4866_s12  ;;  %2298 = vrot.lane.b32.xlu0 %v5860_v5, %s4866_s12 }
 0x230   : > { %2580 = vmatprep.subr.bf16.mxu1 %v2077_v14  ;;  %v6017_v14 = vld [vmem:[%s5120_s10 + $0x50] sm:$0xff] }
 0x231   : > { %2581 = vmatpush1.bf16.msra.mxu1 %v1932_v13  ;;  %v1944_v15 = vpop.permute.xlu1 %1943  ;;  %v1942_v21 = vpop.permute.xlu0 %1941 }
 0x232   : > { %v1948_v51 = vsel %vm931_vm9, %v1942_v21, %v1944_v15 }
 0x233   : > { %2302 = vrot.lane.b32.xlu1 %v5868_v39, %s4866_s12  ;;  %2154 = vrot.lane.b32.xlu0 %v5409_v52, %s4866_s12 }
 0x234   : > { %2539 = vmatprep.subr.bf16.mxu0 %v1948_v51 }
 0x235   : > { %v2087_v3 = vpop.permute.xlu1 %2086  ;;  %v1940_v63 = vpop.permute.xlu0 %1939 }
 0x236   : > { %v1947_v22 = vsel %vm931_vm9, %v1940_v63, %v1942_v21  ;;  %v6034_v63 = vld [vmem:[%s5120_s10 + $0x40] sm:$0xff] }
 0x237   : > { %2315 = vrot.lane.b32.xlu1 %v5860_v5, %s4867_s13  ;;  %2304 = vrot.lane.b32.xlu0 %v5876_v10, %s4866_s12 }
 0x238   : > { %2540 = vmatpush1.bf16.msra.mxu0 %v1947_v22 }
 0x239   : > { %v1946_v26 = vpop.permute.xlu1 %1945  ;;  %v5921_v33 = vpop.permute.xlu0 %2088  ;;  %2609 = vmatprep.subr.bf16.mxu0 %v5825_v19 }
 0x23a   : > { %v1949_v46 = vsel %vm931_vm9, %v1944_v15, %v1946_v26  ;;  %v2094_v4 = vsel %vm931_vm9, %v2087_v3, %v5921_v33  ;;  %v6020_v15 = vld [vmem:[%s5120_s10 + $0x48] sm:$0xff]  ;;  %v6031_v3 = vld [vmem:[%s5120_s10 + $0x60] sm:$0xff] }
 0x23b   : > { %2171 = vrot.lane.b32.xlu1 %v5409_v52, %s4867_s13  ;;  %2317 = vrot.lane.b32.xlu0 %v5857_v38, %s4867_s13 }
 0x23c   : > { %2582 = vmatprep.subr.bf16.mxu1 %v2094_v4  ;;  %2556 = vmatmul.mubr.bf16.vlgmr.msra.gmra.mrb[0].mxu0 %v5919_v25  ;;  %v6042_v4 = vld [vmem:[%s5120_s10 + $0x58] sm:$0xff] }
 0x23d   : > { %2583 = vmatpush1.bf16.msra.mxu1 %v1949_v46  ;;  %2610 = vmatpush1.bf16.msra.mxu0 %v4808_v56  ;;  %v1974_v32 = vpop.permute.xlu1 %1973  ;;  %v1972_v34 = vpop.permute.xlu0 %1971  ;;  %v6045_v56 = vld [vmem:[%s5120_s10 + $0x68] sm:$0xff] }
 0x23e   : > { %v1977_v47 = vsel %vm805_vm2, %v1972_v34, %v1974_v32  ;;  %v1976_v36 = vsel %vm805_vm2, %v5770_v8, %v1972_v34  ;;  %2652 = vmatprep.subr.bf16.mxu1 %v4809_v31  ;;  %4584 = vmatprep.mubr.msk.bf16.mxu0 %vm1522_vm1, %v5745_v28  ;;  %v4810_v8 = vld [vmem:[%s5120_s10 + $0x60] sm:$0xff] }
 0x23f   : > { %2321 = vrot.lane.b32.xlu1 %v5876_v10, %s4867_s13  ;;  %2319 = vrot.lane.b32.xlu0 %v5868_v39, %s4867_s13 }
 0x240   : > { %2611 = vmatprep.subr.bf16.mxu0 %v1977_v47  ;;  %2599 = vmatmul.mubr.bf16.vlgmr.msra.gmra.mrb[0].mxu1 %v5919_v25 }
 0x241   : > { %2612 = vmatpush1.bf16.msra.mxu0 %v1976_v36  ;;  %v5944_v52 = vpop.permute.xlu1 %2118  ;;  %v2117_v37 = vpop.permute.xlu0 %2116  ;;  %2653 = vmatpush1.bf16.msra.mxu1 %v4810_v8 }
 0x242   : > { %v2123_v11 = vsel %vm805_vm2, %v2117_v37, %v5944_v52  ;;  %4585 = vmatprep.mubr.msk.bf16.mxu1 %vm1522_vm1, %v5745_v28 }
 0x243   : > { %2334 = vrot.lane.b32.xlu1 %v5857_v38, %s4868_s15  ;;  %2332 = vrot.lane.b32.xlu0 %v5860_v5, %s4868_s15 }
 0x244   : > { %2654 = vmatprep.subr.bf16.mxu1 %v2123_v11 }
 0x245   : > { %v1989_v18 = vpop.permute.xlu1 %1988  ;;  %v2115_v19 = vpop.permute.xlu0 %2114 }
 0x246   : > { %v2122_v27 = vsel %vm805_vm2, %v2115_v19, %v2117_v37  ;;  %v1993_v23 = vsel %vm823_vm3, %v5789_v62, %v1989_v18 }
 0x247   : > { %2336 = vrot.lane.b32.xlu1 %v5868_v39, %s4868_s15  ;;  %2188 = vrot.lane.b32.xlu0 %v4811_v48, %s4868_s15 }
 0x248   : > { %2655 = vmatpush1.bf16.msra.mxu1 %v2122_v27 }
 0x249   : > { %v2134_v30 = vpop.permute.xlu1 %2133  ;;  %v1991_v40 = vpop.permute.xlu0 %1990 }
 0x24a   : > { %v1994_v49 = vsel %vm823_vm3, %v1989_v18, %v1991_v40 }
 0x24b   : > { %2349 = vrot.lane.b32.xlu1 %v5860_v5, %s4869_s16  ;;  %2338 = vrot.lane.b32.xlu0 %v5876_v10, %s4868_s15 }
 0x24c   : > { %2613 = vmatprep.subr.bf16.mxu0 %v1994_v49 }
 0x24d   : > { %2614 = vmatpush1.bf16.msra.mxu0 %v1993_v23  ;;  %v2132_v24 = vpop.permute.xlu1 %2131  ;;  %v5967_v16 = vpop.permute.xlu0 %2135 }
 0x24e   : > { %v2139_v17 = vsel %vm823_vm3, %v2132_v24, %v2134_v30  ;;  %v2140_v54 = vsel %vm823_vm3, %v2134_v30, %v5967_v16 }
 0x24f   : > { %2205 = vrot.lane.b32.xlu1 %v4811_v48, %s4869_s16  ;;  %2351 = vrot.lane.b32.xlu0 %v5857_v38, %s4869_s16 }
 0x250   : > { %2656 = vmatprep.subr.bf16.mxu1 %v2140_v54 }
 0x251   : > { %2657 = vmatpush1.bf16.msra.mxu1 %v2139_v17  ;;  %v2008_v58 = vpop.permute.xlu1 %2007  ;;  %v2006_v59 = vpop.permute.xlu0 %2005 }
 0x252   : > { %v2011_v62 = vsel %vm841_vm4, %v2006_v59, %v2008_v58  ;;  %v2010_v35 = vsel %vm841_vm4, %v5808_v12, %v2006_v59 }
 0x253   : > { %2355 = vrot.lane.b32.xlu1 %v5876_v10, %s4869_s16  ;;  %2353 = vrot.lane.b32.xlu0 %v5868_v39, %s4869_s16 }
 0x254   : > { %2615 = vmatprep.subr.bf16.mxu0 %v2011_v62 }
 0x255   : > { %2616 = vmatpush1.bf16.msra.mxu0 %v2010_v35  ;;  %v5982_v43 = vpop.permute.xlu1 %2152  ;;  %v2151_v53 = vpop.permute.xlu0 %2150 }
 0x256   : > { %v2157_v42 = vsel %vm841_vm4, %v2151_v53, %v5982_v43 }
 0x257   : > { %2368 = vrot.lane.b32.xlu1 %v5857_v38, %s4870_s17  ;;  %2366 = vrot.lane.b32.xlu0 %v5860_v5, %s4870_s17 }
 0x258   : > { %2658 = vmatprep.subr.bf16.mxu1 %v2157_v42 }
 0x259   : > { %v2023_v12 = vpop.permute.xlu1 %2022  ;;  %v2149_v0 = vpop.permute.xlu0 %2148 }
 0x25a   : > { %v2156_v44 = vsel %vm841_vm4, %v2149_v0, %v2151_v53  ;;  %v2027_v6 = vsel %vm859_vm5, %v5829_v45, %v2023_v12 }
 0x25b   : > { %2370 = vrot.lane.b32.xlu1 %v5868_v39, %s4870_s17  ;;  %2222 = vrot.lane.b32.xlu0 %v4811_v48, %s4870_s17 }
 0x25c   : > { %2659 = vmatpush1.bf16.msra.mxu1 %v2156_v44 }
 0x25d   : > { %v2168_v1 = vpop.permute.xlu1 %2167  ;;  %v2025_v2 = vpop.permute.xlu0 %2024 }
 0x25e   : > { %v2028_v50 = vsel %vm859_vm5, %v2023_v12, %v2025_v2  ;;  %v4812_v12 = vld [vmem:[%s5120_s10 + $0x70] sm:$0xff] }
 0x25f   : > { %2383 = vrot.lane.b32.xlu1 %v5860_v5, %s4871_s20  ;;  %2372 = vrot.lane.b32.xlu0 %v5876_v10, %s4870_s17 }
 0x260   : > { %2617 = vmatprep.subr.bf16.mxu0 %v2028_v50 }
 0x261   : > { %2618 = vmatpush1.bf16.msra.mxu0 %v2027_v6  ;;  %v2166_v41 = vpop.permute.xlu1 %2165  ;;  %v6001_v7 = vpop.permute.xlu0 %2169 }
 0x262   : > { %v2173_v20 = vsel %vm859_vm5, %v2166_v41, %v2168_v1  ;;  %v2174_v9 = vsel %vm859_vm5, %v2168_v1, %v6001_v7 }
 0x263   : > { %2239 = vrot.lane.b32.xlu1 %v4811_v48, %s4871_s20  ;;  %2385 = vrot.lane.b32.xlu0 %v5857_v38, %s4871_s20 }
 0x264   : > { %2660 = vmatprep.subr.bf16.mxu1 %v2174_v9 }
 0x265   : > { %2661 = vmatpush1.bf16.msra.mxu1 %v2173_v20  ;;  %v2042_v60 = vpop.permute.xlu1 %2041  ;;  %v2040_v45 = vpop.permute.xlu0 %2039 }
 0x266   : > { %v2045_v61 = vsel %vm877_vm6, %v2040_v45, %v2042_v60  ;;  %v2044_v13 = vsel %vm877_vm6, %v5847_v55, %v2040_v45 }
 0x267   : > { %2389 = vrot.lane.b32.xlu1 %v5876_v10, %s4871_s20  ;;  %2387 = vrot.lane.b32.xlu0 %v5868_v39, %s4871_s20 }
 0x268   : > { %2619 = vmatprep.subr.bf16.mxu0 %v2045_v61 }
 0x269   : > { %2620 = vmatpush1.bf16.msra.mxu0 %v2044_v13  ;;  %v6022_v21 = vpop.permute.xlu1 %2186  ;;  %v2185_v51 = vpop.permute.xlu0 %2184 }
 0x26a   : > { %v2191_v55 = vsel %vm877_vm6, %v2185_v51, %v6022_v21 }
 0x26b   : > { %2868 = vrot.lane.b32.xlu1 %v6017_v14, %s4864_s27  ;;  %2866 = vrot.lane.b32.xlu0 %v6020_v15, %s4864_s27 }
 0x26c   : > { %2662 = vmatprep.subr.bf16.mxu1 %v2191_v55 }
 0x26d   : > { %v2057_v22 = vpop.permute.xlu1 %2056  ;;  %v2183_v26 = vpop.permute.xlu0 %2182 }
 0x26e   : > { %v2190_v46 = vsel %vm877_vm6, %v2183_v26, %v2185_v51  ;;  %v2061_v36 = vsel %vm895_vm7, %v5878_v29, %v2057_v22 }
 0x26f   : > { %3011 = vrot.lane.b32.xlu1 %v6031_v3, %s4864_s27  ;;  %2864 = vrot.lane.b32.xlu0 %v6034_v63, %s4864_s27 }
 0x270   : > { %2663 = vmatpush1.bf16.msra.mxu1 %v2190_v46 }
 0x271   : > { %v2202_v32 = vpop.permute.xlu1 %2201  ;;  %v2059_v34 = vpop.permute.xlu0 %2058 }
 0x272   : > { %v2062_v47 = vsel %vm895_vm7, %v2057_v22, %v2059_v34 }
 0x273   : > { %2870 = vrot.lane.b32.xlu1 %v6042_v4, %s4864_s27  ;;  %3013 = vrot.lane.b32.xlu0 %v6045_v56, %s4864_s27 }
 0x274   : > { %2621 = vmatprep.subr.bf16.mxu0 %v2062_v47 }
 0x275   : > { %2622 = vmatpush1.bf16.msra.mxu0 %v2061_v36  ;;  %v2200_v31 = vpop.permute.xlu1 %2199  ;;  %v6054_v37 = vpop.permute.xlu0 %2203 }
 0x276   : > { %v2207_v8 = vsel %vm895_vm7, %v2200_v31, %v2202_v32  ;;  %v2208_v11 = vsel %vm895_vm7, %v2202_v32, %v6054_v37 }
 0x277   : > { %2885 = vrot.lane.b32.xlu1 %v6017_v14, %s4865_s9  ;;  %2883 = vrot.lane.b32.xlu0 %v6020_v15, %s4865_s9 }
 0x278   : > { %2664 = vmatprep.subr.bf16.mxu1 %v2208_v11 }
 0x279   : > { %2665 = vmatpush1.bf16.msra.mxu1 %v2207_v8  ;;  %v2076_v18 = vpop.permute.xlu1 %2075  ;;  %v2074_v19 = vpop.permute.xlu0 %2073 }
 0x27a   : > { %v2079_v29 = vsel %vm913_vm8, %v2074_v19, %v2076_v18  ;;  %v2078_v27 = vsel %vm913_vm8, %v5897_v57, %v2074_v19 }
 0x27b   : > { %3028 = vrot.lane.b32.xlu1 %v6031_v3, %s4865_s9  ;;  %2881 = vrot.lane.b32.xlu0 %v6034_v63, %s4865_s9 }
 0x27c   : > { %2623 = vmatprep.subr.bf16.mxu0 %v2079_v29 }
 0x27d   : > { %2624 = vmatpush1.bf16.msra.mxu0 %v2078_v27  ;;  %v6070_v48 = vpop.permute.xlu1 %2220  ;;  %v2219_v30 = vpop.permute.xlu0 %2218 }
 0x27e   : > { %v2225_v40 = vsel %vm913_vm8, %v2219_v30, %v6070_v48 }
 0x27f   : > { %2887 = vrot.lane.b32.xlu1 %v6042_v4, %s4865_s9  ;;  %3030 = vrot.lane.b32.xlu0 %v6045_v56, %s4865_s9 }
 0x280   : > { %2666 = vmatprep.subr.bf16.mxu1 %v2225_v40 }
 0x281   : > { %v2091_v57 = vpop.permute.xlu1 %2090  ;;  %v2217_v49 = vpop.permute.xlu0 %2216 }
 0x282   : > { %v2224_v23 = vsel %vm913_vm8, %v2217_v49, %v2219_v30  ;;  %v2095_v58 = vsel %vm931_vm9, %v5921_v33, %v2091_v57 }
 0x283   : > { %2902 = vrot.lane.b32.xlu1 %v6017_v14, %s4866_s12  ;;  %2900 = vrot.lane.b32.xlu0 %v6020_v15, %s4866_s12 }
 0x284   : > { %2667 = vmatpush1.bf16.msra.mxu1 %v2224_v23 }
 0x285   : > { %v2236_v24 = vpop.permute.xlu1 %2235  ;;  %v2093_v17 = vpop.permute.xlu0 %2092 }
 0x286   : > { %v2096_v54 = vsel %vm931_vm9, %v2091_v57, %v2093_v17 }
 0x287   : > { %3045 = vrot.lane.b32.xlu1 %v6031_v3, %s4866_s12  ;;  %2898 = vrot.lane.b32.xlu0 %v6034_v63, %s4866_s12 }
 0x288   : > { %2625 = vmatprep.subr.bf16.mxu0 %v2096_v54 }
 0x289   : > { %2626 = vmatpush1.bf16.msra.mxu0 %v2095_v58  ;;  %v2234_v59 = vpop.permute.xlu1 %2233  ;;  %v6090_v62 = vpop.permute.xlu0 %2237 }
 0x28a   : > { %v2241_v35 = vsel %vm931_vm9, %v2234_v59, %v2236_v24  ;;  %v2242_v53 = vsel %vm931_vm9, %v2236_v24, %v6090_v62  ;;  %2695 = vmatprep.subr.bf16.mxu0 %v5860_v5 }
 0x28b   : > { %2904 = vrot.lane.b32.xlu1 %v6042_v4, %s4866_s12  ;;  %3047 = vrot.lane.b32.xlu0 %v6045_v56, %s4866_s12 }
 0x28c   : > { %2668 = vmatprep.subr.bf16.mxu1 %v2242_v53  ;;  %2642 = vmatmul.mubr.bf16.vlgmr.msra.gmra.mrb[4].mxu0 %v5919_v25 }
 0x28d   : > { %2669 = vmatpush1.bf16.msra.mxu1 %v2241_v35  ;;  %v2267_v33 = vpop.permute.xlu1 %2266  ;;  %v2265_v42 = vpop.permute.xlu0 %2264  ;;  %2696 = vmatpush1.bf16.msra.mxu0 %v4812_v12 }
 0x28e   : > { %v2272_v0 = vsel %vm805_vm2, %v2265_v42, %v2267_v33  ;;  %2738 = vmatprep.subr.bf16.mxu1 %v5868_v39  ;;  %4586 = vmatprep.mubr.msk.bf16.mxu0 %vm1522_vm1, %v5745_v28 }
 0x28f   : > { %2919 = vrot.lane.b32.xlu1 %v6017_v14, %s4867_s13  ;;  %2917 = vrot.lane.b32.xlu0 %v6020_v15, %s4867_s13 }
 0x290   : > { %2697 = vmatprep.subr.bf16.mxu0 %v2272_v0  ;;  %2685 = vmatmul.mubr.bf16.vlgmr.msra.gmra.mrb[4].mxu1 %v5919_v25 }
 0x291   : > { %v2269_v44 = vpop.permute.xlu1 %2268  ;;  %v2121_v1 = vpop.permute.xlu0 %2120  ;;  %2739 = vmatpush1.bf16.msra.mxu1 %v5857_v38  ;;  %4587 = vmatprep.mubr.msk.bf16.mxu1 %vm1522_vm1, %v5745_v28 }
 0x292   : > { %v2124_v2 = vsel %vm805_vm2, %v5944_v52, %v2121_v1  ;;  %v2273_v28 = vsel %vm805_vm2, %v2267_v33, %v2269_v44  ;;  %v6203_v1 = vld [vmem:[%s5120_s10 + $0x70] sm:$0xff] }
 0x293   : > { %3062 = vrot.lane.b32.xlu1 %v6031_v3, %s4867_s13  ;;  %2915 = vrot.lane.b32.xlu0 %v6034_v63, %s4867_s13 }
 0x294   : > { %2698 = vmatpush1.bf16.msra.mxu0 %v2124_v2 }
 0x295   : > { %v2282_v50 = vpop.permute.xlu1 %2281  ;;  %v2271_v6 = vpop.permute.xlu0 %2270 }
 0x296   : > { %v2274_v41 = vsel %vm805_vm2, %v2269_v44, %v2271_v6 }
 0x297   : > { %2921 = vrot.lane.b32.xlu1 %v6042_v4, %s4867_s13  ;;  %3064 = vrot.lane.b32.xlu0 %v6045_v56, %s4867_s13 }
 0x298   : > { %2740 = vmatprep.subr.bf16.mxu1 %v2274_v41 }
 0x299   : > { %2741 = vmatpush1.bf16.msra.mxu1 %v2273_v28  ;;  %v2138_v52 = vpop.permute.xlu1 %2137  ;;  %v2284_v20 = vpop.permute.xlu0 %2283 }
 0x29a   : > { %v2141_v9 = vsel %vm823_vm3, %v5967_v16, %v2138_v52  ;;  %v2289_v60 = vsel %vm823_vm3, %v2282_v50, %v2284_v20 }
 0x29b   : > { %2936 = vrot.lane.b32.xlu1 %v6017_v14, %s4868_s15  ;;  %2934 = vrot.lane.b32.xlu0 %v6020_v15, %s4868_s15 }
 0x29c   : > { %2699 = vmatprep.subr.bf16.mxu0 %v2289_v60 }
 0x29d   : > { %2700 = vmatpush1.bf16.msra.mxu0 %v2141_v9  ;;  %v2288_v45 = vpop.permute.xlu1 %2287  ;;  %v2286_v61 = vpop.permute.xlu0 %2285 }
 0x29e   : > { %v2291_v13 = vsel %vm823_vm3, %v2286_v61, %v2288_v45  ;;  %v2290_v51 = vsel %vm823_vm3, %v2284_v20, %v2286_v61 }
 0x29f   : > { %3079 = vrot.lane.b32.xlu1 %v6031_v3, %s4868_s15  ;;  %2932 = vrot.lane.b32.xlu0 %v6034_v63, %s4868_s15 }
 0x2a0   : > { %2742 = vmatprep.subr.bf16.mxu1 %v2291_v13 }
 0x2a1   : > { %2743 = vmatpush1.bf16.msra.mxu1 %v2290_v51  ;;  %v2301_v16 = vpop.permute.xlu1 %2300  ;;  %v2299_v55 = vpop.permute.xlu0 %2298 }
 0x2a2   : > { %v2306_v22 = vsel %vm841_vm4, %v2299_v55, %v2301_v16 }
 0x2a3   : > { %2938 = vrot.lane.b32.xlu1 %v6042_v4, %s4868_s15  ;;  %3081 = vrot.lane.b32.xlu0 %v6045_v56, %s4868_s15 }
 0x2a4   : > { %2701 = vmatprep.subr.bf16.mxu0 %v2306_v22 }
 0x2a5   : > { %v2303_v26 = vpop.permute.xlu1 %2302  ;;  %v2155_v46 = vpop.permute.xlu0 %2154 }
 0x2a6   : > { %v2158_v32 = vsel %vm841_vm4, %v5982_v43, %v2155_v46  ;;  %v2307_v43 = vsel %vm841_vm4, %v2301_v16, %v2303_v26 }
 0x2a7   : > { %2953 = vrot.lane.b32.xlu1 %v6017_v14, %s4869_s16  ;;  %2951 = vrot.lane.b32.xlu0 %v6020_v15, %s4869_s16 }
 0x2a8   : > { %2702 = vmatpush1.bf16.msra.mxu0 %v2158_v32 }
 0x2a9   : > { %v2316_v34 = vpop.permute.xlu1 %2315  ;;  %v2305_v47 = vpop.permute.xlu0 %2304 }
 0x2aa   : > { %v2308_v36 = vsel %vm841_vm4, %v2303_v26, %v2305_v47 }
 0x2ab   : > { %3096 = vrot.lane.b32.xlu1 %v6031_v3, %s4869_s16  ;;  %2949 = vrot.lane.b32.xlu0 %v6034_v63, %s4869_s16 }
 0x2ac   : > { %2744 = vmatprep.subr.bf16.mxu1 %v2308_v36 }
 0x2ad   : > { %2745 = vmatpush1.bf16.msra.mxu1 %v2307_v43  ;;  %v2172_v31 = vpop.permute.xlu1 %2171  ;;  %v2318_v8 = vpop.permute.xlu0 %2317 }
 0x2ae   : > { %v2175_v11 = vsel %vm859_vm5, %v6001_v7, %v2172_v31  ;;  %v2323_v18 = vsel %vm859_vm5, %v2316_v34, %v2318_v8 }
 0x2af   : > { %2955 = vrot.lane.b32.xlu1 %v6042_v4, %s4869_s16  ;;  %3098 = vrot.lane.b32.xlu0 %v6045_v56, %s4869_s16 }
 0x2b0   : > { %2703 = vmatprep.subr.bf16.mxu0 %v2323_v18 }
 0x2b1   : > { %2704 = vmatpush1.bf16.msra.mxu0 %v2175_v11  ;;  %v2322_v19 = vpop.permute.xlu1 %2321  ;;  %v2320_v29 = vpop.permute.xlu0 %2319 }
 0x2b2   : > { %v2325_v27 = vsel %vm859_vm5, %v2320_v29, %v2322_v19  ;;  %v2324_v30 = vsel %vm859_vm5, %v2318_v8, %v2320_v29 }
 0x2b3   : > { %2970 = vrot.lane.b32.xlu1 %v6017_v14, %s4870_s17  ;;  %2968 = vrot.lane.b32.xlu0 %v6020_v15, %s4870_s17 }
 0x2b4   : > { %2746 = vmatprep.subr.bf16.mxu1 %v2325_v27 }
 0x2b5   : > { %2747 = vmatpush1.bf16.msra.mxu1 %v2324_v30  ;;  %v2335_v7 = vpop.permute.xlu1 %2334  ;;  %v2333_v40 = vpop.permute.xlu0 %2332 }
 0x2b6   : > { %v2340_v57 = vsel %vm877_vm6, %v2333_v40, %v2335_v7 }
 0x2b7   : > { %3113 = vrot.lane.b32.xlu1 %v6031_v3, %s4870_s17  ;;  %2966 = vrot.lane.b32.xlu0 %v6034_v63, %s4870_s17 }
 0x2b8   : > { %2705 = vmatprep.subr.bf16.mxu0 %v2340_v57 }
 0x2b9   : > { %v2337_v49 = vpop.permute.xlu1 %2336  ;;  %v2189_v23 = vpop.permute.xlu0 %2188 }
 0x2ba   : > { %v2192_v24 = vsel %vm877_vm6, %v6022_v21, %v2189_v23  ;;  %v2341_v21 = vsel %vm877_vm6, %v2335_v7, %v2337_v49 }
 0x2bb   : > { %2972 = vrot.lane.b32.xlu1 %v6042_v4, %s4870_s17  ;;  %3115 = vrot.lane.b32.xlu0 %v6045_v56, %s4870_s17 }
 0x2bc   : > { %2706 = vmatpush1.bf16.msra.mxu0 %v2192_v24 }
 0x2bd   : > { %v2350_v17 = vpop.permute.xlu1 %2349  ;;  %v2339_v54 = vpop.permute.xlu0 %2338 }
 0x2be   : > { %v2342_v58 = vsel %vm877_vm6, %v2337_v49, %v2339_v54 }
 0x2bf   : > { %2987 = vrot.lane.b32.xlu1 %v6017_v14, %s4871_s20  ;;  %2985 = vrot.lane.b32.xlu0 %v6020_v15, %s4871_s20 }
 0x2c0   : > { %2748 = vmatprep.subr.bf16.mxu1 %v2342_v58 }
 0x2c1   : > { %2749 = vmatpush1.bf16.msra.mxu1 %v2341_v21  ;;  %v2206_v59 = vpop.permute.xlu1 %2205  ;;  %v2352_v35 = vpop.permute.xlu0 %2351 }
 0x2c2   : > { %v2209_v53 = vsel %vm895_vm7, %v6054_v37, %v2206_v59  ;;  %v2357_v33 = vsel %vm895_vm7, %v2350_v17, %v2352_v35  ;;  %v6200_v37 = vld [vmem:[%s5120_s10 + $0x78] sm:$0xff] }
 0x2c3   : > { %3130 = vrot.lane.b32.xlu1 %v6031_v3, %s4871_s20  ;;  %2983 = vrot.lane.b32.xlu0 %v6034_v63, %s4871_s20 }
 0x2c4   : > { %2707 = vmatprep.subr.bf16.mxu0 %v2357_v33 }
 0x2c5   : > { %2708 = vmatpush1.bf16.msra.mxu0 %v2209_v53  ;;  %v2356_v42 = vpop.permute.xlu1 %2355  ;;  %v2354_v12 = vpop.permute.xlu0 %2353 }
 0x2c6   : > { %v2359_v0 = vsel %vm895_vm7, %v2354_v12, %v2356_v42  ;;  %v2358_v44 = vsel %vm895_vm7, %v2352_v35, %v2354_v12 }
 0x2c7   : > { %2989 = vrot.lane.b32.xlu1 %v6042_v4, %s4871_s20  ;;  %3132 = vrot.lane.b32.xlu0 %v6045_v56, %s4871_s20 }
 0x2c8   : > { %2750 = vmatprep.subr.bf16.mxu1 %v2359_v0 }
 0x2c9   : > { %2751 = vmatpush1.bf16.msra.mxu1 %v2358_v44  ;;  %v2369_v2 = vpop.permute.xlu1 %2368  ;;  %v2367_v50 = vpop.permute.xlu0 %2366 }
 0x2ca   : > { %v2374_v6 = vsel %vm913_vm8, %v2367_v50, %v2369_v2 }
 0x2cb   : > { %3017 = vrot.lane.b32.xlu1 %v6200_v37, %s4864_s27  ;;  %3015 = vrot.lane.b32.xlu0 %v6203_v1, %s4864_s27 }
 0x2cc   : > { %2709 = vmatprep.subr.bf16.mxu0 %v2374_v6 }
 0x2cd   : > { %v2371_v4 = vpop.permute.xlu1 %2370  ;;  %v2223_v41 = vpop.permute.xlu0 %2222 }
 0x2ce   : > { %v2226_v28 = vsel %vm913_vm8, %v6070_v48, %v2223_v41  ;;  %v2375_v48 = vsel %vm913_vm8, %v2369_v2, %v2371_v4  ;;  %v4872_v41 = vmov 0  }
 0x2cf   : > { %3162 = vrot.lane.b32.xlu1 %v5868_v39, %s4864_s27  ;;  %3160 = vrot.lane.b32.xlu0 %v5857_v38, %s4864_s27 }
 0x2d0   : > { %2710 = vmatpush1.bf16.msra.mxu0 %v2226_v28  ;;  %4793 = vset.pattern.permute.xlu0 %v4872_v41 }
 0x2d1   : > { %v2384_v52 = vpop.permute.xlu1 %2383  ;;  %v2373_v20 = vpop.permute.xlu0 %2372  ;;  %4794 = vset.pattern.permute.xlu1 %v4872_v41 }
 0x2d2   : > { %v2376_v9 = vsel %vm913_vm8, %v2371_v4, %v2373_v20 }
 0x2d3   : > { %3032 = vrot.lane.b32.xlu1 %v6203_v1, %s4865_s9  ;;  %3158 = vrot.lane.b32.xlu0 %v5860_v5, %s4864_s27 }
 0x2d4   : > { %2752 = vmatprep.subr.bf16.mxu1 %v2376_v9 }
 0x2d5   : > { %2753 = vmatpush1.bf16.msra.mxu1 %v2375_v48  ;;  %v2240_v60 = vpop.permute.xlu1 %2239  ;;  %v2386_v45 = vpop.permute.xlu0 %2385 }
 0x2d6   : > { %v2243_v61 = vsel %vm931_vm9, %v6090_v62, %v2240_v60  ;;  %v2391_v13 = vsel %vm931_vm9, %v2384_v52, %v2386_v45  ;;  %v6235_v62 = vld [vmem:[%s6704_s1 + $0x24] ss:$8 sps:$4 sm:$0xff]  }
 0x2d7   : > { %3177 = vrot.lane.b32.xlu1 %v5857_v38, %s4865_s9  ;;  %3034 = vrot.lane.b32.xlu0 %v6200_v37, %s4865_s9 }
 0x2d8   : > { %2711 = vmatprep.subr.bf16.mxu0 %v2391_v13 }
 0x2d9   : > { %2712 = vmatpush1.bf16.msra.mxu0 %v2243_v61  ;;  %v2390_v51 = vpop.permute.xlu1 %2389  ;;  %v2388_v16 = vpop.permute.xlu0 %2387 }
 0x2da   : > { %v2393_v55 = vsel %vm931_vm9, %v2388_v16, %v2390_v51  ;;  %v2392_v22 = vsel %vm931_vm9, %v2386_v45, %v2388_v16  ;;  %3567 = vmatprep.subr.bf16.mxu0 %v6020_v15 }
 0x2db   : > { %3175 = vrot.lane.b32.xlu1 %v5860_v5, %s4865_s9  ;;  %3179 = vrot.lane.b32.xlu0 %v5868_v39, %s4865_s9 }
 0x2dc   : > { %2754 = vmatprep.subr.bf16.mxu1 %v2393_v55  ;;  %2728 = vmatmul.mubr.bf16.vlgmr.msra.gmra.mrb[8].mxu0 %v5919_v25 }
 0x2dd   : > { %2755 = vmatpush1.bf16.msra.mxu1 %v2392_v22  ;;  %v2869_v26 = vpop.permute.xlu1 %2868  ;;  %v2867_v46 = vpop.permute.xlu0 %2866  ;;  %3568 = vmatpush1.bf16.msra.mxu0 %v6034_v63 }
 0x2de   : > { %v2873_v15 = vsel %vm805_vm2, %v2867_v46, %v2869_v26  ;;  %3610 = vmatprep.subr.bf16.mxu1 %v6031_v3  ;;  %4609 = vmatprep.mubr.msk.bf16.mxu0 %vm1522_vm1, %v6235_v62 }
 0x2df   : > { %3051 = vrot.lane.b32.xlu1 %v6200_v37, %s4866_s12  ;;  %3049 = vrot.lane.b32.xlu0 %v6203_v1, %s4866_s12 }
 0x2e0   : > { %3569 = vmatprep.subr.bf16.mxu0 %v2873_v15  ;;  %2771 = vmatmul.mubr.bf16.vlgmr.msra.gmra.mrb[8].mxu1 %v5919_v25 }
 0x2e1   : > { %v3012_v32 = vpop.permute.xlu1 %3011  ;;  %v2865_v34 = vpop.permute.xlu0 %2864  ;;  %3611 = vmatpush1.bf16.msra.mxu1 %v6017_v14  ;;  %4610 = vmatprep.mubr.msk.bf16.mxu1 %vm1522_vm1, %v6235_v62 }
 0x2e2   : > { %v2872_v3 = vsel %vm805_vm2, %v2865_v34, %v2867_v46 }
 0x2e3   : > { %3196 = vrot.lane.b32.xlu1 %v5868_v39, %s4866_s12  ;;  %3194 = vrot.lane.b32.xlu0 %v5857_v38, %s4866_s12 }
 0x2e4   : > { %3570 = vmatpush1.bf16.msra.mxu0 %v2872_v3 }
 0x2e5   : > { %v2871_v63 = vpop.permute.xlu1 %2870  ;;  %v6260_v47 = vpop.permute.xlu0 %3013 }
 0x2e6   : > { %v2874_v25 = vsel %vm805_vm2, %v2869_v26, %v2871_v63  ;;  %v3019_v14 = vsel %vm805_vm2, %v3012_v32, %v6260_v47  ;;  %v6365_v26 = vld [vmem:[%s5120_s10 + $0xb8] sm:$0xff] }
 0x2e7   : > { %3066 = vrot.lane.b32.xlu1 %v6203_v1, %s4867_s13  ;;  %3192 = vrot.lane.b32.xlu0 %v5860_v5, %s4866_s12 }
 0x2e8   : > { %3612 = vmatprep.subr.bf16.mxu1 %v3019_v14 }
 0x2e9   : > { %3613 = vmatpush1.bf16.msra.mxu1 %v2874_v25  ;;  %v2886_v36 = vpop.permute.xlu1 %2885  ;;  %v2884_v43 = vpop.permute.xlu0 %2883 }
 0x2ea   : > { %v2890_v31 = vsel %vm823_vm3, %v2884_v43, %v2886_v36 }
 0x2eb   : > { %3211 = vrot.lane.b32.xlu1 %v5857_v38, %s4867_s13  ;;  %3068 = vrot.lane.b32.xlu0 %v6200_v37, %s4867_s13 }
 0x2ec   : > { %3571 = vmatprep.subr.bf16.mxu0 %v2890_v31 }
 0x2ed   : > { %v3029_v8 = vpop.permute.xlu1 %3028  ;;  %v2882_v11 = vpop.permute.xlu0 %2881 }
 0x2ee   : > { %v2889_v18 = vsel %vm823_vm3, %v2882_v11, %v2884_v43 }
 0x2ef   : > { %3209 = vrot.lane.b32.xlu1 %v5860_v5, %s4867_s13  ;;  %3213 = vrot.lane.b32.xlu0 %v5868_v39, %s4867_s13 }
 0x2f0   : > { %3572 = vmatpush1.bf16.msra.mxu0 %v2889_v18 }
 0x2f1   : > { %v2888_v19 = vpop.permute.xlu1 %2887  ;;  %v6279_v29 = vpop.permute.xlu0 %3030 }
 0x2f2   : > { %v2891_v27 = vsel %vm823_vm3, %v2886_v36, %v2888_v19  ;;  %v3036_v30 = vsel %vm823_vm3, %v3029_v8, %v6279_v29 }
 0x2f3   : > { %3085 = vrot.lane.b32.xlu1 %v6200_v37, %s4868_s15  ;;  %3083 = vrot.lane.b32.xlu0 %v6203_v1, %s4868_s15 }
 0x2f4   : > { %3614 = vmatprep.subr.bf16.mxu1 %v3036_v30  ;;  %v6399_v30 = vld [vmem:[%s5120_s10 + $0x98] sm:$0xff] }
 0x2f5   : > { %3615 = vmatpush1.bf16.msra.mxu1 %v2891_v27  ;;  %v2903_v7 = vpop.permute.xlu1 %2902  ;;  %v2901_v40 = vpop.permute.xlu0 %2900 }
 0x2f6   : > { %v2907_v57 = vsel %vm841_vm4, %v2901_v40, %v2903_v7 }
 0x2f7   : > { %3230 = vrot.lane.b32.xlu1 %v5868_v39, %s4868_s15  ;;  %3228 = vrot.lane.b32.xlu0 %v5857_v38, %s4868_s15 }
 0x2f8   : > { %3573 = vmatprep.subr.bf16.mxu0 %v2907_v57 }
 0x2f9   : > { %v3046_v49 = vpop.permute.xlu1 %3045  ;;  %v2899_v23 = vpop.permute.xlu0 %2898 }
 0x2fa   : > { %v2906_v24 = vsel %vm841_vm4, %v2899_v23, %v2901_v40 }
 0x2fb   : > { %3100 = vrot.lane.b32.xlu1 %v6203_v1, %s4869_s16  ;;  %3226 = vrot.lane.b32.xlu0 %v5860_v5, %s4868_s15 }
 0x2fc   : > { %3574 = vmatpush1.bf16.msra.mxu0 %v2906_v24 }
 0x2fd   : > { %v2905_v17 = vpop.permute.xlu1 %2904  ;;  %v6298_v54 = vpop.permute.xlu0 %3047 }
 0x2fe   : > { %v2908_v58 = vsel %vm841_vm4, %v2903_v7, %v2905_v17  ;;  %v3053_v21 = vsel %vm841_vm4, %v3046_v49, %v6298_v54  ;;  %v6411_v49 = vld [vmem:[%s6704_s1 + $0x20] ss:$8 sps:$4 sm:$0xff]  }
 0x2ff   : > { %3245 = vrot.lane.b32.xlu1 %v5857_v38, %s4869_s16  ;;  %3102 = vrot.lane.b32.xlu0 %v6200_v37, %s4869_s16 }
 0x300   : > { %3616 = vmatprep.subr.bf16.mxu1 %v3053_v21 }
 0x301   : > { %3617 = vmatpush1.bf16.msra.mxu1 %v2908_v58  ;;  %v2920_v59 = vpop.permute.xlu1 %2919  ;;  %v2918_v35 = vpop.permute.xlu0 %2917 }
 0x302   : > { %v2924_v53 = vsel %vm859_vm5, %v2918_v35, %v2920_v59 }
 0x303   : > { %3243 = vrot.lane.b32.xlu1 %v5860_v5, %s4869_s16  ;;  %3247 = vrot.lane.b32.xlu0 %v5868_v39, %s4869_s16 }
 0x304   : > { %3575 = vmatprep.subr.bf16.mxu0 %v2924_v53  ;;  %v4814_v53 = vld [vmem:[%s5120_s10 + $0x88] sm:$0xff] }
 0x305   : > { %v3063_v33 = vpop.permute.xlu1 %3062  ;;  %v2916_v42 = vpop.permute.xlu0 %2915 }
 0x306   : > { %v2923_v12 = vsel %vm859_vm5, %v2916_v42, %v2918_v35 }
 0x307   : > { %3119 = vrot.lane.b32.xlu1 %v6200_v37, %s4870_s17  ;;  %3117 = vrot.lane.b32.xlu0 %v6203_v1, %s4870_s17 }
 0x308   : > { %3576 = vmatpush1.bf16.msra.mxu0 %v2923_v12 }
 0x309   : > { %v2922_v0 = vpop.permute.xlu1 %2921  ;;  %v6317_v44 = vpop.permute.xlu0 %3064 }
 0x30a   : > { %v2925_v2 = vsel %vm859_vm5, %v2920_v59, %v2922_v0  ;;  %v3070_v50 = vsel %vm859_vm5, %v3063_v33, %v6317_v44  ;;  %v4815_v33 = vld [vmem:[%s5120_s10 + $0x80] sm:$0xff] }
 0x30b   : > { %3264 = vrot.lane.b32.xlu1 %v5868_v39, %s4870_s17  ;;  %3262 = vrot.lane.b32.xlu0 %v5857_v38, %s4870_s17 }
 0x30c   : > { %3618 = vmatprep.subr.bf16.mxu1 %v3070_v50 }
 0x30d   : > { %3619 = vmatpush1.bf16.msra.mxu1 %v2925_v2  ;;  %v2937_v6 = vpop.permute.xlu1 %2936  ;;  %v2935_v4 = vpop.permute.xlu0 %2934 }
 0x30e   : > { %v2941_v28 = vsel %vm877_vm6, %v2935_v4, %v2937_v6 }
 0x30f   : > { %3134 = vrot.lane.b32.xlu1 %v6203_v1, %s4871_s20  ;;  %3260 = vrot.lane.b32.xlu0 %v5860_v5, %s4870_s17 }
 0x310   : > { %3577 = vmatprep.subr.bf16.mxu0 %v2941_v28 }
 0x311   : > { %v3080_v52 = vpop.permute.xlu1 %3079  ;;  %v2933_v20 = vpop.permute.xlu0 %2932 }
 0x312   : > { %v2940_v9 = vsel %vm877_vm6, %v2933_v20, %v2935_v4 }
 0x313   : > { %3279 = vrot.lane.b32.xlu1 %v5857_v38, %s4871_s20  ;;  %3136 = vrot.lane.b32.xlu0 %v6200_v37, %s4871_s20  ;;  %v6346_v38 = vld [vmem:[%s5120_s10 + $0xa8] sm:$0xff]  ;;  %v6349_v37 = vld [vmem:[%s5120_s10 + $0xa0] sm:$0xff] }
 0x314   : > { %3578 = vmatpush1.bf16.msra.mxu0 %v2940_v9 }
 0x315   : > { %v2939_v48 = vpop.permute.xlu1 %2938  ;;  %v6336_v60 = vpop.permute.xlu0 %3081 }
 0x316   : > { %v2942_v45 = vsel %vm877_vm6, %v2937_v6, %v2939_v48  ;;  %v3087_v61 = vsel %vm877_vm6, %v3080_v52, %v6336_v60 }
 0x317   : > { %3277 = vrot.lane.b32.xlu1 %v5860_v5, %s4871_s20  ;;  %3281 = vrot.lane.b32.xlu0 %v5868_v39, %s4871_s20  ;;  %v6357_v5 = vld [vmem:[%s5120_s10 + $0xb0] sm:$0xff] }
 0x318   : > { %3620 = vmatprep.subr.bf16.mxu1 %v3087_v61 }
 0x319   : > { %3621 = vmatpush1.bf16.msra.mxu1 %v2942_v45  ;;  %v2954_v13 = vpop.permute.xlu1 %2953  ;;  %v2952_v51 = vpop.permute.xlu0 %2951 }
 0x31a   : > { %v2958_v16 = vsel %vm895_vm7, %v2952_v51, %v2954_v13 }
 0x31b   : > { %3310 = vrot.lane.b32.xlu1 %v6346_v38, %s4864_s27  ;;  %3308 = vrot.lane.b32.xlu0 %v6349_v37, %s4864_s27 }
 0x31c   : > { %3579 = vmatprep.subr.bf16.mxu0 %v2958_v16 }
 0x31d   : > { %v3097_v39 = vpop.permute.xlu1 %3096  ;;  %v2950_v55 = vpop.permute.xlu0 %2949 }
 0x31e   : > { %v2957_v22 = vsel %vm895_vm7, %v2950_v55, %v2952_v51 }
 0x31f   : > { %3312 = vrot.lane.b32.xlu1 %v6357_v5, %s4864_s27  ;;  %3164 = vrot.lane.b32.xlu0 %v5876_v10, %s4864_s27 }
 0x320   : > { %3580 = vmatpush1.bf16.msra.mxu0 %v2957_v22 }
 0x321   : > { %v2956_v46 = vpop.permute.xlu1 %2955  ;;  %v6367_v15 = vpop.permute.xlu0 %3098 }
 0x322   : > { %v2959_v32 = vsel %vm895_vm7, %v2954_v13, %v2956_v46  ;;  %v3104_v34 = vsel %vm895_vm7, %v3097_v39, %v6367_v15 }
 0x323   : > { %3325 = vrot.lane.b32.xlu1 %v6349_v37, %s4865_s9  ;;  %3314 = vrot.lane.b32.xlu0 %v6365_v26, %s4864_s27 }
 0x324   : > { %3622 = vmatprep.subr.bf16.mxu1 %v3104_v34 }
 0x325   : > { %3623 = vmatpush1.bf16.msra.mxu1 %v2959_v32  ;;  %v2971_v3 = vpop.permute.xlu1 %2970  ;;  %v2969_v63 = vpop.permute.xlu0 %2968 }
 0x326   : > { %v2975_v25 = vsel %vm913_vm8, %v2969_v63, %v2971_v3 }
 0x327   : > { %3181 = vrot.lane.b32.xlu1 %v5876_v10, %s4865_s9  ;;  %3327 = vrot.lane.b32.xlu0 %v6346_v38, %s4865_s9 }
 0x328   : > { %3581 = vmatprep.subr.bf16.mxu0 %v2975_v25 }
 0x329   : > { %v3114_v14 = vpop.permute.xlu1 %3113  ;;  %v2967_v36 = vpop.permute.xlu0 %2966 }
 0x32a   : > { %v2974_v43 = vsel %vm913_vm8, %v2967_v36, %v2969_v63 }
 0x32b   : > { %3331 = vrot.lane.b32.xlu1 %v6365_v26, %s4865_s9  ;;  %3329 = vrot.lane.b32.xlu0 %v6357_v5, %s4865_s9 }
 0x32c   : > { %3582 = vmatpush1.bf16.msra.mxu0 %v2974_v43 }
 0x32d   : > { %v2973_v31 = vpop.permute.xlu1 %2972  ;;  %v6386_v8 = vpop.permute.xlu0 %3115 }
 0x32e   : > { %v2976_v10 = vsel %vm913_vm8, %v2971_v3, %v2973_v31  ;;  %v3121_v11 = vsel %vm913_vm8, %v3114_v14, %v6386_v8 }
 0x32f   : > { %3344 = vrot.lane.b32.xlu1 %v6346_v38, %s4866_s12  ;;  %3342 = vrot.lane.b32.xlu0 %v6349_v37, %s4866_s12 }
 0x330   : > { %3624 = vmatprep.subr.bf16.mxu1 %v3121_v11 }
 0x331   : > { %3625 = vmatpush1.bf16.msra.mxu1 %v2976_v10  ;;  %v2988_v18 = vpop.permute.xlu1 %2987  ;;  %v2986_v19 = vpop.permute.xlu0 %2985  ;;  %v1502_v10 = vld [vmem:[%s6705_s2 + $0x8] sm:$0xff] }
 0x332   : > { %v2992_v27 = vsel %vm931_vm9, %v2986_v19, %v2988_v18 }
 0x333   : > { %3346 = vrot.lane.b32.xlu1 %v6357_v5, %s4866_s12  ;;  %3198 = vrot.lane.b32.xlu0 %v6399_v30, %s4866_s12 }
 0x334   : > { %3583 = vmatprep.subr.bf16.mxu0 %v2992_v27 }
 0x335   : > { %v3131_v7 = vpop.permute.xlu1 %3130  ;;  %v2984_v40 = vpop.permute.xlu0 %2983 }
 0x336   : > { %v2991_v57 = vsel %vm931_vm9, %v2984_v40, %v2986_v19 }
 0x337   : > { %3359 = vrot.lane.b32.xlu1 %v6349_v37, %s4867_s13  ;;  %3348 = vrot.lane.b32.xlu0 %v6365_v26, %s4866_s12 }
 0x338   : > { %3584 = vmatpush1.bf16.msra.mxu0 %v2991_v57 }
 0x339   : > { %v2990_v23 = vpop.permute.xlu1 %2989  ;;  %v6413_v24 = vpop.permute.xlu0 %3132  ;;  %3653 = vmatprep.subr.bf16.mxu0 %v6203_v1 }
 0x33a   : > { %v2993_v17 = vsel %vm931_vm9, %v2988_v18, %v2990_v23  ;;  %v3138_v58 = vsel %vm931_vm9, %v3131_v7, %v6413_v24 }
 0x33b   : > { %3600 = vmatmul.mubr.bf16.vlgmr.msra.gmra.mrb[0].mxu0 %v6411_v49  ;;  %3215 = vrot.lane.b32.xlu1 %v6399_v30, %s4867_s13 }
 0x33c   : > { %3361 = vrot.lane.b32.xlu0 %v6346_v38, %s4867_s13  ;;  %3626 = vmatprep.subr.bf16.mxu1 %v3138_v58 }
 0x33d   : > { %3627 = vmatpush1.bf16.msra.mxu1 %v2993_v17  ;;  %3654 = vmatpush1.bf16.msra.mxu0 %v6045_v56  ;;  %v3018_v21 = vpop.permute.xlu1 %3017  ;;  %v3016_v1 = vpop.permute.xlu0 %3015 }
 0x33e   : > { %v3020_v59 = vsel %vm805_vm2, %v6260_v47, %v3016_v1  ;;  %v3021_v35 = vsel %vm805_vm2, %v3016_v1, %v3018_v21  ;;  %3696 = vmatprep.subr.bf16.mxu1 %v4814_v53  ;;  %4611 = vmatprep.mubr.msk.bf16.mxu0 %vm1522_vm1, %v6235_v62 }
 0x33f   : > { %3365 = vrot.lane.b32.xlu1 %v6365_v26, %s4867_s13  ;;  %3655 = vmatprep.subr.bf16.mxu0 %v3021_v35 }
 0x340   : > { %3363 = vrot.lane.b32.xlu0 %v6357_v5, %s4867_s13  ;;  %3643 = vmatmul.mubr.bf16.vlgmr.msra.gmra.mrb[0].mxu1 %v6411_v49 }
 0x341   : > { %3656 = vmatpush1.bf16.msra.mxu0 %v3020_v59  ;;  %v6436_v56 = vpop.permute.xlu1 %3162  ;;  %v3161_v47 = vpop.permute.xlu0 %3160  ;;  %3697 = vmatpush1.bf16.msra.mxu1 %v4815_v33 }
 0x342   : > { %v3167_v42 = vsel %vm805_vm2, %v3161_v47, %v6436_v56  ;;  %4612 = vmatprep.mubr.msk.bf16.mxu1 %vm1522_vm1, %v6235_v62 }
 0x343   : > { %3378 = vrot.lane.b32.xlu1 %v6346_v38, %s4868_s15  ;;  %3698 = vmatprep.subr.bf16.mxu1 %v3167_v42 }
 0x344   : > { %3376 = vrot.lane.b32.xlu0 %v6349_v37, %s4868_s15 }
 0x345   : > { %v3033_v12 = vpop.permute.xlu1 %3032  ;;  %v3159_v0 = vpop.permute.xlu0 %3158 }
 0x346   : > { %v3166_v2 = vsel %vm805_vm2, %v3159_v0, %v3161_v47  ;;  %v3037_v41 = vsel %vm823_vm3, %v6279_v29, %v3033_v12 }
 0x347   : > { %3380 = vrot.lane.b32.xlu1 %v6357_v5, %s4868_s15  ;;  %3699 = vmatpush1.bf16.msra.mxu1 %v3166_v2 }
 0x348   : > { %3232 = vrot.lane.b32.xlu0 %v6399_v30, %s4868_s15 }
 0x349   : > { %v3178_v50 = vpop.permute.xlu1 %3177  ;;  %v3035_v6 = vpop.permute.xlu0 %3034 }
 0x34a   : > { %v3038_v4 = vsel %vm823_vm3, %v3033_v12, %v3035_v6 }
 0x34b   : > { %3393 = vrot.lane.b32.xlu1 %v6349_v37, %s4869_s16  ;;  %3657 = vmatprep.subr.bf16.mxu0 %v3038_v4 }
 0x34c   : > { %3382 = vrot.lane.b32.xlu0 %v6365_v26, %s4868_s15  ;;  %3658 = vmatpush1.bf16.msra.mxu0 %v3037_v41 }
 0x34d   : > { %v3176_v28 = vpop.permute.xlu1 %3175  ;;  %v6459_v52 = vpop.permute.xlu0 %3179 }
 0x34e   : > { %v3183_v20 = vsel %vm823_vm3, %v3176_v28, %v3178_v50  ;;  %v3184_v9 = vsel %vm823_vm3, %v3178_v50, %v6459_v52 }
 0x34f   : > { %3249 = vrot.lane.b32.xlu1 %v6399_v30, %s4869_s16  ;;  %3700 = vmatprep.subr.bf16.mxu1 %v3184_v9 }
 0x350   : > { %3395 = vrot.lane.b32.xlu0 %v6346_v38, %s4869_s16  ;;  %3701 = vmatpush1.bf16.msra.mxu1 %v3183_v20 }
 0x351   : > { %v3052_v29 = vpop.permute.xlu1 %3051  ;;  %v3050_v48 = vpop.permute.xlu0 %3049 }
 0x352   : > { %v3054_v45 = vsel %vm841_vm4, %v6298_v54, %v3050_v48  ;;  %v3055_v61 = vsel %vm841_vm4, %v3050_v48, %v3052_v29  ;;  %v4816_v29 = vld [vmem:[%s5120_s10 + $0x90] sm:$0xff] }
 0x353   : > { %3399 = vrot.lane.b32.xlu1 %v6365_v26, %s4869_s16  ;;  %3659 = vmatprep.subr.bf16.mxu0 %v3055_v61 }
 0x354   : > { %3397 = vrot.lane.b32.xlu0 %v6357_v5, %s4869_s16  ;;  %3660 = vmatpush1.bf16.msra.mxu0 %v3054_v45 }
 0x355   : > { %v6475_v13 = vpop.permute.xlu1 %3196  ;;  %v3195_v51 = vpop.permute.xlu0 %3194 }
 0x356   : > { %v3201_v16 = vsel %vm841_vm4, %v3195_v51, %v6475_v13 }
 0x357   : > { %3412 = vrot.lane.b32.xlu1 %v6346_v38, %s4870_s17  ;;  %3702 = vmatprep.subr.bf16.mxu1 %v3201_v16 }
 0x358   : > { %3410 = vrot.lane.b32.xlu0 %v6349_v37, %s4870_s17 }
 0x359   : > { %v3067_v54 = vpop.permute.xlu1 %3066  ;;  %v3193_v39 = vpop.permute.xlu0 %3192 }
 0x35a   : > { %v3200_v55 = vsel %vm841_vm4, %v3193_v39, %v3195_v51  ;;  %v3071_v34 = vsel %vm859_vm5, %v6317_v44, %v3067_v54 }
 0x35b   : > { %3414 = vrot.lane.b32.xlu1 %v6357_v5, %s4870_s17  ;;  %3703 = vmatpush1.bf16.msra.mxu1 %v3200_v55 }
 0x35c   : > { %3266 = vrot.lane.b32.xlu0 %v6399_v30, %s4870_s17 }
 0x35d   : > { %v3212_v22 = vpop.permute.xlu1 %3211  ;;  %v3069_v46 = vpop.permute.xlu0 %3068 }
 0x35e   : > { %v3072_v32 = vsel %vm859_vm5, %v3067_v54, %v3069_v46 }
 0x35f   : > { %3427 = vrot.lane.b32.xlu1 %v6349_v37, %s4871_s20  ;;  %3661 = vmatprep.subr.bf16.mxu0 %v3072_v32 }
 0x360   : > { %3416 = vrot.lane.b32.xlu0 %v6365_v26, %s4870_s17  ;;  %3662 = vmatpush1.bf16.msra.mxu0 %v3071_v34 }
 0x361   : > { %v3210_v3 = vpop.permute.xlu1 %3209  ;;  %v6495_v63 = vpop.permute.xlu0 %3213 }
 0x362   : > { %v3217_v25 = vsel %vm859_vm5, %v3210_v3, %v3212_v22  ;;  %v3218_v14 = vsel %vm859_vm5, %v3212_v22, %v6495_v63 }
 0x363   : > { %3283 = vrot.lane.b32.xlu1 %v6399_v30, %s4871_s20  ;;  %3704 = vmatprep.subr.bf16.mxu1 %v3218_v14 }
 0x364   : > { %3429 = vrot.lane.b32.xlu0 %v6346_v38, %s4871_s20  ;;  %3705 = vmatpush1.bf16.msra.mxu1 %v3217_v25 }
 0x365   : > { %v3086_v44 = vpop.permute.xlu1 %3085  ;;  %v3084_v36 = vpop.permute.xlu0 %3083 }
 0x366   : > { %v3088_v43 = vsel %vm877_vm6, %v6336_v60, %v3084_v36  ;;  %v3089_v31 = vsel %vm877_vm6, %v3084_v36, %v3086_v44  ;;  %v1501_v60 = vld [vmem:[%s6705_s2] sm:$0xff] }
 0x367   : > { %3433 = vrot.lane.b32.xlu1 %v6365_v26, %s4871_s20  ;;  %3663 = vmatprep.subr.bf16.mxu0 %v3089_v31 }
 0x368   : > { %3431 = vrot.lane.b32.xlu0 %v6357_v5, %s4871_s20  ;;  %3664 = vmatpush1.bf16.msra.mxu0 %v3088_v43 }
 0x369   : > { %v6514_v11 = vpop.permute.xlu1 %3230  ;;  %v3229_v18 = vpop.permute.xlu0 %3228 }
 0x36a   : > { %v3235_v19 = vsel %vm877_vm6, %v3229_v18, %v6514_v11 }
 0x36b   : > { %3706 = vmatprep.subr.bf16.mxu1 %v3235_v19  ;;  %1510 = vperm.xlu1 %4794, %v1502_v10  }
 0x36c   : > { %1505 = vperm.xlu0 %4793, %v1501_v60  }
 0x36d   : > { %v3101_v26 = vpop.permute.xlu1 %3100  ;;  %v3227_v27 = vpop.permute.xlu0 %3226 }
 0x36e   : > { %v3234_v30 = vsel %vm877_vm6, %v3227_v27, %v3229_v18  ;;  %v3105_v23 = vsel %vm895_vm7, %v6367_v15, %v3101_v26 }
 0x36f   : > { %3707 = vmatpush1.bf16.msra.mxu1 %v3234_v30 }
 0x371   : > { %v3246_v7 = vpop.permute.xlu1 %3245  ;;  %v3103_v40 = vpop.permute.xlu0 %3102 }
 0x372   : > { %v3106_v57 = vsel %vm895_vm7, %v3101_v26, %v3103_v40 }
 0x373   : > { %3665 = vmatprep.subr.bf16.mxu0 %v3106_v57 }
 0x374   : > { %3666 = vmatpush1.bf16.msra.mxu0 %v3105_v23 }
 0x375   : > { %v3244_v17 = vpop.permute.xlu1 %3243  ;;  %v6525_v58 = vpop.permute.xlu0 %3247 }
 0x376   : > { %v3251_v21 = vsel %vm895_vm7, %v3244_v17, %v3246_v7  ;;  %v3252_v1 = vsel %vm895_vm7, %v3246_v7, %v6525_v58 }
 0x377   : > { %3708 = vmatprep.subr.bf16.mxu1 %v3252_v1 }
 0x378   : > { %3709 = vmatpush1.bf16.msra.mxu1 %v3251_v21 }
 0x379   : > { %v3120_v59 = vpop.permute.xlu1 %3119  ;;  %v3118_v35 = vpop.permute.xlu0 %3117 }
 0x37a   : > { %v3122_v53 = vsel %vm913_vm8, %v6386_v8, %v3118_v35  ;;  %v3123_v47 = vsel %vm913_vm8, %v3118_v35, %v3120_v59 }
 0x37b   : > { %3667 = vmatprep.subr.bf16.mxu0 %v3123_v47 }
 0x37c   : > { %3668 = vmatpush1.bf16.msra.mxu0 %v3122_v53 }
 0x37d   : > { %v6533_v15 = vpop.permute.xlu1 %3264  ;;  %v3263_v33 = vpop.permute.xlu0 %3262 }
 0x37e   : > { %v3269_v42 = vsel %vm913_vm8, %v3263_v33, %v6533_v15 }
 0x37f   : > { %3710 = vmatprep.subr.bf16.mxu1 %v3269_v42 }
 0x381   : > { %v3135_v12 = vpop.permute.xlu1 %3134  ;;  %v3261_v0 = vpop.permute.xlu0 %3260 }
 0x382   : > { %v3268_v2 = vsel %vm913_vm8, %v3261_v0, %v3263_v33  ;;  %v3139_v4 = vsel %vm931_vm9, %v6413_v24, %v3135_v12 }
 0x383   : > { %3711 = vmatpush1.bf16.msra.mxu1 %v3268_v2 }
 0x385   : > { %v3280_v50 = vpop.permute.xlu1 %3279  ;;  %v3137_v6 = vpop.permute.xlu0 %3136 }
 0x386   : > { %v3140_v8 = vsel %vm931_vm9, %v3135_v12, %v3137_v6 }
 0x387   : > { %3669 = vmatprep.subr.bf16.mxu0 %v3140_v8 }
 0x388   : > { %3670 = vmatpush1.bf16.msra.mxu0 %v3139_v4 }
 0x389   : > { %v3278_v41 = vpop.permute.xlu1 %3277  ;;  %v6541_v28 = vpop.permute.xlu0 %3281  ;;  %3739 = vmatprep.subr.bf16.mxu0 %v6349_v37 }
 0x38a   : > { %v3285_v20 = vsel %vm931_vm9, %v3278_v41, %v3280_v50  ;;  %v3286_v9 = vsel %vm931_vm9, %v3280_v50, %v6541_v28 }
 0x38b   : > { %3686 = vmatmul.mubr.bf16.vlgmr.msra.gmra.mrb[4].mxu0 %v6411_v49  ;;  %3712 = vmatprep.subr.bf16.mxu1 %v3286_v9 }
 0x38c   : > { %3713 = vmatpush1.bf16.msra.mxu1 %v3285_v20  ;;  %3740 = vmatpush1.bf16.msra.mxu0 %v4816_v29 }
 0x38d   : > { %v3311_v48 = vpop.permute.xlu1 %3310  ;;  %v3309_v24 = vpop.permute.xlu0 %3308  ;;  %3782 = vmatprep.subr.bf16.mxu1 %v6357_v5  ;;  %4613 = vmatprep.mubr.msk.bf16.mxu0 %vm1522_vm1, %v6235_v62 }
 0x38e   : > { %v3316_v37 = vsel %vm805_vm2, %v3309_v24, %v3311_v48 }
 0x38f   : > { %3729 = vmatmul.mubr.bf16.vlgmr.msra.gmra.mrb[4].mxu1 %v6411_v49  ;;  %3741 = vmatprep.subr.bf16.mxu0 %v3316_v37 }
 0x390   : > { %3783 = vmatpush1.bf16.msra.mxu1 %v6346_v38  ;;  %4614 = vmatprep.mubr.msk.bf16.mxu1 %vm1522_vm1, %v6235_v62 }
 0x391   : > { %v3313_v45 = vpop.permute.xlu1 %3312  ;;  %v3165_v61 = vpop.permute.xlu0 %3164 }
 0x392   : > { %v3168_v51 = vsel %vm805_vm2, %v6436_v56, %v3165_v61  ;;  %v3317_v39 = vsel %vm805_vm2, %v3311_v48, %v3313_v45 }
 0x393   : > { %3742 = vmatpush1.bf16.msra.mxu0 %v3168_v51 }
 0x395   : > { %v3326_v5 = vpop.permute.xlu1 %3325  ;;  %v3315_v16 = vpop.permute.xlu0 %3314 }
 0x396   : > { %v3318_v54 = vsel %vm805_vm2, %v3313_v45, %v3315_v16 }
 0x397   : > { %3784 = vmatprep.subr.bf16.mxu1 %v3318_v54 }
 0x398   : > { %3785 = vmatpush1.bf16.msra.mxu1 %v3317_v39 }
 0x399   : > { %v3182_v55 = vpop.permute.xlu1 %3181  ;;  %v3328_v22 = vpop.permute.xlu0 %3327 }
 0x39a   : > { %v3185_v38 = vsel %vm823_vm3, %v6459_v52, %v3182_v55  ;;  %v3333_v62 = vsel %vm823_vm3, %v3326_v5, %v3328_v22  ;;  %v3929_v55 = vlaneseq }
 0x39b   : > { %3743 = vmatprep.subr.bf16.mxu0 %v3333_v62 }
 0x39c   : > { %3744 = vmatpush1.bf16.msra.mxu0 %v3185_v38  ;;  %v3897_v38 = vld [vmem:[%s6706_s3] sm:$0x7] }
 0x39d   : > { %v3332_v46 = vpop.permute.xlu1 %3331  ;;  %v3330_v56 = vpop.permute.xlu0 %3329 }
 0x39e   : > { %v3334_v32 = vsel %vm823_vm3, %v3328_v22, %v3330_v56  ;;  %v3335_v34 = vsel %vm823_vm3, %v3330_v56, %v3332_v46  ;;  %v3930_v22 = vshrl.u32 %v3929_v55, 7 }
 0x39f   : > { %3786 = vmatprep.subr.bf16.mxu1 %v3335_v34 }
 0x3a0   : > { %3787 = vmatpush1.bf16.msra.mxu1 %v3334_v32  ;;  %v3935_v62 = vsub.s32 1, %v3930_v22 }
 0x3a1   : > { %v3345_v3 = vpop.permute.xlu1 %3344  ;;  %v3343_v25 = vpop.permute.xlu0 %3342 }
 0x3a2   : > { %v3350_v14 = vsel %vm841_vm4, %v3343_v25, %v3345_v3  ;;  %v6605_v34 = vrot.slane %v3897_v38, %v3935_v62 }
 0x3a3   : > { %3745 = vmatprep.subr.bf16.mxu0 %v3350_v14  ;;  %v3939_v14 = vsub.s32 2, %v3930_v22 }
 0x3a5   : > { %v3347_v44 = vpop.permute.xlu1 %3346  ;;  %v3199_v36 = vpop.permute.xlu0 %3198 }
 0x3a6   : > { %v3202_v52 = vsel %vm841_vm4, %v6475_v13, %v3199_v36  ;;  %v3351_v18 = vsel %vm841_vm4, %v3345_v3, %v3347_v44 }
 0x3a7   : > { %3746 = vmatpush1.bf16.msra.mxu0 %v3202_v52 }
 0x3a9   : > { %v3360_v43 = vpop.permute.xlu1 %3359  ;;  %v3349_v31 = vpop.permute.xlu0 %3348 }
 0x3aa   : > { %v3352_v10 = vsel %vm841_vm4, %v3347_v44, %v3349_v31 }
 0x3ab   : > { %3788 = vmatprep.subr.bf16.mxu1 %v3352_v10 }
 0x3ac   : > { %3789 = vmatpush1.bf16.msra.mxu1 %v3351_v18 }
 0x3ad   : > { %v3216_v60 = vpop.permute.xlu1 %3215 }
 0x3ae   : > { %v3219_v19 = vsel %vm859_vm5, %v6495_v63, %v3216_v60  ;;  %v3362_v26 = vpop.permute.xlu0 %3361 }
 0x3af   : > { %v3367_v27 = vsel %vm859_vm5, %v3360_v43, %v3362_v26 }
 0x3b0   : > { %3747 = vmatprep.subr.bf16.mxu0 %v3367_v27 }
 0x3b1   : > { %3748 = vmatpush1.bf16.msra.mxu0 %v3219_v19  ;;  %v3366_v30 = vpop.permute.xlu1 %3365 }
 0x3b2   : > { %v3364_v13 = vpop.permute.xlu0 %3363 }
 0x3b3   : > { %v3368_v7 = vsel %vm859_vm5, %v3362_v26, %v3364_v13  ;;  %v3369_v40 = vsel %vm859_vm5, %v3364_v13, %v3366_v30  ;;  %v6616_v30 = vrot.slane %v3897_v38, %v3939_v14 }
 0x3b4   : > { %3790 = vmatprep.subr.bf16.mxu1 %v3369_v40 }
 0x3b5   : > { %3791 = vmatpush1.bf16.msra.mxu1 %v3368_v7  ;;  %v3379_v57 = vpop.permute.xlu1 %3378 }
 0x3b6   : > { %v3377_v23 = vpop.permute.xlu0 %3376 }
 0x3b7   : > { %v3384_v17 = vsel %vm877_vm6, %v3377_v23, %v3379_v57 }
 0x3b8   : > { %3749 = vmatprep.subr.bf16.mxu0 %v3384_v17 }
 0x3b9   : > { %v3381_v21 = vpop.permute.xlu1 %3380 }
 0x3ba   : > { %v3233_v63 = vpop.permute.xlu0 %3232  ;;  %v3385_v47 = vsel %vm877_vm6, %v3379_v57, %v3381_v21 }
 0x3bb   : > { %v3236_v1 = vsel %vm877_vm6, %v6514_v11, %v3233_v63 }
 0x3bc   : > { %3750 = vmatpush1.bf16.msra.mxu0 %v3236_v1 }
 0x3bd   : > { %v3394_v59 = vpop.permute.xlu1 %3393 }
 0x3be   : > { %v3383_v35 = vpop.permute.xlu0 %3382 }
 0x3bf   : > { %v3386_v53 = vsel %vm877_vm6, %v3381_v21, %v3383_v35 }
 0x3c0   : > { %3792 = vmatprep.subr.bf16.mxu1 %v3386_v53 }
 0x3c1   : > { %3793 = vmatpush1.bf16.msra.mxu1 %v3385_v47  ;;  %v3250_v33 = vpop.permute.xlu1 %3249 }
 0x3c2   : > { %v3253_v42 = vsel %vm895_vm7, %v6525_v58, %v3250_v33  ;;  %v3396_v12 = vpop.permute.xlu0 %3395 }
 0x3c3   : > { %v3401_v0 = vsel %vm895_vm7, %v3394_v59, %v3396_v12 }
 0x3c4   : > { %3751 = vmatprep.subr.bf16.mxu0 %v3401_v0 }
 0x3c5   : > { %3752 = vmatpush1.bf16.msra.mxu0 %v3253_v42  ;;  %v3400_v2 = vpop.permute.xlu1 %3399 }
 0x3c6   : > { %v3398_v11 = vpop.permute.xlu0 %3397 }
 0x3c7   : > { %v3402_v50 = vsel %vm895_vm7, %v3396_v12, %v3398_v11  ;;  %v3403_v6 = vsel %vm895_vm7, %v3398_v11, %v3400_v2 }
 0x3c8   : > { %3794 = vmatprep.subr.bf16.mxu1 %v3403_v6 }
 0x3c9   : > { %3795 = vmatpush1.bf16.msra.mxu1 %v3402_v50  ;;  %v3413_v8 = vpop.permute.xlu1 %3412 }
 0x3ca   : > { %v3411_v4 = vpop.permute.xlu0 %3410 }
 0x3cb   : > { %v3418_v41 = vsel %vm913_vm8, %v3411_v4, %v3413_v8 }
 0x3cc   : > { %3753 = vmatprep.subr.bf16.mxu0 %v3418_v41 }
 0x3cd   : > { %v3415_v20 = vpop.permute.xlu1 %3414 }
 0x3ce   : > { %v3267_v58 = vpop.permute.xlu0 %3266  ;;  %v3419_v37 = vsel %vm913_vm8, %v3413_v8, %v3415_v20 }
 0x3cf   : > { %v3270_v9 = vsel %vm913_vm8, %v6533_v15, %v3267_v58 }
 0x3d0   : > { %3754 = vmatpush1.bf16.msra.mxu0 %v3270_v9 }
 0x3d1   : > { %v3428_v29 = vpop.permute.xlu1 %3427 }
 0x3d2   : > { %v3417_v48 = vpop.permute.xlu0 %3416 }
 0x3d3   : > { %v3420_v24 = vsel %vm913_vm8, %v3415_v20, %v3417_v48 }
 0x3d4   : > { %3796 = vmatprep.subr.bf16.mxu1 %v3420_v24 }
 0x3d5   : > { %3797 = vmatpush1.bf16.msra.mxu1 %v3419_v37  ;;  %v3284_v45 = vpop.permute.xlu1 %3283 }
 0x3d6   : > { %v3287_v61 = vsel %vm931_vm9, %v6541_v28, %v3284_v45  ;;  %v3430_v51 = vpop.permute.xlu0 %3429  ;;  %v3931_v28 = vsub.s32 0, %v3930_v22 }
 0x3d7   : > { %v3435_v5 = vsel %vm931_vm9, %v3428_v29, %v3430_v51 }
 0x3d8   : > { %3755 = vmatprep.subr.bf16.mxu0 %v3435_v5  ;;  %v6603_v56 = vrot.slane %v3897_v38, %v3931_v28 }
 0x3d9   : > { %3756 = vmatpush1.bf16.msra.mxu0 %v3287_v61  ;;  %v3434_v16 = vpop.permute.xlu1 %3433 }
 0x3da   : > { %v3432_v15 = vpop.permute.xlu0 %3431 }
 0x3db   : > { %v3436_v54 = vsel %vm931_vm9, %v3430_v51, %v3432_v15  ;;  %v3437_v39 = vsel %vm931_vm9, %v3432_v15, %v3434_v16 }
 0x3dc   : > { %3772 = vmatmul.mubr.bf16.vlgmr.msra.gmra.mrb[8].mxu0 %v6411_v49  ;;  %3798 = vmatprep.subr.bf16.mxu1 %v3437_v39 }
 0x3dd   : > { %3799 = vmatpush1.bf16.msra.mxu1 %v3436_v54 }
 0x3e0   : > { %3815 = vmatmul.mubr.bf16.vlgmr.msra.gmra.mrb[8].mxu1 %v6411_v49 }
 0x3ea   : > { %v6607_v3 = vpop.permute.xlu1 %1510 }
 0x3eb   : > { %v6601_v46 = vpop.permute.xlu0 %1505 }
 0x40e   : > { %v3601_v32 = vpop.f32.mrb[0].mxu0 }
 0x40f   : > { %v4669_v49 = vadd.f32 %v3601_v32, %v6601_v46  ;;  %v3603_v25 = vpop.f32.mrb[1].mxu0 }
 0x410   : > { %v4670_v44 = vadd.f32 %v3603_v25, %v6601_v46  ;;  %v3605_v36 = vpop.f32.mrb[2].mxu0 }
 0x411   : > { %v3944_v52 = vmul.f32 %v4669_v49, %v6603_v56  ;;  %v4671_v43 = vadd.f32 %v3605_v36, %v6607_v3  ;;  %v3607_v31 = vpop.f32.mrb[3].mxu0 }
 0x412   : > { %v4653_v10 = vpack.c.bf16 %v4670_v44, %v4669_v49  ;;  %v3945_v18 = vmul.f32 %v4670_v44, %v6605_v34  ;;  %v4672_v60 = vadd.f32 %v3607_v31, %v6607_v3 }
 0x413   : > { %v3960_v19 = vmul.f32 %v3944_v52, %v3944_v52  ;;  %v3947_v26 = vmul.f32 %v4671_v43, %v6603_v56  ;;  %v3644_v27 = vpop.f32.mrb[0].mxu1 }
 0x414   : > { %3924 = vst [vmem:[%s4961_s29] sm:$0xff] %v4653_v10  ;;  %v3950_v13 = vadd.f32 %v3945_v18, %v3944_v52  ;;  %v3961_v7 = vmul.f32 %v3945_v18, %v3945_v18  ;;  %v4655_v40 = vpack.c.bf16 %v4672_v60, %v4671_v43  ;;  %v3948_v57 = vmul.f32 %v4672_v60, %v6605_v34  ;;  %v3646_v23 = vpop.f32.mrb[1].mxu1 }
 0x415   : > { %v3963_v17 = vmul.f32 %v3947_v26, %v3947_v26  ;;  %v4673_v21 = vadd.f32 %v3644_v27, %v6601_v46  ;;  %v3648_v63 = vpop.f32.mrb[2].mxu1  ;;  %v4674_v20 = vadd.f32 %v3646_v23, %v6601_v46 }
 0x416   : > { %3926 = vst [vmem:[%s4961_s29 + $0xc] sm:$0xff] %v4655_v40  ;;  %v3954_v1 = vadd.f32 %v3948_v57, %v3947_v26  ;;  %v3964_v59 = vmul.f32 %v3948_v57, %v3948_v57  ;;  %v4675_v35 = vadd.f32 %v3648_v63, %v6607_v3  ;;  %v3650_v53 = vpop.f32.mrb[3].mxu1  ;;  %v3966_v47 = vadd.f32 %v3961_v7, %v3960_v19 }
 0x417   : > { %v4654_v33 = vpack.c.bf16 %v4673_v21, %v4673_v21  ;;  %v3946_v42 = vmul.f32 %v4673_v21, %v6616_v30  ;;  %v4676_v58 = vadd.f32 %v3650_v53, %v6607_v3  ;;  %v4007_v9 = vmul.f32 %v4674_v20, %v6603_v56 }
 0x418   : > { %v4656_v12 = vpack.c.bf16 %v4675_v35, %v4675_v35  ;;  %v3949_v0 = vmul.f32 %v4675_v35, %v6616_v30  ;;  %v3970_v2 = vadd.f32 %v3964_v59, %v3963_v17 }
 0x419   : > { %3925 = vst [vmem:[%s4961_s29 + $0x8] sm:$0xf] %v4654_v33  ;;  %v3962_v11 = vmul.f32 %v3946_v42, %v3946_v42  ;;  %v3951_v50 = vadd.f32 %v3950_v13, %v3946_v42  ;;  %v4010_v29 = vmul.f32 %v4676_v58, %v6603_v56  ;;  %v4023_v51 = vmul.f32 %v4007_v9, %v4007_v9 }
 0x41a   : > { %3927 = vst [vmem:[%s4961_s29 + $0x14] sm:$0xf] %v4656_v12  ;;  %v3965_v6 = vmul.f32 %v3949_v0, %v3949_v0  ;;  %v3955_v8 = vadd.f32 %v3954_v1, %v3949_v0 }
 0x41b   : > { %3952 = vadd.xlane.f32.xlu1 %v3951_v50  ;;  %v3967_v4 = vadd.f32 %v3966_v47, %v3962_v11  ;;  %v4026_v39 = vmul.f32 %v4010_v29, %v4010_v29 }
 0x41c   : > { %3956 = vadd.xlane.f32.xlu0 %v3955_v8  ;;  %v3971_v41 = vadd.f32 %v3970_v2, %v3965_v6 }
 0x41f   : > { %3972 = vadd.xlane.f32.xlu1 %v3971_v41 }
 0x420   : > { %3968 = vadd.xlane.f32.xlu0 %v3967_v4 }
 0x45e   : > { %v3687_v48 = vpop.f32.mrb[4].mxu0 }
 0x45f   : > { %v4677_v24 = vadd.f32 %v3687_v48, %v6601_v46  ;;  %v3689_v37 = vpop.f32.mrb[5].mxu0 }
 0x460   : > { %v4678_v45 = vadd.f32 %v3689_v37, %v6601_v46  ;;  %v3691_v61 = vpop.f32.mrb[6].mxu0 }
 0x461   : > { %v4657_v5 = vpack.c.bf16 %v4677_v24, %v4674_v20  ;;  %v4008_v16 = vmul.f32 %v4677_v24, %v6605_v34  ;;  %v4679_v15 = vadd.f32 %v3691_v61, %v6607_v3  ;;  %v3693_v54 = vpop.f32.mrb[7].mxu0 }
 0x462   : > { %v4658_v55 = vpack.c.bf16 %v4678_v45, %v4678_v45  ;;  %v4009_v22 = vmul.f32 %v4678_v45, %v6616_v30  ;;  %v4680_v28 = vadd.f32 %v3693_v54, %v6607_v3  ;;  %v3730_v38 = vpop.f32.mrb[4].mxu1 }
 0x463   : > { %4623 = vst [vmem:[%s4961_s29 + $0x18] sm:$0xff] %v4657_v5  ;;  %v4013_v62 = vadd.f32 %v4008_v16, %v4007_v9  ;;  %v4024_v32 = vmul.f32 %v4008_v16, %v4008_v16  ;;  %v4659_v49 = vpack.c.bf16 %v4679_v15, %v4676_v58  ;;  %v4011_v25 = vmul.f32 %v4679_v15, %v6605_v34  ;;  %v3732_v14 = vpop.f32.mrb[5].mxu1 }
 0x464   : > { %4624 = vst [vmem:[%s4961_s29 + $0x20] sm:$0xf] %v4658_v55  ;;  %v4025_v44 = vmul.f32 %v4009_v22, %v4009_v22  ;;  %v4660_v36 = vpack.c.bf16 %v4680_v28, %v4680_v28  ;;  %v4012_v52 = vmul.f32 %v4680_v28, %v6616_v30  ;;  %v4681_v43 = vadd.f32 %v3730_v38, %v6601_v46  ;;  %v3734_v31 = vpop.f32.mrb[6].mxu1 }
 0x465   : > { %4625 = vst [vmem:[%s4961_s29 + $0x24] sm:$0xff] %v4659_v49  ;;  %v4017_v10 = vadd.f32 %v4011_v25, %v4010_v29  ;;  %v4027_v18 = vmul.f32 %v4011_v25, %v4011_v25  ;;  %v4682_v60 = vadd.f32 %v3732_v14, %v6601_v46  ;;  %v4683_v19 = vadd.f32 %v3734_v31, %v6607_v3  ;;  %v3736_v26 = vpop.f32.mrb[7].mxu1 }
 0x466   : > { %4626 = vst [vmem:[%s4961_s29 + $0x2c] sm:$0xf] %v4660_v36  ;;  %v4028_v27 = vmul.f32 %v4012_v52, %v4012_v52  ;;  %v4070_v13 = vmul.f32 %v4681_v43, %v6603_v56  ;;  %v4684_v7 = vadd.f32 %v3736_v26, %v6607_v3  ;;  %v4014_v40 = vadd.f32 %v4013_v62, %v4009_v22 }
 0x467   : > { %v4661_v57 = vpack.c.bf16 %v4682_v60, %v4681_v43  ;;  %v4071_v23 = vmul.f32 %v4682_v60, %v6605_v34  ;;  %v4073_v17 = vmul.f32 %v4683_v19, %v6603_v56  ;;  %v4018_v21 = vadd.f32 %v4017_v10, %v4012_v52 }
 0x468   : > { %v4086_v63 = vmul.f32 %v4070_v13, %v4070_v13  ;;  %v4663_v1 = vpack.c.bf16 %v4684_v7, %v4683_v19  ;;  %v4074_v59 = vmul.f32 %v4684_v7, %v6605_v34  ;;  %4015 = vadd.xlane.f32.xlu0 %v4014_v40  ;;  %v4029_v35 = vadd.f32 %v4024_v32, %v4023_v51 }
 0x469   : > { %4631 = vst [vmem:[%s4961_s29 + $0x30] sm:$0xff] %v4661_v57  ;;  %v4076_v53 = vadd.f32 %v4071_v23, %v4070_v13  ;;  %v4087_v47 = vmul.f32 %v4071_v23, %v4071_v23  ;;  %v4089_v33 = vmul.f32 %v4073_v17, %v4073_v17  ;;  %4019 = vadd.xlane.f32.xlu1 %v4018_v21 }
 0x46a   : > { %v4033_v42 = vadd.f32 %v4027_v18, %v4026_v39  ;;  %4633 = vst [vmem:[%s4961_s29 + $0x3c] sm:$0xff] %v4663_v1  ;;  %v4080_v12 = vadd.f32 %v4074_v59, %v4073_v17  ;;  %v4090_v0 = vmul.f32 %v4074_v59, %v4074_v59  ;;  %v4030_v2 = vadd.f32 %v4029_v35, %v4025_v44 }
 0x46b   : > { %v4092_v50 = vadd.f32 %v4087_v47, %v4086_v63 }
 0x46c   : > { %v4034_v11 = vadd.f32 %v4033_v42, %v4028_v27  ;;  %4031 = vadd.xlane.f32.xlu0 %v4030_v2  ;;  %v4096_v6 = vadd.f32 %v4090_v0, %v4089_v33 }
 0x46e   : > { %4035 = vadd.xlane.f32.xlu1 %v4034_v11 }
 0x4a8   : > { %v3953_v1 = vpop.xlane.xlu1 %3952 }
 0x4ac   : > { %v3973_v35 = vpop.xlane.xlu1 %3972 }
 0x4af   : > { %v3773_v8 = vpop.f32.mrb[8].mxu0 }
 0x4b0   : > { %v4685_v4 = vadd.f32 %v3773_v8, %v6601_v46  ;;  %v3775_v41 = vpop.f32.mrb[9].mxu0 }
 0x4b1   : > { %v4686_v20 = vadd.f32 %v3775_v41, %v6601_v46  ;;  %v3777_v58 = vpop.f32.mrb[10].mxu0 }
 0x4b2   : > { %v4662_v9 = vpack.c.bf16 %v4685_v4, %v4685_v4  ;;  %v4072_v29 = vmul.f32 %v4685_v4, %v6616_v30  ;;  %v4687_v48 = vadd.f32 %v3777_v58, %v6607_v3  ;;  %v3779_v24 = vpop.f32.mrb[11].mxu0  ;;  %v4165_v4 = vld [vmem:[#allocation5] sm:$0xff] }
 0x4b3   : > { %v4133_v37 = vmul.f32 %v4686_v20, %v6603_v56  ;;  %v4688_v45 = vadd.f32 %v3779_v24, %v6607_v3  ;;  %v3816_v61 = vpop.f32.mrb[8].mxu1  ;;  %v4166_v24 = vld [vmem:[#allocation5 + $0x8] sm:$0xff] }
 0x4b4   : > { %4632 = vst [vmem:[%s4961_s29 + $0x38] sm:$0xf] %v4662_v9  ;;  %v4088_v51 = vmul.f32 %v4072_v29, %v4072_v29  ;;  %v4664_v5 = vpack.c.bf16 %v4687_v48, %v4687_v48  ;;  %v4075_v16 = vmul.f32 %v4687_v48, %v6616_v30  ;;  %v4689_v15 = vadd.f32 %v3816_v61, %v6601_v46  ;;  %v3818_v54 = vpop.f32.mrb[9].mxu1 }
 0x4b5   : > { %v4149_v39 = vmul.f32 %v4133_v37, %v4133_v37  ;;  %v4136_v55 = vmul.f32 %v4688_v45, %v6603_v56  ;;  %v4690_v22 = vadd.f32 %v3818_v54, %v6601_v46  ;;  %v3820_v28 = vpop.f32.mrb[10].mxu1  ;;  %v4077_v38 = vadd.f32 %v4076_v53, %v4072_v29 }
 0x4b6   : > { %4634 = vst [vmem:[%s4961_s29 + $0x44] sm:$0xf] %v4664_v5  ;;  %v4091_v62 = vmul.f32 %v4075_v16, %v4075_v16  ;;  %v4665_v32 = vpack.c.bf16 %v4689_v15, %v4686_v20  ;;  %v4134_v49 = vmul.f32 %v4689_v15, %v6605_v34  ;;  %v4691_v25 = vadd.f32 %v3820_v28, %v6607_v3  ;;  %v3822_v14 = vpop.f32.mrb[11].mxu1 }
 0x4b7   : > { %v4152_v44 = vmul.f32 %v4136_v55, %v4136_v55  ;;  %v4666_v36 = vpack.c.bf16 %v4690_v22, %v4690_v22  ;;  %v4135_v52 = vmul.f32 %v4690_v22, %v6616_v30  ;;  %v4692_v56 = vadd.f32 %v3822_v14, %v6607_v3  ;;  %4078 = vadd.xlane.f32.xlu0 %v4077_v38 }
 0x4b8   : > { %4639 = vst [vmem:[%s4961_s29 + $0x48] sm:$0xff] %v4665_v32  ;;  %v4139_v46 = vadd.f32 %v4134_v49, %v4133_v37  ;;  %v4150_v43 = vmul.f32 %v4134_v49, %v4134_v49  ;;  %v4667_v31 = vpack.c.bf16 %v4691_v25, %v4688_v45  ;;  %v4137_v10 = vmul.f32 %v4691_v25, %v6605_v34 }
 0x4b9   : > { %4640 = vst [vmem:[%s4961_s29 + $0x50] sm:$0xf] %v4666_v36  ;;  %v4151_v18 = vmul.f32 %v4135_v52, %v4135_v52  ;;  %v4668_v60 = vpack.c.bf16 %v4692_v56, %v4692_v56  ;;  %v4138_v19 = vmul.f32 %v4692_v56, %v6616_v30  ;;  %v4081_v26 = vadd.f32 %v4080_v12, %v4075_v16  ;;  %v3957_v30 = vpop.xlane.xlu0 %3956 }
 0x4ba   : > { %4641 = vst [vmem:[%s4961_s29 + $0x54] sm:$0xff] %v4667_v31  ;;  %v4143_v27 = vadd.f32 %v4137_v10, %v4136_v55  ;;  %v4153_v13 = vmul.f32 %v4137_v10, %v4137_v10  ;;  %v4093_v7 = vadd.f32 %v4092_v50, %v4088_v51  ;;  %v4097_v40 = vadd.f32 %v4096_v6, %v4091_v62  ;;  %v4172_v51 = vld [vmem:[#allocation6] sm:$0xff]  ;;  %v4173_v55 = vld [vmem:[#allocation6 + $0x8] sm:$0xff] }
 0x4bb   : > { %4642 = vst [vmem:[%s4961_s29 + $0x5c] sm:$0xf] %v4668_v60  ;;  %v4154_v3 = vmul.f32 %v4138_v19, %v4138_v19  ;;  %4082 = vadd.xlane.f32.xlu1 %v4081_v26  ;;  %v4140_v57 = vadd.f32 %v4139_v46, %v4135_v52  ;;  %v4155_v23 = vadd.f32 %v4150_v43, %v4149_v39 }
 0x4bc   : > { %4094 = vadd.xlane.f32.xlu0 %v4093_v7  ;;  %v4144_v17 = vadd.f32 %v4143_v27, %v4138_v19  ;;  %v4159_v21 = vadd.f32 %v4153_v13, %v4152_v44 }
 0x4bd   : > { %v4156_v34 = vadd.f32 %v4155_v23, %v4151_v18  ;;  %v3969_v59 = vpop.xlane.xlu0 %3968 }
 0x4be   : > { %v4160_v63 = vadd.f32 %v4159_v21, %v4154_v3 }
 0x4bf   : > { %4098 = vadd.xlane.f32.xlu1 %v4097_v40 }
 0x4c0   : > { %4141 = vadd.xlane.f32.xlu0 %v4140_v57 }
 0x4c3   : > { %4145 = vadd.xlane.f32.xlu1 %v4144_v17 }
 0x4c4   : > { %4157 = vadd.xlane.f32.xlu0 %v4156_v34 }
 0x4c7   : > { %4161 = vadd.xlane.f32.xlu1 %v4160_v63 }
 0x4f5   : > { %v4016_v53 = vpop.xlane.xlu0 %4015 }
 0x4f6   : > { %v4020_v47 = vpop.xlane.xlu1 %4019  ;;  %v4021_v11 = vadd.f32 %v4016_v53, %v3953_v1 }
 0x4f7   : > { %v4022_v8 = vadd.f32 %v4020_v47, %v3957_v30 }
 0x4f9   : > { %v4032_v33 = vpop.xlane.xlu0 %4031 }
 0x4fa   : > { %v4037_v20 = vadd.f32 %v4032_v33, %v3969_v59 }
 0x4fb   : > { %v4036_v42 = vpop.xlane.xlu1 %4035 }
 0x4fc   : > { %v4038_v45 = vadd.f32 %v4036_v42, %v3973_v35 }
 0x544   : > { %v4079_v12 = vpop.xlane.xlu0 %4078 }
 0x545   : > { %v4084_v50 = vadd.f32 %v4079_v12, %v4021_v11 }
 0x548   : > { %v4083_v0 = vpop.xlane.xlu1 %4082 }
 0x549   : > { %v4095_v2 = vpop.xlane.xlu0 %4094  ;;  %v4085_v9 = vadd.f32 %v4083_v0, %v4022_v8 }
 0x54a   : > { %v4100_v29 = vadd.f32 %v4095_v2, %v4037_v20 }
 0x54c   : > { %v4099_v6 = vpop.xlane.xlu1 %4098 }
 0x54d   : > { %v4142_v41 = vpop.xlane.xlu0 %4141  ;;  %v4101_v15 = vadd.f32 %v4099_v6, %v4038_v45 }
 0x54e   : > { %v4147_v58 = vadd.f32 %v4142_v41, %v4084_v50 }
 0x550   : > { %v4167_v48 = vadd.f32 %v4165_v4, %v4147_v58  ;;  %v4146_v37 = vpop.xlane.xlu1 %4145 }
 0x551   : > { %v4148_v61 = vadd.f32 %v4146_v37, %v4085_v9  ;;  %v4158_v5 = vpop.xlane.xlu0 %4157 }
 0x552   : > { %4170 = vst.msk [vmem:[#allocation5] sm:$0xff] %vm4169_vm10, %v4167_v48  ;;  %v4163_v16 = vadd.f32 %v4158_v5, %v4100_v29 }
 0x553   : > { %v4168_v54 = vadd.f32 %v4166_v24, %v4148_v61  ;;  %4181 = sbr.rel (%p4643_p11) target bundleno = 1395 (0x573), region = 118 }
 0x554   : > { %v4174_v39 = vadd.f32 %v4172_v51, %v4163_v16  ;;  %v4162_v22 = vpop.xlane.xlu1 %4161 }
 0x555   : > { %4171 = vst.msk [vmem:[#allocation5 + $0x8] sm:$0xff] %vm4169_vm10, %v4168_v54  ;;  %v4164_v28 = vadd.f32 %v4162_v22, %v4101_v15 }
 0x556   : > { %4176 = vst.msk [vmem:[#allocation6] sm:$0xff] %vm4169_vm10, %v4174_v39 }
 0x557   : > { %v4175_v38 = vadd.f32 %v4173_v55, %v4164_v28 }
 0x559   : > { %4177 = vst.msk [vmem:[#allocation6 + $0x8] sm:$0xff] %vm4169_vm10, %v4175_v38  ;;  %v4182_v62 = vld [vmem:[#allocation5] sm:$0xff] (!%p4643_p11) }
 0x55a   : > { %v4184_v25 = vmul.f32 0.00024414063, %v4182_v62 }
 0x55c   : > { %v4183_v32 = vld [vmem:[#allocation5 + $0x8] sm:$0xff]  ;;  %v4190_v56 = vmul.f32 %v4184_v25, %v4184_v25  ;;  %4194 = vst.msk [vmem:[%s4949_s11] sm:$0xff] %vm4169_vm10, %v4184_v25 }
 0x55d   : > { %v4186_v49 = vld [vmem:[#allocation6] sm:$0xff]  ;;  %v4185_v14 = vmul.f32 0.00024414063, %v4183_v32 }
 0x55e   : > { %v4188_v44 = vmul.f32 0.00024414063, %v4186_v49 }
 0x55f   : > { %v4191_v46 = vmul.f32 %v4185_v14, %v4185_v14  ;;  %4195 = vst.msk [vmem:[%s4949_s11 + $0x8] sm:$0xff] %vm4169_vm10, %v4185_v14 }
 0x560   : > { %v4187_v36 = vld [vmem:[#allocation6 + $0x8] sm:$0xff]  ;;  %v4192_v43 = vsub.f32 %v4188_v44, %v4190_v56 }
 0x561   : > { %v4189_v52 = vmul.f32 0.00024414063, %v4187_v36 }
 0x562   : > { %v4196_v10 = vadd.f32 1e-05, %v4192_v43 }
 0x563   : > { %v4193_v31 = vsub.f32 %v4189_v52, %v4191_v46 }
 0x564   : > { %4817 = vrsqrt.f32 %v4196_v10 }
 0x565   : > { %v4197_v18 = vadd.f32 1e-05, %v4193_v31 }
 0x567   : > { %4819 = vrsqrt.f32 %v4197_v18 }
 0x56e   : > { %v4818_v60 = vpop.eup %4817 }
 0x56f   : > { %4200 = vst.msk [vmem:[%s4954_s14] sm:$0xff] %vm4169_vm10, %v4818_v60 }
 0x571   : > { %v4820_v19 = vpop.eup %4819 }
 0x572   : > { %4201 = vst.msk [vmem:[%s4954_s14 + $0x8] sm:$0xff] %vm4169_vm10, %v4820_v19 }
 0x573 PF: > { %s17_s25 = sadd.s32 1, %s4861_s25   ;;  %s6711_s11 = sld [smem:[#allocation11_spill]] }
 0x574   : > { %p14_p12 = scmp.ge.s32.totalorder %s17_s25, 10   ;;  %s6712_s21 = smov %s4853_s23 }
 0x575   : > { %s6713_s22 = smov %s4857_s24  ;;  %s6714_s23 = smov %s6717_s26 }
 0x576   :  { %16 = sbr.rel (!%p14_p12) target bundleno = 3 (0x3), region = 215 }
 0x579   : > { %s6715_s24 = smov %s6711_s11 }
 0x57d   :  { %4266 = vsyncmov [#allocation7] }
 0x580   :  { %s4267_s14 = vpop.sfrf %4266 }
 0x581   :  { %p4646_p13 = scmp.ne.s32.totalorder %s4267_s14, 0 }
 0x583   :  { %4271 = shalt.err (%p4646_p13)  }
 0x584   :  { %4273 = vsyncmov [#allocation7 + $0x1] }
 0x587   :  { %s4274_s29 = vpop.sfrf %4273 }
 0x588   :  { %p4647_p0 = scmp.ne.s32.totalorder %s4274_s29, 0 }
 0x58a   :  { %4278 = shalt.err (%p4647_p0)  }

</bundles_post_ra>
